<compile_context>
chip_gen: v6e
topology: v6e:2x2x1
jax: 0.10.0
libtpu: 0.0.40
codegen_flags: <defaults>
</compile_context>

<pallas_src>
import functools
import numpy as np
import jax
import jax.numpy as jnp
from jax import lax
from jax.experimental import pallas as pl
from jax.experimental.pallas import tpu as pltpu

# ----------------------------- small config --------------------------------
HF_INPUT_KEYS = ["input_ids", "token_type_ids", "attention_mask"]
VOCAB_SIZE = 100
HIDDEN = 32
NUM_HEADS = 2
HEAD_DIM = HIDDEN // NUM_HEADS
INTERMEDIATE = 64
NUM_LAYERS = 2
MAX_POS = 64
TYPE_VOCAB = 2
LN_EPS = 1e-12
PAD_VALUES = [0, 0, 0]          # [pad_token_id, pad_token_type_id, 0]
SAMPLE_RATE = 16000
ATT_SCALE = 1.0 / float(np.sqrt(HEAD_DIM))

VOCAB_PAD = ((VOCAB_SIZE + 127) // 128) * 128       # 128 (lane-aligned table)
TYPE_PAD = 8
VEC_W = 3 * HIDDEN                                  # 96: packed-vector row width
VEC_ROWS_PER_LAYER = 8
N_VEC_ROWS = 2 + VEC_ROWS_PER_LAYER * NUM_LAYERS    # 18


# ----------------------------- kernel helpers -------------------------------
def _layernorm(h, g, b):
    mu = jnp.mean(h, axis=-1, keepdims=True)
    var = jnp.mean((h - mu) * (h - mu), axis=-1, keepdims=True)
    return (h - mu) * lax.rsqrt(var + LN_EPS) * g + b


def _gelu(x):
    # TODO(synk): HF default BERT uses exact erf GELU; tanh approximation
    # ("gelu_new") deviates by ~1e-3.  erf has no reliable Mosaic lowering,
    # so the tanh form is used here.
    return 0.5 * x * (1.0 + jnp.tanh(0.7978845608028654 * (x + 0.044715 * x * x * x)))


# ----------------------------- fused encoder kernel -------------------------
def _encoder_kernel(tok_ref, amask_ref, wemb_ref, temb_ref, pemb_ref, vecs_ref,
                    wqkv_ref, wo_ref, wi_ref, wf_ref, hs_ref, *, dense_out):
    """One grid step = TB sequences. Everything stays resident in VMEM."""
    ids = tok_ref[0, 0]          # (TB, S, 1) int32
    tts = tok_ref[0, 1]          # (TB, S, 1) int32
    TB, S, _ = ids.shape
    R = TB * S

    # ---- embeddings in-kernel: one-hot "gathers" routed through the MXU ----
    oh_w = (ids == lax.broadcasted_iota(jnp.int32, (TB, S, VOCAB_PAD), 2)
            ).astype(jnp.float32)
    oh_t = (tts == lax.broadcasted_iota(jnp.int32, (TB, S, TYPE_PAD), 2)
            ).astype(jnp.float32)
    word = jnp.dot(oh_w.reshape(R, VOCAB_PAD), wemb_ref[...],
                   preferred_element_type=jnp.float32)            # (R, H)
    typ = jnp.dot(oh_t.reshape(R, TYPE_PAD), temb_ref[...],
                  preferred_element_type=jnp.float32)             # (R, H)
    pos = pemb_ref[0:S, :]                                        # (S, H)
    x = ((word + typ).reshape(TB, S, HIDDEN) + pos[None, :, :]).reshape(R, HIDDEN)

    # Additive attention bias built in-kernel from the int mask.
    bias = (1.0 - amask_ref[0].astype(jnp.float32)) * -1e9        # (TB, 1, S)

    # Packed small vectors (static row/column slices).
    emb_g = vecs_ref[0:1, 0:HIDDEN]
    emb_b = vecs_ref[1:2, 0:HIDDEN]
    h = _layernorm(x, emb_g, emb_b)                               # (R, H)

    def store(layer, hval):
        if dense_out:
            hs_ref[0, layer] = hval.reshape(TB, S * HIDDEN)       # lane-dense store
        else:
            hs_ref[0, layer] = hval.reshape(TB, S, HIDDEN)

    store(0, h)

    # Static unroll over layers (L=2): all weights already resident in VMEM.
    for l in range(NUM_LAYERS):
        base = 2 + VEC_ROWS_PER_LAYER * l
        bqkv = vecs_ref[base + 0:base + 1, :]                     # (1, 3H)
        bo   = vecs_ref[base + 1:base + 2, 0:HIDDEN]
        ln1g = vecs_ref[base + 2:base + 3, 0:HIDDEN]
        ln1b = vecs_ref[base + 3:base + 4, 0:HIDDEN]
        bi   = vecs_ref[base + 4:base + 5, 0:INTERMEDIATE]
        bf   = vecs_ref[base + 5:base + 6, 0:HIDDEN]
        ln2g = vecs_ref[base + 6:base + 7, 0:HIDDEN]
        ln2b = vecs_ref[base + 7:base + 8, 0:HIDDEN]

        # ---- self attention: fused QKV slab matmul over all TB*S positions ----
        qkv = jnp.dot(h, wqkv_ref[l], preferred_element_type=jnp.float32) + bqkv
        wo = wo_ref[l]                                            # (H, H)
        attn = jnp.zeros((R, HIDDEN), jnp.float32)
        for hd in range(NUM_HEADS):                               # NUM_HEADS = 2, static
            lo = hd * HEAD_DIM
            # leading-dim reshapes only (layout-free); batch over TB sequences
            q = (qkv[:, lo:lo + HEAD_DIM] * ATT_SCALE).reshape(TB, S, HEAD_DIM)
            k = qkv[:, HIDDEN + lo:HIDDEN + lo + HEAD_DIM].reshape(TB, S, HEAD_DIM)
            v = qkv[:, 2 * HIDDEN + lo:2 * HIDDEN + lo + HEAD_DIM].reshape(TB, S, HEAD_DIM)
            s = jnp.einsum('bqd,bkd->bqk', q, k,
                           preferred_element_type=jnp.float32) + bias   # (TB, S, S)
            m = jnp.max(s, axis=-1, keepdims=True)
            p = jnp.exp(s - m)
            p = p * pl.reciprocal(jnp.sum(p, axis=-1, keepdims=True), approx=True)
            ctx = jnp.einsum('bqk,bkd->bqd', p, v,
                             preferred_element_type=jnp.float32)        # (TB, S, dh)
            # Accumulate ctx @ wo[head rows] -> avoids an in-kernel head concat.
            attn = attn + jnp.dot(ctx.reshape(R, HEAD_DIM), wo[lo:lo + HEAD_DIM, :],
                                  preferred_element_type=jnp.float32)
        attn = attn + bo
        h = _layernorm(attn + h, ln1g, ln1b)

        # ---- feed forward (intermediate never leaves VMEM) ----
        inter = _gelu(jnp.dot(h, wi_ref[l], preferred_element_type=jnp.float32) + bi)
        ffn = jnp.dot(inter, wf_ref[l], preferred_element_type=jnp.float32) + bf
        h = _layernorm(ffn + h, ln2g, ln2b)

        store(l + 1, h)


# ------------------------------- pallas wrapper ------------------------------
def encoder_forward(tok, amask, params, *, dense_out):
    """tok: (nb, 2, TB, S, 1) int32; amask: (nb, TB, 1, S) int32."""
    nb, _, TB, S, _ = tok.shape
    L = NUM_LAYERS
    X = S * HIDDEN

    def full(a):
        r = a.ndim
        return pl.BlockSpec(a.shape, lambda g, _r=r: (0,) * _r)

    in_specs = [
        pl.BlockSpec((1, 2, TB, S, 1), lambda g: (g, 0, 0, 0, 0)),
        pl.BlockSpec((1, TB, 1, S), lambda g: (g, 0, 0, 0)),
        full(params["word_emb"]), full(params["type_emb"]), full(params["pos_emb"]),
        full(params["vecs"]),
        full(params["wqkv"]), full(params["wo"]), full(params["wi"]), full(params["wf"]),
    ]
    if dense_out:
        out_shape = jax.ShapeDtypeStruct((nb, L + 1, TB, X), jnp.float32)
        out_spec = pl.BlockSpec((1, L + 1, TB, X), lambda g: (g, 0, 0, 0))
    else:
        out_shape = jax.ShapeDtypeStruct((nb, L + 1, TB, S, HIDDEN), jnp.float32)
        out_spec = pl.BlockSpec((1, L + 1, TB, S, HIDDEN), lambda g: (g, 0, 0, 0, 0))

    kernel = functools.partial(_encoder_kernel, dense_out=dense_out)
    return pl.pallas_call(
        kernel,
        out_shape=out_shape,
        grid=(nb,),
        in_specs=in_specs,
        out_specs=out_spec,
        compiler_params=pltpu.CompilerParams(dimension_semantics=("parallel",)),
    )(tok, amask,
      params["word_emb"], params["type_emb"], params["pos_emb"], params["vecs"],
      params["wqkv"], params["wo"], params["wi"], params["wf"])


# --------------------------- parameter creation -----------------------------
def init_params(key):
    def nrm(k, shape, scale=0.02):
        return (scale * jax.random.normal(k, shape)).astype(jnp.float32)

    n_keys = 5 + 12 * NUM_LAYERS
    ki = iter(jax.random.split(key, n_keys))

    word = nrm(next(ki), (VOCAB_SIZE, HIDDEN))
    pos = nrm(next(ki), (MAX_POS, HIDDEN))
    typ = nrm(next(ki), (TYPE_VOCAB, HIDDEN))
    word_p = jnp.zeros((VOCAB_PAD, HIDDEN), jnp.float32).at[:VOCAB_SIZE].set(word)
    typ_p = jnp.zeros((TYPE_PAD, HIDDEN), jnp.float32).at[:TYPE_VOCAB].set(typ)

    def pad_row(v):
        v = jnp.asarray(v, jnp.float32).reshape(-1)
        return jnp.pad(v, (0, VEC_W - v.shape[0]))

    # Packed small-vector table: rows 0/1 = embedding LN gamma/beta, then 8 rows
    # per layer: [bqkv, bo, ln1_g, ln1_b, bi, bf, ln2_g, ln2_b].
    rows = [pad_row(1.0 + nrm(next(ki), (HIDDEN,), 0.01)),
            pad_row(nrm(next(ki), (HIDDEN,), 0.01))]

    wqkv, wo, wi, wf = [], [], [], []
    for _ in range(NUM_LAYERS):
        wqkv.append(nrm(next(ki), (HIDDEN, 3 * HIDDEN)))   # fused [Wq | Wk | Wv]
        wo.append(nrm(next(ki), (HIDDEN, HIDDEN)))
        wi.append(nrm(next(ki), (HIDDEN, INTERMEDIATE)))
        wf.append(nrm(next(ki), (INTERMEDIATE, HIDDEN)))
        rows += [
            pad_row(nrm(next(ki), (3 * HIDDEN,), 0.01)),
            pad_row(nrm(next(ki), (HIDDEN,), 0.01)),
            pad_row(1.0 + nrm(next(ki), (HIDDEN,), 0.01)),
            pad_row(nrm(next(ki), (HIDDEN,), 0.01)),
            pad_row(nrm(next(ki), (INTERMEDIATE,), 0.01)),
            pad_row(nrm(next(ki), (HIDDEN,), 0.01)),
            pad_row(1.0 + nrm(next(ki), (HIDDEN,), 0.01)),
            pad_row(nrm(next(ki), (HIDDEN,), 0.01)),
        ]

    return {
        "word_emb": word_p, "pos_emb": pos, "type_emb": typ_p,
        "vecs": jnp.stack(rows),                         # (18, 96)
        "wqkv": jnp.stack(wqkv), "wo": jnp.stack(wo),
        "wi": jnp.stack(wi), "wf": jnp.stack(wf),
    }


# ------------------------------- forward glue --------------------------------
def pad_token(tokens):
    """Mimics UpstreamExpert.pad_token (host-side numpy; int32 instead of int64)."""
    max_len = max(t.shape[0] for t in tokens)
    key_size = tokens[0].shape[1]
    out = {}
    for key_id, key_name in enumerate(HF_INPUT_KEYS):
        rows = []
        for t in tokens:
            if key_id < key_size:
                col = np.asarray(t[:, key_id], dtype=np.int32)
            elif key_name == "attention_mask":
                col = np.ones((t.shape[0],), dtype=np.int32)
            else:
                col = np.zeros((t.shape[0],), dtype=np.int32)
            pad = np.full((max_len - col.shape[0],), PAD_VALUES[key_id], dtype=np.int32)
            rows.append(np.concatenate([col, pad]))
        out[key_name] = np.stack(rows).astype(np.int32)
    return out


def _num_blocks_for(B):
    # v7x / megacore chips have 2 TensorCores -> keep 2 parallel grid steps;
    # single-TC chips (v5e / v6e) -> collapse to one step (grid is serial there).
    try:
        kind = jax.devices()[0].device_kind.lower()
    except Exception:
        kind = ""
    two_core = any(tag in kind for tag in ("v7", "v4", "v5p"))
    return 2 if (two_core and B >= 2 and B % 2 == 0) else 1


def upstream_expert_forward(tokens, params):
    # Featurizer-instantiation sentinel (16000-sample waveform -> random ids).
    # TODO(synk): no checkpoint tokenizer available; deterministic stand-in ids.
    if tokens[0].ndim == 1 and tokens[0].shape[0] == SAMPLE_RATE:
        tokens = list(tokens)
        tokens[0] = np.random.default_rng(0).integers(
            0, VOCAB_SIZE, size=(20, 1)).astype(np.int32)

    input_dict = pad_token(tokens)                 # host-side numpy, no dispatches
    ids = input_dict["input_ids"]                  # (B, S)
    tts = input_dict["token_type_ids"]             # (B, S)
    am = input_dict["attention_mask"]              # (B, S)
    B, S = ids.shape
    assert S <= MAX_POS

    nb = _num_blocks_for(B)
    TB = B // nb

    tok_np = np.stack([ids, tts], axis=0).reshape(2, nb, TB, S, 1).transpose(1, 0, 2, 3, 4)
    amask_np = am.reshape(nb, TB, 1, S)
    tok = jnp.asarray(tok_np, jnp.int32)
    amask = jnp.asarray(amask_np, jnp.int32)

    L = NUM_LAYERS
    try:
        # Preferred path: lane-dense (TB, S*H) stores inside the kernel.
        out = encoder_forward(tok, amask, params, dense_out=True)
        out = jax.block_until_ready(out)
        hs = jnp.transpose(out, (1, 0, 2, 3)).reshape(L + 1, B, S, HIDDEN)
    except Exception:
        # Fallback if this Mosaic build cannot lower the in-kernel lane-flatten
        # reshape: natural (TB, S, H) stores, identical numerics.
        out = encoder_forward(tok, amask, params, dense_out=False)
        hs = jnp.transpose(out, (1, 0, 2, 3, 4)).reshape(L + 1, B, S, HIDDEN)

    return {"hidden_states": tuple(hs[i] for i in range(L + 1))}


# --------------------------------- main --------------------------------------
if __name__ == "__main__":
    key = jax.random.PRNGKey(0)
    pkey, tkey1, tkey2 = jax.random.split(key, 3)
    params = init_params(pkey)

    # Two "token" tensors of shape (seq_len, 3): [input_ids, type_ids, mask].
    seq_lens = [8, 6]
    tokens = []
    for sl, tk in zip(seq_lens, [tkey1, tkey2]):
        tok_ids = np.asarray(jax.random.randint(tk, (sl,), 1, VOCAB_SIZE), dtype=np.int32)
        types = np.zeros((sl,), dtype=np.int32)
        mask = np.ones((sl,), dtype=np.int32)
        tokens.append(np.stack([tok_ids, types, mask], axis=1))   # (sl, 3)

    out = upstream_expert_forward(tokens, params)
    for h in out["hidden_states"]:
        jax.block_until_ready(h)

    assert len(out["hidden_states"]) == NUM_LAYERS + 1
    assert out["hidden_states"][0].shape == (2, max(seq_lens), HIDDEN)
    assert all(bool(jnp.all(jnp.isfinite(h))) for h in out["hidden_states"])
    print("KERNEL_OK")
</pallas_src>

<mosaic_0001>
module attributes {stable_mosaic.version = 11 : i64} {
  func.func @_encoder_kernel(%arg0: i32, %arg1: memref<1x2x2x8x1xi32, #tpu.memory_space<vmem>>, %arg2: memref<1x2x1x8xi32, #tpu.memory_space<vmem>>, %arg3: memref<128x32xf32, #tpu.memory_space<vmem>>, %arg4: memref<8x32xf32, #tpu.memory_space<vmem>>, %arg5: memref<64x32xf32, #tpu.memory_space<vmem>>, %arg6: memref<18x96xf32, #tpu.memory_space<vmem>>, %arg7: memref<2x32x96xf32, #tpu.memory_space<vmem>>, %arg8: memref<2x32x32xf32, #tpu.memory_space<vmem>>, %arg9: memref<2x32x64xf32, #tpu.memory_space<vmem>>, %arg10: memref<2x64x32xf32, #tpu.memory_space<vmem>>, %arg11: memref<1x3x2x256xf32, #tpu.memory_space<vmem>>) attributes {dimension_semantics = [#tpu.dimension_semantics<parallel>], iteration_bounds = array<i64: 1>, scalar_prefetch = 0 : i64, scratch_operands = 0 : i64, tpu.core_type = #tpu.core_type<tc>, window_params = [{transform_indices = @transform_0, window_bounds = array<i64: 1, 2, 2, 8, 1>}, {transform_indices = @transform_1, window_bounds = array<i64: 1, 2, 1, 8>}, {pipeline_mode = #tpu.pipeline_mode<synchronous>, transform_indices = @transform_2, window_bounds = array<i64: 128, 32>}, {pipeline_mode = #tpu.pipeline_mode<synchronous>, transform_indices = @transform_3, window_bounds = array<i64: 8, 32>}, {pipeline_mode = #tpu.pipeline_mode<synchronous>, transform_indices = @transform_4, window_bounds = array<i64: 64, 32>}, {pipeline_mode = #tpu.pipeline_mode<synchronous>, transform_indices = @transform_5, window_bounds = array<i64: 18, 96>}, {pipeline_mode = #tpu.pipeline_mode<synchronous>, transform_indices = @transform_6, window_bounds = array<i64: 2, 32, 96>}, {pipeline_mode = #tpu.pipeline_mode<synchronous>, transform_indices = @transform_7, window_bounds = array<i64: 2, 32, 32>}, {pipeline_mode = #tpu.pipeline_mode<synchronous>, transform_indices = @transform_8, window_bounds = array<i64: 2, 32, 64>}, {pipeline_mode = #tpu.pipeline_mode<synchronous>, transform_indices = @transform_9, window_bounds = array<i64: 2, 64, 32>}, {transform_indices = @transform_10, window_bounds = array<i64: 1, 3, 2, 256>}]} {
    %c0 = arith.constant 0 : index
    %c0_0 = arith.constant 0 : index
    %c0_1 = arith.constant 0 : index
    %c0_2 = arith.constant 0 : index
    %c0_3 = arith.constant 0 : index
    %0 = vector.load %arg1[%c0, %c0_0, %c0_1, %c0_2, %c0_3] : memref<1x2x2x8x1xi32, #tpu.memory_space<vmem>>, vector<1x1x2x8x1xi32>
    %1 = vector.shape_cast %0 : vector<1x1x2x8x1xi32> to vector<2x8x1xi32>
    %c0_4 = arith.constant 0 : index
    %c1 = arith.constant 1 : index
    %c0_5 = arith.constant 0 : index
    %c0_6 = arith.constant 0 : index
    %c0_7 = arith.constant 0 : index
    %2 = vector.load %arg1[%c0_4, %c1, %c0_5, %c0_6, %c0_7] : memref<1x2x2x8x1xi32, #tpu.memory_space<vmem>>, vector<1x1x2x8x1xi32>
    %3 = vector.shape_cast %2 : vector<1x1x2x8x1xi32> to vector<2x8x1xi32>
    %4 = tpu.iota {dimensions = array<i32: 2>} : vector<2x8x128xi32>
    %5 = vector.broadcast %1 : vector<2x8x1xi32> to vector<2x8x128xi32>
    %6 = arith.cmpi eq, %5, %4 : vector<2x8x128xi32>
    %7 = arith.extui %6 : vector<2x8x128xi1> to vector<2x8x128xi32>
    %8 = arith.sitofp %7 : vector<2x8x128xi32> to vector<2x8x128xf32>
    %9 = tpu.iota {dimensions = array<i32: 2>} : vector<2x8x8xi32>
    %10 = vector.broadcast %3 : vector<2x8x1xi32> to vector<2x8x8xi32>
    %11 = arith.cmpi eq, %10, %9 : vector<2x8x8xi32>
    %12 = arith.extui %11 : vector<2x8x8xi1> to vector<2x8x8xi32>
    %13 = arith.sitofp %12 : vector<2x8x8xi32> to vector<2x8x8xf32>
    %14 = vector.shape_cast %8 : vector<2x8x128xf32> to vector<16x128xf32>
    %c0_8 = arith.constant 0 : index
    %c0_9 = arith.constant 0 : index
    %15 = vector.load %arg3[%c0_8, %c0_9] : memref<128x32xf32, #tpu.memory_space<vmem>>, vector<128x32xf32>
    %cst = arith.constant dense<0.000000e+00> : vector<16x32xf32>
    %16 = tpu.matmul %14, %15, %cst {dimension_numbers = #tpu.dot_dimension_numbers<[1], [0], [0], [1], [0, 0, 1, 1], [], []>} : vector<16x128xf32>, vector<128x32xf32>, vector<16x32xf32> -> vector<16x32xf32>
    %17 = vector.shape_cast %13 : vector<2x8x8xf32> to vector<16x8xf32>
    %c0_10 = arith.constant 0 : index
    %c0_11 = arith.constant 0 : index
    %18 = vector.load %arg4[%c0_10, %c0_11] : memref<8x32xf32, #tpu.memory_space<vmem>>, vector<8x32xf32>
    %cst_12 = arith.constant dense<0.000000e+00> : vector<16x32xf32>
    %19 = tpu.matmul %17, %18, %cst_12 {dimension_numbers = #tpu.dot_dimension_numbers<[1], [0], [0], [1], [0, 0, 1, 1], [], []>} : vector<16x8xf32>, vector<8x32xf32>, vector<16x32xf32> -> vector<16x32xf32>
    %c0_13 = arith.constant 0 : index
    %c0_14 = arith.constant 0 : index
    %20 = vector.load %arg5[%c0_13, %c0_14] : memref<64x32xf32, #tpu.memory_space<vmem>>, vector<8x32xf32>
    %21 = arith.addf %16, %19 : vector<16x32xf32>
    %22 = vector.shape_cast %21 : vector<16x32xf32> to vector<2x8x32xf32>
    %23 = vector.shape_cast %20 : vector<8x32xf32> to vector<1x8x32xf32>
    %24 = vector.broadcast %23 : vector<1x8x32xf32> to vector<2x8x32xf32>
    %25 = arith.addf %22, %24 : vector<2x8x32xf32>
    %26 = vector.shape_cast %25 : vector<2x8x32xf32> to vector<16x32xf32>
    %c0_15 = arith.constant 0 : index
    %c0_16 = arith.constant 0 : index
    %c0_17 = arith.constant 0 : index
    %c0_18 = arith.constant 0 : index
    %27 = vector.load %arg2[%c0_15, %c0_16, %c0_17, %c0_18] : memref<1x2x1x8xi32, #tpu.memory_space<vmem>>, vector<1x2x1x8xi32>
    %28 = vector.shape_cast %27 : vector<1x2x1x8xi32> to vector<2x1x8xi32>
    %29 = arith.sitofp %28 : vector<2x1x8xi32> to vector<2x1x8xf32>
    %cst_19 = arith.constant 1.000000e+00 : f32
    %30 = vector.broadcast %cst_19 : f32 to vector<2x1x8xf32>
    %31 = arith.subf %30, %29 : vector<2x1x8xf32>
    %cst_20 = arith.constant -1.000000e+09 : f32
    %32 = vector.broadcast %cst_20 : f32 to vector<2x1x8xf32>
    %33 = arith.mulf %31, %32 : vector<2x1x8xf32>
    %c0_21 = arith.constant 0 : index
    %c0_22 = arith.constant 0 : index
    %34 = vector.load %arg6[%c0_21, %c0_22] : memref<18x96xf32, #tpu.memory_space<vmem>>, vector<1x32xf32>
    %c1_23 = arith.constant 1 : index
    %c0_24 = arith.constant 0 : index
    %35 = vector.load %arg6[%c1_23, %c0_24] : memref<18x96xf32, #tpu.memory_space<vmem>>, vector<1x32xf32>
    %cst_25 = arith.constant dense<0.000000e+00> : vector<16xf32>
    %36 = vector.multi_reduction <add>, %26, %cst_25 [1] : vector<16x32xf32> to vector<16xf32>
    %37 = vector.shape_cast %36 : vector<16xf32> to vector<16x1xf32>
    %cst_26 = arith.constant 3.200000e+01 : f32
    %38 = vector.broadcast %cst_26 : f32 to vector<16x1xf32>
    %39 = arith.divf %37, %38 : vector<16x1xf32>
    %40 = vector.broadcast %39 : vector<16x1xf32> to vector<16x32xf32>
    %41 = arith.subf %26, %40 : vector<16x32xf32>
    %42 = vector.broadcast %39 : vector<16x1xf32> to vector<16x32xf32>
    %43 = arith.subf %26, %42 : vector<16x32xf32>
    %44 = arith.mulf %41, %43 : vector<16x32xf32>
    %cst_27 = arith.constant dense<0.000000e+00> : vector<16xf32>
    %45 = vector.multi_reduction <add>, %44, %cst_27 [1] : vector<16x32xf32> to vector<16xf32>
    %46 = vector.shape_cast %45 : vector<16xf32> to vector<16x1xf32>
    %cst_28 = arith.constant 3.200000e+01 : f32
    %47 = vector.broadcast %cst_28 : f32 to vector<16x1xf32>
    %48 = arith.divf %46, %47 : vector<16x1xf32>
    %49 = vector.broadcast %39 : vector<16x1xf32> to vector<16x32xf32>
    %50 = arith.subf %26, %49 : vector<16x32xf32>
    %cst_29 = arith.constant 9.99999996E-13 : f32
    %51 = vector.broadcast %cst_29 : f32 to vector<16x1xf32>
    %52 = arith.addf %48, %51 : vector<16x1xf32>
    %53 = math.rsqrt %52 : vector<16x1xf32>
    %54 = vector.broadcast %53 : vector<16x1xf32> to vector<16x32xf32>
    %55 = arith.mulf %50, %54 : vector<16x32xf32>
    %56 = vector.broadcast %34 : vector<1x32xf32> to vector<16x32xf32>
    %57 = arith.mulf %55, %56 : vector<16x32xf32>
    %58 = vector.broadcast %35 : vector<1x32xf32> to vector<16x32xf32>
    %59 = arith.addf %57, %58 : vector<16x32xf32>
    %60 = vector.shape_cast %59 : vector<16x32xf32> to vector<2x256xf32>
    %c0_30 = arith.constant 0 : index
    %c0_31 = arith.constant 0 : index
    %c0_32 = arith.constant 0 : index
    %c0_33 = arith.constant 0 : index
    %61 = vector.load %arg11[%c0_30, %c0_31, %c0_32, %c0_33] : memref<1x3x2x256xf32, #tpu.memory_space<vmem>>, vector<1x1x2x256xf32>
    %62 = vector.shape_cast %61 : vector<1x1x2x256xf32> to vector<2x256xf32>
    %63 = vector.shape_cast %60 : vector<2x256xf32> to vector<1x1x2x256xf32>
    tpu.vector_store %arg11[%c0_30, %c0_31, %c0_32, %c0_33], %63 {strides = array<i32>} : memref<1x3x2x256xf32, #tpu.memory_space<vmem>>, vector<1x1x2x256xf32>,
    %c2 = arith.constant 2 : index
    %c0_34 = arith.constant 0 : index
    %64 = vector.load %arg6[%c2, %c0_34] : memref<18x96xf32, #tpu.memory_space<vmem>>, vector<1x96xf32>
    %c3 = arith.constant 3 : index
    %c0_35 = arith.constant 0 : index
    %65 = vector.load %arg6[%c3, %c0_35] : memref<18x96xf32, #tpu.memory_space<vmem>>, vector<1x32xf32>
    %c4 = arith.constant 4 : index
    %c0_36 = arith.constant 0 : index
    %66 = vector.load %arg6[%c4, %c0_36] : memref<18x96xf32, #tpu.memory_space<vmem>>, vector<1x32xf32>
    %c5 = arith.constant 5 : index
    %c0_37 = arith.constant 0 : index
    %67 = vector.load %arg6[%c5, %c0_37] : memref<18x96xf32, #tpu.memory_space<vmem>>, vector<1x32xf32>
    %c6 = arith.constant 6 : index
    %c0_38 = arith.constant 0 : index
    %68 = vector.load %arg6[%c6, %c0_38] : memref<18x96xf32, #tpu.memory_space<vmem>>, vector<1x64xf32>
    %c7 = arith.constant 7 : index
    %c0_39 = arith.constant 0 : index
    %69 = vector.load %arg6[%c7, %c0_39] : memref<18x96xf32, #tpu.memory_space<vmem>>, vector<1x32xf32>
    %c8 = arith.constant 8 : index
    %c0_40 = arith.constant 0 : index
    %70 = vector.load %arg6[%c8, %c0_40] : memref<18x96xf32, #tpu.memory_space<vmem>>, vector<1x32xf32>
    %c9 = arith.constant 9 : index
    %c0_41 = arith.constant 0 : index
    %71 = vector.load %arg6[%c9, %c0_41] : memref<18x96xf32, #tpu.memory_space<vmem>>, vector<1x32xf32>
    %c0_42 = arith.constant 0 : index
    %c0_43 = arith.constant 0 : index
    %c0_44 = arith.constant 0 : index
    %72 = vector.load %arg7[%c0_42, %c0_43, %c0_44] : memref<2x32x96xf32, #tpu.memory_space<vmem>>, vector<1x32x96xf32>
    %73 = vector.shape_cast %72 : vector<1x32x96xf32> to vector<32x96xf32>
    %cst_45 = arith.constant dense<0.000000e+00> : vector<16x96xf32>
    %74 = tpu.matmul %59, %73, %cst_45 {dimension_numbers = #tpu.dot_dimension_numbers<[1], [0], [0], [1], [0, 0, 1, 1], [], []>} : vector<16x32xf32>, vector<32x96xf32>, vector<16x96xf32> -> vector<16x96xf32>
    %75 = vector.broadcast %64 : vector<1x96xf32> to vector<16x96xf32>
    %76 = arith.addf %74, %75 : vector<16x96xf32>
    %c0_46 = arith.constant 0 : index
    %c0_47 = arith.constant 0 : index
    %c0_48 = arith.constant 0 : index
    %77 = vector.load %arg8[%c0_46, %c0_47, %c0_48] : memref<2x32x32xf32, #tpu.memory_space<vmem>>, vector<1x32x32xf32>
    %78 = vector.shape_cast %77 : vector<1x32x32xf32> to vector<32x32xf32>
    %cst_49 = arith.constant 0.000000e+00 : f32
    %79 = vector.broadcast %cst_49 : f32 to vector<16x32xf32>
    %80 = vector.extract_strided_slice %76 {offsets = [0, 0], sizes = [16, 16], strides = [1, 1]} : vector<16x96xf32> to vector<16x16xf32>
    %cst_50 = arith.constant 2.500000e-01 : f32
    %81 = vector.broadcast %cst_50 : f32 to vector<16x16xf32>
    %82 = arith.mulf %80, %81 : vector<16x16xf32>
    %83 = vector.shape_cast %82 : vector<16x16xf32> to vector<2x8x16xf32>
    %84 = vector.extract_strided_slice %76 {offsets = [0, 32], sizes = [16, 16], strides = [1, 1]} : vector<16x96xf32> to vector<16x16xf32>
    %85 = vector.shape_cast %84 : vector<16x16xf32> to vector<2x8x16xf32>
    %86 = vector.extract_strided_slice %76 {offsets = [0, 64], sizes = [16, 16], strides = [1, 1]} : vector<16x96xf32> to vector<16x16xf32>
    %87 = vector.shape_cast %86 : vector<16x16xf32> to vector<2x8x16xf32>
    "tpu.trace_start"() <{level = 10 : i32, message = "bqd,bkd->bqk"}> : () -> ()
    %cst_51 = arith.constant dense<0.000000e+00> : vector<2x8x8xf32>
    %88 = tpu.matmul %83, %85, %cst_51 {dimension_numbers = #tpu.dot_dimension_numbers<[2], [2], [1], [1], [0, 0, 0, 1, 1, 1], [0], [0]>} : vector<2x8x16xf32>, vector<2x8x16xf32>, vector<2x8x8xf32> -> vector<2x8x8xf32>
    "tpu.trace_stop"() : () -> ()
    %89 = vector.broadcast %33 : vector<2x1x8xf32> to vector<2x8x8xf32>
    %90 = arith.addf %88, %89 : vector<2x8x8xf32>
    %cst_52 = arith.constant dense<0xFF800000> : vector<2x8xf32>
    %91 = vector.multi_reduction <maximumf>, %90, %cst_52 [2] : vector<2x8x8xf32> to vector<2x8xf32>
    %92 = vector.shape_cast %91 : vector<2x8xf32> to vector<2x8x1xf32>
    %93 = vector.broadcast %92 : vector<2x8x1xf32> to vector<2x8x8xf32>
    %94 = arith.subf %90, %93 : vector<2x8x8xf32>
    %95 = math.exp %94 : vector<2x8x8xf32>
    %cst_53 = arith.constant dense<0.000000e+00> : vector<2x8xf32>
    %96 = vector.multi_reduction <add>, %95, %cst_53 [2] : vector<2x8x8xf32> to vector<2x8xf32>
    %97 = vector.shape_cast %96 : vector<2x8xf32> to vector<2x8x1xf32>
    %98 = tpu.reciprocal %97 {approx = true} : vector<2x8x1xf32> -> vector<2x8x1xf32>
    %99 = vector.broadcast %98 : vector<2x8x1xf32> to vector<2x8x8xf32>
    %100 = arith.mulf %95, %99 : vector<2x8x8xf32>
    "tpu.trace_start"() <{level = 10 : i32, message = "bqk,bkd->bqd"}> : () -> ()
    %cst_54 = arith.constant dense<0.000000e+00> : vector<2x8x16xf32>
    %101 = tpu.matmul %100, %87, %cst_54 {dimension_numbers = #tpu.dot_dimension_numbers<[2], [1], [1], [2], [0, 0, 0, 1, 1, 2], [0], [0]>} : vector<2x8x8xf32>, vector<2x8x16xf32>, vector<2x8x16xf32> -> vector<2x8x16xf32>
    "tpu.trace_stop"() : () -> ()
    %102 = vector.shape_cast %101 : vector<2x8x16xf32> to vector<16x16xf32>
    %103 = vector.extract_strided_slice %78 {offsets = [0, 0], sizes = [16, 32], strides = [1, 1]} : vector<32x32xf32> to vector<16x32xf32>
    %cst_55 = arith.constant dense<0.000000e+00> : vector<16x32xf32>
    %104 = tpu.matmul %102, %103, %cst_55 {dimension_numbers = #tpu.dot_dimension_numbers<[1], [0], [0], [1], [0, 0, 1, 1], [], []>} : vector<16x16xf32>, vector<16x32xf32>, vector<16x32xf32> -> vector<16x32xf32>
    %105 = arith.addf %79, %104 : vector<16x32xf32>
    %106 = vector.extract_strided_slice %76 {offsets = [0, 16], sizes = [16, 16], strides = [1, 1]} : vector<16x96xf32> to vector<16x16xf32>
    %cst_56 = arith.constant 2.500000e-01 : f32
    %107 = vector.broadcast %cst_56 : f32 to vector<16x16xf32>
    %108 = arith.mulf %106, %107 : vector<16x16xf32>
    %109 = vector.shape_cast %108 : vector<16x16xf32> to vector<2x8x16xf32>
    %110 = vector.extract_strided_slice %76 {offsets = [0, 48], sizes = [16, 16], strides = [1, 1]} : vector<16x96xf32> to vector<16x16xf32>
    %111 = vector.shape_cast %110 : vector<16x16xf32> to vector<2x8x16xf32>
    %112 = vector.extract_strided_slice %76 {offsets = [0, 80], sizes = [16, 16], strides = [1, 1]} : vector<16x96xf32> to vector<16x16xf32>
    %113 = vector.shape_cast %112 : vector<16x16xf32> to vector<2x8x16xf32>
    "tpu.trace_start"() <{level = 10 : i32, message = "bqd,bkd->bqk"}> : () -> ()
    %cst_57 = arith.constant dense<0.000000e+00> : vector<2x8x8xf32>
    %114 = tpu.matmul %109, %111, %cst_57 {dimension_numbers = #tpu.dot_dimension_numbers<[2], [2], [1], [1], [0, 0, 0, 1, 1, 1], [0], [0]>} : vector<2x8x16xf32>, vector<2x8x16xf32>, vector<2x8x8xf32> -> vector<2x8x8xf32>
    "tpu.trace_stop"() : () -> ()
    %115 = vector.broadcast %33 : vector<2x1x8xf32> to vector<2x8x8xf32>
    %116 = arith.addf %114, %115 : vector<2x8x8xf32>
    %cst_58 = arith.constant dense<0xFF800000> : vector<2x8xf32>
    %117 = vector.multi_reduction <maximumf>, %116, %cst_58 [2] : vector<2x8x8xf32> to vector<2x8xf32>
    %118 = vector.shape_cast %117 : vector<2x8xf32> to vector<2x8x1xf32>
    %119 = vector.broadcast %118 : vector<2x8x1xf32> to vector<2x8x8xf32>
    %120 = arith.subf %116, %119 : vector<2x8x8xf32>
    %121 = math.exp %120 : vector<2x8x8xf32>
    %cst_59 = arith.constant dense<0.000000e+00> : vector<2x8xf32>
    %122 = vector.multi_reduction <add>, %121, %cst_59 [2] : vector<2x8x8xf32> to vector<2x8xf32>
    %123 = vector.shape_cast %122 : vector<2x8xf32> to vector<2x8x1xf32>
    %124 = tpu.reciprocal %123 {approx = true} : vector<2x8x1xf32> -> vector<2x8x1xf32>
    %125 = vector.broadcast %124 : vector<2x8x1xf32> to vector<2x8x8xf32>
    %126 = arith.mulf %121, %125 : vector<2x8x8xf32>
    "tpu.trace_start"() <{level = 10 : i32, message = "bqk,bkd->bqd"}> : () -> ()
    %cst_60 = arith.constant dense<0.000000e+00> : vector<2x8x16xf32>
    %127 = tpu.matmul %126, %113, %cst_60 {dimension_numbers = #tpu.dot_dimension_numbers<[2], [1], [1], [2], [0, 0, 0, 1, 1, 2], [0], [0]>} : vector<2x8x8xf32>, vector<2x8x16xf32>, vector<2x8x16xf32> -> vector<2x8x16xf32>
    "tpu.trace_stop"() : () -> ()
    %128 = vector.shape_cast %127 : vector<2x8x16xf32> to vector<16x16xf32>
    %129 = vector.extract_strided_slice %78 {offsets = [16, 0], sizes = [16, 32], strides = [1, 1]} : vector<32x32xf32> to vector<16x32xf32>
    %cst_61 = arith.constant dense<0.000000e+00> : vector<16x32xf32>
    %130 = tpu.matmul %128, %129, %cst_61 {dimension_numbers = #tpu.dot_dimension_numbers<[1], [0], [0], [1], [0, 0, 1, 1], [], []>} : vector<16x16xf32>, vector<16x32xf32>, vector<16x32xf32> -> vector<16x32xf32>
    %131 = arith.addf %105, %130 : vector<16x32xf32>
    %132 = vector.broadcast %65 : vector<1x32xf32> to vector<16x32xf32>
    %133 = arith.addf %131, %132 : vector<16x32xf32>
    %134 = arith.addf %133, %59 : vector<16x32xf32>
    %cst_62 = arith.constant dense<0.000000e+00> : vector<16xf32>
    %135 = vector.multi_reduction <add>, %134, %cst_62 [1] : vector<16x32xf32> to vector<16xf32>
    %136 = vector.shape_cast %135 : vector<16xf32> to vector<16x1xf32>
    %cst_63 = arith.constant 3.200000e+01 : f32
    %137 = vector.broadcast %cst_63 : f32 to vector<16x1xf32>
    %138 = arith.divf %136, %137 : vector<16x1xf32>
    %139 = vector.broadcast %138 : vector<16x1xf32> to vector<16x32xf32>
    %140 = arith.subf %134, %139 : vector<16x32xf32>
    %141 = vector.broadcast %138 : vector<16x1xf32> to vector<16x32xf32>
    %142 = arith.subf %134, %141 : vector<16x32xf32>
    %143 = arith.mulf %140, %142 : vector<16x32xf32>
    %cst_64 = arith.constant dense<0.000000e+00> : vector<16xf32>
    %144 = vector.multi_reduction <add>, %143, %cst_64 [1] : vector<16x32xf32> to vector<16xf32>
    %145 = vector.shape_cast %144 : vector<16xf32> to vector<16x1xf32>
    %cst_65 = arith.constant 3.200000e+01 : f32
    %146 = vector.broadcast %cst_65 : f32 to vector<16x1xf32>
    %147 = arith.divf %145, %146 : vector<16x1xf32>
    %148 = vector.broadcast %138 : vector<16x1xf32> to vector<16x32xf32>
    %149 = arith.subf %134, %148 : vector<16x32xf32>
    %cst_66 = arith.constant 9.99999996E-13 : f32
    %150 = vector.broadcast %cst_66 : f32 to vector<16x1xf32>
    %151 = arith.addf %147, %150 : vector<16x1xf32>
    %152 = math.rsqrt %151 : vector<16x1xf32>
    %153 = vector.broadcast %152 : vector<16x1xf32> to vector<16x32xf32>
    %154 = arith.mulf %149, %153 : vector<16x32xf32>
    %155 = vector.broadcast %66 : vector<1x32xf32> to vector<16x32xf32>
    %156 = arith.mulf %154, %155 : vector<16x32xf32>
    %157 = vector.broadcast %67 : vector<1x32xf32> to vector<16x32xf32>
    %158 = arith.addf %156, %157 : vector<16x32xf32>
    %c0_67 = arith.constant 0 : index
    %c0_68 = arith.constant 0 : index
    %c0_69 = arith.constant 0 : index
    %159 = vector.load %arg9[%c0_67, %c0_68, %c0_69] : memref<2x32x64xf32, #tpu.memory_space<vmem>>, vector<1x32x64xf32>
    %160 = vector.shape_cast %159 : vector<1x32x64xf32> to vector<32x64xf32>
    %cst_70 = arith.constant dense<0.000000e+00> : vector<16x64xf32>
    %161 = tpu.matmul %158, %160, %cst_70 {dimension_numbers = #tpu.dot_dimension_numbers<[1], [0], [0], [1], [0, 0, 1, 1], [], []>} : vector<16x32xf32>, vector<32x64xf32>, vector<16x64xf32> -> vector<16x64xf32>
    %162 = vector.broadcast %68 : vector<1x64xf32> to vector<16x64xf32>
    %163 = arith.addf %161, %162 : vector<16x64xf32>
    %cst_71 = arith.constant 5.000000e-01 : f32
    %164 = vector.broadcast %cst_71 : f32 to vector<16x64xf32>
    %165 = arith.mulf %164, %163 : vector<16x64xf32>
    %cst_72 = arith.constant 4.471500e-02 : f32
    %166 = vector.broadcast %cst_72 : f32 to vector<16x64xf32>
    %167 = arith.mulf %166, %163 : vector<16x64xf32>
    %168 = arith.mulf %167, %163 : vector<16x64xf32>
    %169 = arith.mulf %168, %163 : vector<16x64xf32>
    %170 = arith.addf %163, %169 : vector<16x64xf32>
    %cst_73 = arith.constant 0.797884583 : f32
    %171 = vector.broadcast %cst_73 : f32 to vector<16x64xf32>
    %172 = arith.mulf %171, %170 : vector<16x64xf32>
    %173 = math.tanh %172 : vector<16x64xf32>
    %cst_74 = arith.constant 1.000000e+00 : f32
    %174 = vector.broadcast %cst_74 : f32 to vector<16x64xf32>
    %175 = arith.addf %174, %173 : vector<16x64xf32>
    %176 = arith.mulf %165, %175 : vector<16x64xf32>
    %c0_75 = arith.constant 0 : index
    %c0_76 = arith.constant 0 : index
    %c0_77 = arith.constant 0 : index
    %177 = vector.load %arg10[%c0_75, %c0_76, %c0_77] : memref<2x64x32xf32, #tpu.memory_space<vmem>>, vector<1x64x32xf32>
    %178 = vector.shape_cast %177 : vector<1x64x32xf32> to vector<64x32xf32>
    %cst_78 = arith.constant dense<0.000000e+00> : vector<16x32xf32>
    %179 = tpu.matmul %176, %178, %cst_78 {dimension_numbers = #tpu.dot_dimension_numbers<[1], [0], [0], [1], [0, 0, 1, 1], [], []>} : vector<16x64xf32>, vector<64x32xf32>, vector<16x32xf32> -> vector<16x32xf32>
    %180 = vector.broadcast %69 : vector<1x32xf32> to vector<16x32xf32>
    %181 = arith.addf %179, %180 : vector<16x32xf32>
    %182 = arith.addf %181, %158 : vector<16x32xf32>
    %cst_79 = arith.constant dense<0.000000e+00> : vector<16xf32>
    %183 = vector.multi_reduction <add>, %182, %cst_79 [1] : vector<16x32xf32> to vector<16xf32>
    %184 = vector.shape_cast %183 : vector<16xf32> to vector<16x1xf32>
    %cst_80 = arith.constant 3.200000e+01 : f32
    %185 = vector.broadcast %cst_80 : f32 to vector<16x1xf32>
    %186 = arith.divf %184, %185 : vector<16x1xf32>
    %187 = vector.broadcast %186 : vector<16x1xf32> to vector<16x32xf32>
    %188 = arith.subf %182, %187 : vector<16x32xf32>
    %189 = vector.broadcast %186 : vector<16x1xf32> to vector<16x32xf32>
    %190 = arith.subf %182, %189 : vector<16x32xf32>
    %191 = arith.mulf %188, %190 : vector<16x32xf32>
    %cst_81 = arith.constant dense<0.000000e+00> : vector<16xf32>
    %192 = vector.multi_reduction <add>, %191, %cst_81 [1] : vector<16x32xf32> to vector<16xf32>
    %193 = vector.shape_cast %192 : vector<16xf32> to vector<16x1xf32>
    %cst_82 = arith.constant 3.200000e+01 : f32
    %194 = vector.broadcast %cst_82 : f32 to vector<16x1xf32>
    %195 = arith.divf %193, %194 : vector<16x1xf32>
    %196 = vector.broadcast %186 : vector<16x1xf32> to vector<16x32xf32>
    %197 = arith.subf %182, %196 : vector<16x32xf32>
    %cst_83 = arith.constant 9.99999996E-13 : f32
    %198 = vector.broadcast %cst_83 : f32 to vector<16x1xf32>
    %199 = arith.addf %195, %198 : vector<16x1xf32>
    %200 = math.rsqrt %199 : vector<16x1xf32>
    %201 = vector.broadcast %200 : vector<16x1xf32> to vector<16x32xf32>
    %202 = arith.mulf %197, %201 : vector<16x32xf32>
    %203 = vector.broadcast %70 : vector<1x32xf32> to vector<16x32xf32>
    %204 = arith.mulf %202, %203 : vector<16x32xf32>
    %205 = vector.broadcast %71 : vector<1x32xf32> to vector<16x32xf32>
    %206 = arith.addf %204, %205 : vector<16x32xf32>
    %207 = vector.shape_cast %206 : vector<16x32xf32> to vector<2x256xf32>
    %c0_84 = arith.constant 0 : index
    %c1_85 = arith.constant 1 : index
    %c0_86 = arith.constant 0 : index
    %c0_87 = arith.constant 0 : index
    %208 = vector.load %arg11[%c0_84, %c1_85, %c0_86, %c0_87] : memref<1x3x2x256xf32, #tpu.memory_space<vmem>>, vector<1x1x2x256xf32>
    %209 = vector.shape_cast %208 : vector<1x1x2x256xf32> to vector<2x256xf32>
    %210 = vector.shape_cast %207 : vector<2x256xf32> to vector<1x1x2x256xf32>
    tpu.vector_store %arg11[%c0_84, %c1_85, %c0_86, %c0_87], %210 {strides = array<i32>} : memref<1x3x2x256xf32, #tpu.memory_space<vmem>>, vector<1x1x2x256xf32>,
    %c10 = arith.constant 10 : index
    %c0_88 = arith.constant 0 : index
    %211 = vector.load %arg6[%c10, %c0_88] : memref<18x96xf32, #tpu.memory_space<vmem>>, vector<1x96xf32>
    %c11 = arith.constant 11 : index
    %c0_89 = arith.constant 0 : index
    %212 = vector.load %arg6[%c11, %c0_89] : memref<18x96xf32, #tpu.memory_space<vmem>>, vector<1x32xf32>
    %c12 = arith.constant 12 : index
    %c0_90 = arith.constant 0 : index
    %213 = vector.load %arg6[%c12, %c0_90] : memref<18x96xf32, #tpu.memory_space<vmem>>, vector<1x32xf32>
    %c13 = arith.constant 13 : index
    %c0_91 = arith.constant 0 : index
    %214 = vector.load %arg6[%c13, %c0_91] : memref<18x96xf32, #tpu.memory_space<vmem>>, vector<1x32xf32>
    %c14 = arith.constant 14 : index
    %c0_92 = arith.constant 0 : index
    %215 = vector.load %arg6[%c14, %c0_92] : memref<18x96xf32, #tpu.memory_space<vmem>>, vector<1x64xf32>
    %c15 = arith.constant 15 : index
    %c0_93 = arith.constant 0 : index
    %216 = vector.load %arg6[%c15, %c0_93] : memref<18x96xf32, #tpu.memory_space<vmem>>, vector<1x32xf32>
    %c16 = arith.constant 16 : index
    %c0_94 = arith.constant 0 : index
    %217 = vector.load %arg6[%c16, %c0_94] : memref<18x96xf32, #tpu.memory_space<vmem>>, vector<1x32xf32>
    %c17 = arith.constant 17 : index
    %c0_95 = arith.constant 0 : index
    %218 = vector.load %arg6[%c17, %c0_95] : memref<18x96xf32, #tpu.memory_space<vmem>>, vector<1x32xf32>
    %c1_96 = arith.constant 1 : index
    %c0_97 = arith.constant 0 : index
    %c0_98 = arith.constant 0 : index
    %219 = vector.load %arg7[%c1_96, %c0_97, %c0_98] : memref<2x32x96xf32, #tpu.memory_space<vmem>>, vector<1x32x96xf32>
    %220 = vector.shape_cast %219 : vector<1x32x96xf32> to vector<32x96xf32>
    %cst_99 = arith.constant dense<0.000000e+00> : vector<16x96xf32>
    %221 = tpu.matmul %206, %220, %cst_99 {dimension_numbers = #tpu.dot_dimension_numbers<[1], [0], [0], [1], [0, 0, 1, 1], [], []>} : vector<16x32xf32>, vector<32x96xf32>, vector<16x96xf32> -> vector<16x96xf32>
    %222 = vector.broadcast %211 : vector<1x96xf32> to vector<16x96xf32>
    %223 = arith.addf %221, %222 : vector<16x96xf32>
    %c1_100 = arith.constant 1 : index
    %c0_101 = arith.constant 0 : index
    %c0_102 = arith.constant 0 : index
    %224 = vector.load %arg8[%c1_100, %c0_101, %c0_102] : memref<2x32x32xf32, #tpu.memory_space<vmem>>, vector<1x32x32xf32>
    %225 = vector.shape_cast %224 : vector<1x32x32xf32> to vector<32x32xf32>
    %cst_103 = arith.constant 0.000000e+00 : f32
    %226 = vector.broadcast %cst_103 : f32 to vector<16x32xf32>
    %227 = vector.extract_strided_slice %223 {offsets = [0, 0], sizes = [16, 16], strides = [1, 1]} : vector<16x96xf32> to vector<16x16xf32>
    %cst_104 = arith.constant 2.500000e-01 : f32
    %228 = vector.broadcast %cst_104 : f32 to vector<16x16xf32>
    %229 = arith.mulf %227, %228 : vector<16x16xf32>
    %230 = vector.shape_cast %229 : vector<16x16xf32> to vector<2x8x16xf32>
    %231 = vector.extract_strided_slice %223 {offsets = [0, 32], sizes = [16, 16], strides = [1, 1]} : vector<16x96xf32> to vector<16x16xf32>
    %232 = vector.shape_cast %231 : vector<16x16xf32> to vector<2x8x16xf32>
    %233 = vector.extract_strided_slice %223 {offsets = [0, 64], sizes = [16, 16], strides = [1, 1]} : vector<16x96xf32> to vector<16x16xf32>
    %234 = vector.shape_cast %233 : vector<16x16xf32> to vector<2x8x16xf32>
    "tpu.trace_start"() <{level = 10 : i32, message = "bqd,bkd->bqk"}> : () -> ()
    %cst_105 = arith.constant dense<0.000000e+00> : vector<2x8x8xf32>
    %235 = tpu.matmul %230, %232, %cst_105 {dimension_numbers = #tpu.dot_dimension_numbers<[2], [2], [1], [1], [0, 0, 0, 1, 1, 1], [0], [0]>} : vector<2x8x16xf32>, vector<2x8x16xf32>, vector<2x8x8xf32> -> vector<2x8x8xf32>
    "tpu.trace_stop"() : () -> ()
    %236 = vector.broadcast %33 : vector<2x1x8xf32> to vector<2x8x8xf32>
    %237 = arith.addf %235, %236 : vector<2x8x8xf32>
    %cst_106 = arith.constant dense<0xFF800000> : vector<2x8xf32>
    %238 = vector.multi_reduction <maximumf>, %237, %cst_106 [2] : vector<2x8x8xf32> to vector<2x8xf32>
    %239 = vector.shape_cast %238 : vector<2x8xf32> to vector<2x8x1xf32>
    %240 = vector.broadcast %239 : vector<2x8x1xf32> to vector<2x8x8xf32>
    %241 = arith.subf %237, %240 : vector<2x8x8xf32>
    %242 = math.exp %241 : vector<2x8x8xf32>
    %cst_107 = arith.constant dense<0.000000e+00> : vector<2x8xf32>
    %243 = vector.multi_reduction <add>, %242, %cst_107 [2] : vector<2x8x8xf32> to vector<2x8xf32>
    %244 = vector.shape_cast %243 : vector<2x8xf32> to vector<2x8x1xf32>
    %245 = tpu.reciprocal %244 {approx = true} : vector<2x8x1xf32> -> vector<2x8x1xf32>
    %246 = vector.broadcast %245 : vector<2x8x1xf32> to vector<2x8x8xf32>
    %247 = arith.mulf %242, %246 : vector<2x8x8xf32>
    "tpu.trace_start"() <{level = 10 : i32, message = "bqk,bkd->bqd"}> : () -> ()
    %cst_108 = arith.constant dense<0.000000e+00> : vector<2x8x16xf32>
    %248 = tpu.matmul %247, %234, %cst_108 {dimension_numbers = #tpu.dot_dimension_numbers<[2], [1], [1], [2], [0, 0, 0, 1, 1, 2], [0], [0]>} : vector<2x8x8xf32>, vector<2x8x16xf32>, vector<2x8x16xf32> -> vector<2x8x16xf32>
    "tpu.trace_stop"() : () -> ()
    %249 = vector.shape_cast %248 : vector<2x8x16xf32> to vector<16x16xf32>
    %250 = vector.extract_strided_slice %225 {offsets = [0, 0], sizes = [16, 32], strides = [1, 1]} : vector<32x32xf32> to vector<16x32xf32>
    %cst_109 = arith.constant dense<0.000000e+00> : vector<16x32xf32>
    %251 = tpu.matmul %249, %250, %cst_109 {dimension_numbers = #tpu.dot_dimension_numbers<[1], [0], [0], [1], [0, 0, 1, 1], [], []>} : vector<16x16xf32>, vector<16x32xf32>, vector<16x32xf32> -> vector<16x32xf32>
    %252 = arith.addf %226, %251 : vector<16x32xf32>
    %253 = vector.extract_strided_slice %223 {offsets = [0, 16], sizes = [16, 16], strides = [1, 1]} : vector<16x96xf32> to vector<16x16xf32>
    %cst_110 = arith.constant 2.500000e-01 : f32
    %254 = vector.broadcast %cst_110 : f32 to vector<16x16xf32>
    %255 = arith.mulf %253, %254 : vector<16x16xf32>
    %256 = vector.shape_cast %255 : vector<16x16xf32> to vector<2x8x16xf32>
    %257 = vector.extract_strided_slice %223 {offsets = [0, 48], sizes = [16, 16], strides = [1, 1]} : vector<16x96xf32> to vector<16x16xf32>
    %258 = vector.shape_cast %257 : vector<16x16xf32> to vector<2x8x16xf32>
    %259 = vector.extract_strided_slice %223 {offsets = [0, 80], sizes = [16, 16], strides = [1, 1]} : vector<16x96xf32> to vector<16x16xf32>
    %260 = vector.shape_cast %259 : vector<16x16xf32> to vector<2x8x16xf32>
    "tpu.trace_start"() <{level = 10 : i32, message = "bqd,bkd->bqk"}> : () -> ()
    %cst_111 = arith.constant dense<0.000000e+00> : vector<2x8x8xf32>
    %261 = tpu.matmul %256, %258, %cst_111 {dimension_numbers = #tpu.dot_dimension_numbers<[2], [2], [1], [1], [0, 0, 0, 1, 1, 1], [0], [0]>} : vector<2x8x16xf32>, vector<2x8x16xf32>, vector<2x8x8xf32> -> vector<2x8x8xf32>
    "tpu.trace_stop"() : () -> ()
    %262 = vector.broadcast %33 : vector<2x1x8xf32> to vector<2x8x8xf32>
    %263 = arith.addf %261, %262 : vector<2x8x8xf32>
    %cst_112 = arith.constant dense<0xFF800000> : vector<2x8xf32>
    %264 = vector.multi_reduction <maximumf>, %263, %cst_112 [2] : vector<2x8x8xf32> to vector<2x8xf32>
    %265 = vector.shape_cast %264 : vector<2x8xf32> to vector<2x8x1xf32>
    %266 = vector.broadcast %265 : vector<2x8x1xf32> to vector<2x8x8xf32>
    %267 = arith.subf %263, %266 : vector<2x8x8xf32>
    %268 = math.exp %267 : vector<2x8x8xf32>
    %cst_113 = arith.constant dense<0.000000e+00> : vector<2x8xf32>
    %269 = vector.multi_reduction <add>, %268, %cst_113 [2] : vector<2x8x8xf32> to vector<2x8xf32>
    %270 = vector.shape_cast %269 : vector<2x8xf32> to vector<2x8x1xf32>
    %271 = tpu.reciprocal %270 {approx = true} : vector<2x8x1xf32> -> vector<2x8x1xf32>
    %272 = vector.broadcast %271 : vector<2x8x1xf32> to vector<2x8x8xf32>
    %273 = arith.mulf %268, %272 : vector<2x8x8xf32>
    "tpu.trace_start"() <{level = 10 : i32, message = "bqk,bkd->bqd"}> : () -> ()
    %cst_114 = arith.constant dense<0.000000e+00> : vector<2x8x16xf32>
    %274 = tpu.matmul %273, %260, %cst_114 {dimension_numbers = #tpu.dot_dimension_numbers<[2], [1], [1], [2], [0, 0, 0, 1, 1, 2], [0], [0]>} : vector<2x8x8xf32>, vector<2x8x16xf32>, vector<2x8x16xf32> -> vector<2x8x16xf32>
    "tpu.trace_stop"() : () -> ()
    %275 = vector.shape_cast %274 : vector<2x8x16xf32> to vector<16x16xf32>
    %276 = vector.extract_strided_slice %225 {offsets = [16, 0], sizes = [16, 32], strides = [1, 1]} : vector<32x32xf32> to vector<16x32xf32>
    %cst_115 = arith.constant dense<0.000000e+00> : vector<16x32xf32>
    %277 = tpu.matmul %275, %276, %cst_115 {dimension_numbers = #tpu.dot_dimension_numbers<[1], [0], [0], [1], [0, 0, 1, 1], [], []>} : vector<16x16xf32>, vector<16x32xf32>, vector<16x32xf32> -> vector<16x32xf32>
    %278 = arith.addf %252, %277 : vector<16x32xf32>
    %279 = vector.broadcast %212 : vector<1x32xf32> to vector<16x32xf32>
    %280 = arith.addf %278, %279 : vector<16x32xf32>
    %281 = arith.addf %280, %206 : vector<16x32xf32>
    %cst_116 = arith.constant dense<0.000000e+00> : vector<16xf32>
    %282 = vector.multi_reduction <add>, %281, %cst_116 [1] : vector<16x32xf32> to vector<16xf32>
    %283 = vector.shape_cast %282 : vector<16xf32> to vector<16x1xf32>
    %cst_117 = arith.constant 3.200000e+01 : f32
    %284 = vector.broadcast %cst_117 : f32 to vector<16x1xf32>
    %285 = arith.divf %283, %284 : vector<16x1xf32>
    %286 = vector.broadcast %285 : vector<16x1xf32> to vector<16x32xf32>
    %287 = arith.subf %281, %286 : vector<16x32xf32>
    %288 = vector.broadcast %285 : vector<16x1xf32> to vector<16x32xf32>
    %289 = arith.subf %281, %288 : vector<16x32xf32>
    %290 = arith.mulf %287, %289 : vector<16x32xf32>
    %cst_118 = arith.constant dense<0.000000e+00> : vector<16xf32>
    %291 = vector.multi_reduction <add>, %290, %cst_118 [1] : vector<16x32xf32> to vector<16xf32>
    %292 = vector.shape_cast %291 : vector<16xf32> to vector<16x1xf32>
    %cst_119 = arith.constant 3.200000e+01 : f32
    %293 = vector.broadcast %cst_119 : f32 to vector<16x1xf32>
    %294 = arith.divf %292, %293 : vector<16x1xf32>
    %295 = vector.broadcast %285 : vector<16x1xf32> to vector<16x32xf32>
    %296 = arith.subf %281, %295 : vector<16x32xf32>
    %cst_120 = arith.constant 9.99999996E-13 : f32
    %297 = vector.broadcast %cst_120 : f32 to vector<16x1xf32>
    %298 = arith.addf %294, %297 : vector<16x1xf32>
    %299 = math.rsqrt %298 : vector<16x1xf32>
    %300 = vector.broadcast %299 : vector<16x1xf32> to vector<16x32xf32>
    %301 = arith.mulf %296, %300 : vector<16x32xf32>
    %302 = vector.broadcast %213 : vector<1x32xf32> to vector<16x32xf32>
    %303 = arith.mulf %301, %302 : vector<16x32xf32>
    %304 = vector.broadcast %214 : vector<1x32xf32> to vector<16x32xf32>
    %305 = arith.addf %303, %304 : vector<16x32xf32>
    %c1_121 = arith.constant 1 : index
    %c0_122 = arith.constant 0 : index
    %c0_123 = arith.constant 0 : index
    %306 = vector.load %arg9[%c1_121, %c0_122, %c0_123] : memref<2x32x64xf32, #tpu.memory_space<vmem>>, vector<1x32x64xf32>
    %307 = vector.shape_cast %306 : vector<1x32x64xf32> to vector<32x64xf32>
    %cst_124 = arith.constant dense<0.000000e+00> : vector<16x64xf32>
    %308 = tpu.matmul %305, %307, %cst_124 {dimension_numbers = #tpu.dot_dimension_numbers<[1], [0], [0], [1], [0, 0, 1, 1], [], []>} : vector<16x32xf32>, vector<32x64xf32>, vector<16x64xf32> -> vector<16x64xf32>
    %309 = vector.broadcast %215 : vector<1x64xf32> to vector<16x64xf32>
    %310 = arith.addf %308, %309 : vector<16x64xf32>
    %cst_125 = arith.constant 5.000000e-01 : f32
    %311 = vector.broadcast %cst_125 : f32 to vector<16x64xf32>
    %312 = arith.mulf %311, %310 : vector<16x64xf32>
    %cst_126 = arith.constant 4.471500e-02 : f32
    %313 = vector.broadcast %cst_126 : f32 to vector<16x64xf32>
    %314 = arith.mulf %313, %310 : vector<16x64xf32>
    %315 = arith.mulf %314, %310 : vector<16x64xf32>
    %316 = arith.mulf %315, %310 : vector<16x64xf32>
    %317 = arith.addf %310, %316 : vector<16x64xf32>
    %cst_127 = arith.constant 0.797884583 : f32
    %318 = vector.broadcast %cst_127 : f32 to vector<16x64xf32>
    %319 = arith.mulf %318, %317 : vector<16x64xf32>
    %320 = math.tanh %319 : vector<16x64xf32>
    %cst_128 = arith.constant 1.000000e+00 : f32
    %321 = vector.broadcast %cst_128 : f32 to vector<16x64xf32>
    %322 = arith.addf %321, %320 : vector<16x64xf32>
    %323 = arith.mulf %312, %322 : vector<16x64xf32>
    %c1_129 = arith.constant 1 : index
    %c0_130 = arith.constant 0 : index
    %c0_131 = arith.constant 0 : index
    %324 = vector.load %arg10[%c1_129, %c0_130, %c0_131] : memref<2x64x32xf32, #tpu.memory_space<vmem>>, vector<1x64x32xf32>
    %325 = vector.shape_cast %324 : vector<1x64x32xf32> to vector<64x32xf32>
    %cst_132 = arith.constant dense<0.000000e+00> : vector<16x32xf32>
    %326 = tpu.matmul %323, %325, %cst_132 {dimension_numbers = #tpu.dot_dimension_numbers<[1], [0], [0], [1], [0, 0, 1, 1], [], []>} : vector<16x64xf32>, vector<64x32xf32>, vector<16x32xf32> -> vector<16x32xf32>
    %327 = vector.broadcast %216 : vector<1x32xf32> to vector<16x32xf32>
    %328 = arith.addf %326, %327 : vector<16x32xf32>
    %329 = arith.addf %328, %305 : vector<16x32xf32>
    %cst_133 = arith.constant dense<0.000000e+00> : vector<16xf32>
    %330 = vector.multi_reduction <add>, %329, %cst_133 [1] : vector<16x32xf32> to vector<16xf32>
    %331 = vector.shape_cast %330 : vector<16xf32> to vector<16x1xf32>
    %cst_134 = arith.constant 3.200000e+01 : f32
    %332 = vector.broadcast %cst_134 : f32 to vector<16x1xf32>
    %333 = arith.divf %331, %332 : vector<16x1xf32>
    %334 = vector.broadcast %333 : vector<16x1xf32> to vector<16x32xf32>
    %335 = arith.subf %329, %334 : vector<16x32xf32>
    %336 = vector.broadcast %333 : vector<16x1xf32> to vector<16x32xf32>
    %337 = arith.subf %329, %336 : vector<16x32xf32>
    %338 = arith.mulf %335, %337 : vector<16x32xf32>
    %cst_135 = arith.constant dense<0.000000e+00> : vector<16xf32>
    %339 = vector.multi_reduction <add>, %338, %cst_135 [1] : vector<16x32xf32> to vector<16xf32>
    %340 = vector.shape_cast %339 : vector<16xf32> to vector<16x1xf32>
    %cst_136 = arith.constant 3.200000e+01 : f32
    %341 = vector.broadcast %cst_136 : f32 to vector<16x1xf32>
    %342 = arith.divf %340, %341 : vector<16x1xf32>
    %343 = vector.broadcast %333 : vector<16x1xf32> to vector<16x32xf32>
    %344 = arith.subf %329, %343 : vector<16x32xf32>
    %cst_137 = arith.constant 9.99999996E-13 : f32
    %345 = vector.broadcast %cst_137 : f32 to vector<16x1xf32>
    %346 = arith.addf %342, %345 : vector<16x1xf32>
    %347 = math.rsqrt %346 : vector<16x1xf32>
    %348 = vector.broadcast %347 : vector<16x1xf32> to vector<16x32xf32>
    %349 = arith.mulf %344, %348 : vector<16x32xf32>
    %350 = vector.broadcast %217 : vector<1x32xf32> to vector<16x32xf32>
    %351 = arith.mulf %349, %350 : vector<16x32xf32>
    %352 = vector.broadcast %218 : vector<1x32xf32> to vector<16x32xf32>
    %353 = arith.addf %351, %352 : vector<16x32xf32>
    %354 = vector.shape_cast %353 : vector<16x32xf32> to vector<2x256xf32>
    %c0_138 = arith.constant 0 : index
    %c2_139 = arith.constant 2 : index
    %c0_140 = arith.constant 0 : index
    %c0_141 = arith.constant 0 : index
    %355 = vector.load %arg11[%c0_138, %c2_139, %c0_140, %c0_141] : memref<1x3x2x256xf32, #tpu.memory_space<vmem>>, vector<1x1x2x256xf32>
    %356 = vector.shape_cast %355 : vector<1x1x2x256xf32> to vector<2x256xf32>
    %357 = vector.shape_cast %354 : vector<2x256xf32> to vector<1x1x2x256xf32>
    tpu.vector_store %arg11[%c0_138, %c2_139, %c0_140, %c0_141], %357 {strides = array<i32>} : memref<1x3x2x256xf32, #tpu.memory_space<vmem>>, vector<1x1x2x256xf32>,
    return
  }
  func.func @transform_0(%arg0: i32) -> (i32, i32, i32, i32, i32) {
    %c0_i32 = arith.constant 0 : i32
    %c0_i32_0 = arith.constant 0 : i32
    %c0_i32_1 = arith.constant 0 : i32
    %c0_i32_2 = arith.constant 0 : i32
    %c0_i32_3 = arith.constant 0 : i32
    return %arg0, %c0_i32, %c0_i32_0, %c0_i32_1, %c0_i32_2 : i32, i32, i32, i32, i32
  }
  func.func @transform_1(%arg0: i32) -> (i32, i32, i32, i32) {
    %c0_i32 = arith.constant 0 : i32
    %c0_i32_0 = arith.constant 0 : i32
    %c0_i32_1 = arith.constant 0 : i32
    %c0_i32_2 = arith.constant 0 : i32
    return %arg0, %c0_i32, %c0_i32_0, %c0_i32_1 : i32, i32, i32, i32
  }
  func.func @transform_2(%arg0: i32) -> (i32, i32) {
    %c0_i32 = arith.constant 0 : i32
    %c0_i32_0 = arith.constant 0 : i32
    %c0_i32_1 = arith.constant 0 : i32
    return %c0_i32, %c0_i32_0 : i32, i32
  }
  func.func @transform_3(%arg0: i32) -> (i32, i32) {
    %c0_i32 = arith.constant 0 : i32
    %c0_i32_0 = arith.constant 0 : i32
    %c0_i32_1 = arith.constant 0 : i32
    return %c0_i32, %c0_i32_0 : i32, i32
  }
  func.func @transform_4(%arg0: i32) -> (i32, i32) {
    %c0_i32 = arith.constant 0 : i32
    %c0_i32_0 = arith.constant 0 : i32
    %c0_i32_1 = arith.constant 0 : i32
    return %c0_i32, %c0_i32_0 : i32, i32
  }
  func.func @transform_5(%arg0: i32) -> (i32, i32) {
    %c0_i32 = arith.constant 0 : i32
    %c0_i32_0 = arith.constant 0 : i32
    %c0_i32_1 = arith.constant 0 : i32
    return %c0_i32, %c0_i32_0 : i32, i32
  }
  func.func @transform_6(%arg0: i32) -> (i32, i32, i32) {
    %c0_i32 = arith.constant 0 : i32
    %c0_i32_0 = arith.constant 0 : i32
    %c0_i32_1 = arith.constant 0 : i32
    %c0_i32_2 = arith.constant 0 : i32
    return %c0_i32, %c0_i32_0, %c0_i32_1 : i32, i32, i32
  }
  func.func @transform_7(%arg0: i32) -> (i32, i32, i32) {
    %c0_i32 = arith.constant 0 : i32
    %c0_i32_0 = arith.constant 0 : i32
    %c0_i32_1 = arith.constant 0 : i32
    %c0_i32_2 = arith.constant 0 : i32
    return %c0_i32, %c0_i32_0, %c0_i32_1 : i32, i32, i32
  }
  func.func @transform_8(%arg0: i32) -> (i32, i32, i32) {
    %c0_i32 = arith.constant 0 : i32
    %c0_i32_0 = arith.constant 0 : i32
    %c0_i32_1 = arith.constant 0 : i32
    %c0_i32_2 = arith.constant 0 : i32
    return %c0_i32, %c0_i32_0, %c0_i32_1 : i32, i32, i32
  }
  func.func @transform_9(%arg0: i32) -> (i32, i32, i32) {
    %c0_i32 = arith.constant 0 : i32
    %c0_i32_0 = arith.constant 0 : i32
    %c0_i32_1 = arith.constant 0 : i32
    %c0_i32_2 = arith.constant 0 : i32
    return %c0_i32, %c0_i32_0, %c0_i32_1 : i32, i32, i32
  }
  func.func @transform_10(%arg0: i32) -> (i32, i32, i32, i32) {
    %c0_i32 = arith.constant 0 : i32
    %c0_i32_0 = arith.constant 0 : i32
    %c0_i32_1 = arith.constant 0 : i32
    %c0_i32_2 = arith.constant 0 : i32
    return %arg0, %c0_i32, %c0_i32_0, %c0_i32_1 : i32, i32, i32, i32
  }
}

module attributes {stable_mosaic.version = 11 : i64} {
  func.func @_encoder_kernel(%arg0: i32, %arg1: memref<1x2x2x8x1xi32, #tpu.memory_space<vmem>>, %arg2: memref<1x2x1x8xi32, #tpu.memory_space<vmem>>, %arg3: memref<128x32xf32, #tpu.memory_space<vmem>>, %arg4: memref<8x32xf32, #tpu.memory_space<vmem>>, %arg5: memref<64x32xf32, #tpu.memory_space<vmem>>, %arg6: memref<18x96xf32, #tpu.memory_space<vmem>>, %arg7: memref<2x32x96xf32, #tpu.memory_space<vmem>>, %arg8: memref<2x32x32xf32, #tpu.memory_space<vmem>>, %arg9: memref<2x32x64xf32, #tpu.memory_space<vmem>>, %arg10: memref<2x64x32xf32, #tpu.memory_space<vmem>>, %arg11: memref<1x3x2x8x32xf32, #tpu.memory_space<vmem>>) attributes {dimension_semantics = [#tpu.dimension_semantics<parallel>], iteration_bounds = array<i64: 1>, scalar_prefetch = 0 : i64, scratch_operands = 0 : i64, tpu.core_type = #tpu.core_type<tc>, window_params = [{transform_indices = @transform_0, window_bounds = array<i64: 1, 2, 2, 8, 1>}, {transform_indices = @transform_1, window_bounds = array<i64: 1, 2, 1, 8>}, {pipeline_mode = #tpu.pipeline_mode<synchronous>, transform_indices = @transform_2, window_bounds = array<i64: 128, 32>}, {pipeline_mode = #tpu.pipeline_mode<synchronous>, transform_indices = @transform_3, window_bounds = array<i64: 8, 32>}, {pipeline_mode = #tpu.pipeline_mode<synchronous>, transform_indices = @transform_4, window_bounds = array<i64: 64, 32>}, {pipeline_mode = #tpu.pipeline_mode<synchronous>, transform_indices = @transform_5, window_bounds = array<i64: 18, 96>}, {pipeline_mode = #tpu.pipeline_mode<synchronous>, transform_indices = @transform_6, window_bounds = array<i64: 2, 32, 96>}, {pipeline_mode = #tpu.pipeline_mode<synchronous>, transform_indices = @transform_7, window_bounds = array<i64: 2, 32, 32>}, {pipeline_mode = #tpu.pipeline_mode<synchronous>, transform_indices = @transform_8, window_bounds = array<i64: 2, 32, 64>}, {pipeline_mode = #tpu.pipeline_mode<synchronous>, transform_indices = @transform_9, window_bounds = array<i64: 2, 64, 32>}, {transform_indices = @transform_10, window_bounds = array<i64: 1, 3, 2, 8, 32>}]} {
    %c0 = arith.constant 0 : index
    %c0_0 = arith.constant 0 : index
    %c0_1 = arith.constant 0 : index
    %c0_2 = arith.constant 0 : index
    %c0_3 = arith.constant 0 : index
    %0 = vector.load %arg1[%c0, %c0_0, %c0_1, %c0_2, %c0_3] : memref<1x2x2x8x1xi32, #tpu.memory_space<vmem>>, vector<1x1x2x8x1xi32>
    %1 = vector.shape_cast %0 : vector<1x1x2x8x1xi32> to vector<2x8x1xi32>
    %c0_4 = arith.constant 0 : index
    %c1 = arith.constant 1 : index
    %c0_5 = arith.constant 0 : index
    %c0_6 = arith.constant 0 : index
    %c0_7 = arith.constant 0 : index
    %2 = vector.load %arg1[%c0_4, %c1, %c0_5, %c0_6, %c0_7] : memref<1x2x2x8x1xi32, #tpu.memory_space<vmem>>, vector<1x1x2x8x1xi32>
    %3 = vector.shape_cast %2 : vector<1x1x2x8x1xi32> to vector<2x8x1xi32>
    %4 = tpu.iota {dimensions = array<i32: 2>} : vector<2x8x128xi32>
    %5 = vector.broadcast %1 : vector<2x8x1xi32> to vector<2x8x128xi32>
    %6 = arith.cmpi eq, %5, %4 : vector<2x8x128xi32>
    %7 = arith.extui %6 : vector<2x8x128xi1> to vector<2x8x128xi32>
    %8 = arith.sitofp %7 : vector<2x8x128xi32> to vector<2x8x128xf32>
    %9 = tpu.iota {dimensions = array<i32: 2>} : vector<2x8x8xi32>
    %10 = vector.broadcast %3 : vector<2x8x1xi32> to vector<2x8x8xi32>
    %11 = arith.cmpi eq, %10, %9 : vector<2x8x8xi32>
    %12 = arith.extui %11 : vector<2x8x8xi1> to vector<2x8x8xi32>
    %13 = arith.sitofp %12 : vector<2x8x8xi32> to vector<2x8x8xf32>
    %14 = vector.shape_cast %8 : vector<2x8x128xf32> to vector<16x128xf32>
    %c0_8 = arith.constant 0 : index
    %c0_9 = arith.constant 0 : index
    %15 = vector.load %arg3[%c0_8, %c0_9] : memref<128x32xf32, #tpu.memory_space<vmem>>, vector<128x32xf32>
    %cst = arith.constant dense<0.000000e+00> : vector<16x32xf32>
    %16 = tpu.matmul %14, %15, %cst {dimension_numbers = #tpu.dot_dimension_numbers<[1], [0], [0], [1], [0, 0, 1, 1], [], []>} : vector<16x128xf32>, vector<128x32xf32>, vector<16x32xf32> -> vector<16x32xf32>
    %17 = vector.shape_cast %13 : vector<2x8x8xf32> to vector<16x8xf32>
    %c0_10 = arith.constant 0 : index
    %c0_11 = arith.constant 0 : index
    %18 = vector.load %arg4[%c0_10, %c0_11] : memref<8x32xf32, #tpu.memory_space<vmem>>, vector<8x32xf32>
    %cst_12 = arith.constant dense<0.000000e+00> : vector<16x32xf32>
    %19 = tpu.matmul %17, %18, %cst_12 {dimension_numbers = #tpu.dot_dimension_numbers<[1], [0], [0], [1], [0, 0, 1, 1], [], []>} : vector<16x8xf32>, vector<8x32xf32>, vector<16x32xf32> -> vector<16x32xf32>
    %c0_13 = arith.constant 0 : index
    %c0_14 = arith.constant 0 : index
    %20 = vector.load %arg5[%c0_13, %c0_14] : memref<64x32xf32, #tpu.memory_space<vmem>>, vector<8x32xf32>
    %21 = arith.addf %16, %19 : vector<16x32xf32>
    %22 = vector.shape_cast %21 : vector<16x32xf32> to vector<2x8x32xf32>
    %23 = vector.shape_cast %20 : vector<8x32xf32> to vector<1x8x32xf32>
    %24 = vector.broadcast %23 : vector<1x8x32xf32> to vector<2x8x32xf32>
    %25 = arith.addf %22, %24 : vector<2x8x32xf32>
    %26 = vector.shape_cast %25 : vector<2x8x32xf32> to vector<16x32xf32>
    %c0_15 = arith.constant 0 : index
    %c0_16 = arith.constant 0 : index
    %c0_17 = arith.constant 0 : index
    %c0_18 = arith.constant 0 : index
    %27 = vector.load %arg2[%c0_15, %c0_16, %c0_17, %c0_18] : memref<1x2x1x8xi32, #tpu.memory_space<vmem>>, vector<1x2x1x8xi32>
    %28 = vector.shape_cast %27 : vector<1x2x1x8xi32> to vector<2x1x8xi32>
    %29 = arith.sitofp %28 : vector<2x1x8xi32> to vector<2x1x8xf32>
    %cst_19 = arith.constant 1.000000e+00 : f32
    %30 = vector.broadcast %cst_19 : f32 to vector<2x1x8xf32>
    %31 = arith.subf %30, %29 : vector<2x1x8xf32>
    %cst_20 = arith.constant -1.000000e+09 : f32
    %32 = vector.broadcast %cst_20 : f32 to vector<2x1x8xf32>
    %33 = arith.mulf %31, %32 : vector<2x1x8xf32>
    %c0_21 = arith.constant 0 : index
    %c0_22 = arith.constant 0 : index
    %34 = vector.load %arg6[%c0_21, %c0_22] : memref<18x96xf32, #tpu.memory_space<vmem>>, vector<1x32xf32>
    %c1_23 = arith.constant 1 : index
    %c0_24 = arith.constant 0 : index
    %35 = vector.load %arg6[%c1_23, %c0_24] : memref<18x96xf32, #tpu.memory_space<vmem>>, vector<1x32xf32>
    %cst_25 = arith.constant dense<0.000000e+00> : vector<16xf32>
    %36 = vector.multi_reduction <add>, %26, %cst_25 [1] : vector<16x32xf32> to vector<16xf32>
    %37 = vector.shape_cast %36 : vector<16xf32> to vector<16x1xf32>
    %cst_26 = arith.constant 3.200000e+01 : f32
    %38 = vector.broadcast %cst_26 : f32 to vector<16x1xf32>
    %39 = arith.divf %37, %38 : vector<16x1xf32>
    %40 = vector.broadcast %39 : vector<16x1xf32> to vector<16x32xf32>
    %41 = arith.subf %26, %40 : vector<16x32xf32>
    %42 = vector.broadcast %39 : vector<16x1xf32> to vector<16x32xf32>
    %43 = arith.subf %26, %42 : vector<16x32xf32>
    %44 = arith.mulf %41, %43 : vector<16x32xf32>
    %cst_27 = arith.constant dense<0.000000e+00> : vector<16xf32>
    %45 = vector.multi_reduction <add>, %44, %cst_27 [1] : vector<16x32xf32> to vector<16xf32>
    %46 = vector.shape_cast %45 : vector<16xf32> to vector<16x1xf32>
    %cst_28 = arith.constant 3.200000e+01 : f32
    %47 = vector.broadcast %cst_28 : f32 to vector<16x1xf32>
    %48 = arith.divf %46, %47 : vector<16x1xf32>
    %49 = vector.broadcast %39 : vector<16x1xf32> to vector<16x32xf32>
    %50 = arith.subf %26, %49 : vector<16x32xf32>
    %cst_29 = arith.constant 9.99999996E-13 : f32
    %51 = vector.broadcast %cst_29 : f32 to vector<16x1xf32>
    %52 = arith.addf %48, %51 : vector<16x1xf32>
    %53 = math.rsqrt %52 : vector<16x1xf32>
    %54 = vector.broadcast %53 : vector<16x1xf32> to vector<16x32xf32>
    %55 = arith.mulf %50, %54 : vector<16x32xf32>
    %56 = vector.broadcast %34 : vector<1x32xf32> to vector<16x32xf32>
    %57 = arith.mulf %55, %56 : vector<16x32xf32>
    %58 = vector.broadcast %35 : vector<1x32xf32> to vector<16x32xf32>
    %59 = arith.addf %57, %58 : vector<16x32xf32>
    %60 = vector.shape_cast %59 : vector<16x32xf32> to vector<2x8x32xf32>
    %c0_30 = arith.constant 0 : index
    %c0_31 = arith.constant 0 : index
    %c0_32 = arith.constant 0 : index
    %c0_33 = arith.constant 0 : index
    %c0_34 = arith.constant 0 : index
    %61 = vector.load %arg11[%c0_30, %c0_31, %c0_32, %c0_33, %c0_34] : memref<1x3x2x8x32xf32, #tpu.memory_space<vmem>>, vector<1x1x2x8x32xf32>
    %62 = vector.shape_cast %61 : vector<1x1x2x8x32xf32> to vector<2x8x32xf32>
    %63 = vector.shape_cast %60 : vector<2x8x32xf32> to vector<1x1x2x8x32xf32>
    tpu.vector_store %arg11[%c0_30, %c0_31, %c0_32, %c0_33, %c0_34], %63 {strides = array<i32>} : memref<1x3x2x8x32xf32, #tpu.memory_space<vmem>>, vector<1x1x2x8x32xf32>,
    %c2 = arith.constant 2 : index
    %c0_35 = arith.constant 0 : index
    %64 = vector.load %arg6[%c2, %c0_35] : memref<18x96xf32, #tpu.memory_space<vmem>>, vector<1x96xf32>
    %c3 = arith.constant 3 : index
    %c0_36 = arith.constant 0 : index
    %65 = vector.load %arg6[%c3, %c0_36] : memref<18x96xf32, #tpu.memory_space<vmem>>, vector<1x32xf32>
    %c4 = arith.constant 4 : index
    %c0_37 = arith.constant 0 : index
    %66 = vector.load %arg6[%c4, %c0_37] : memref<18x96xf32, #tpu.memory_space<vmem>>, vector<1x32xf32>
    %c5 = arith.constant 5 : index
    %c0_38 = arith.constant 0 : index
    %67 = vector.load %arg6[%c5, %c0_38] : memref<18x96xf32, #tpu.memory_space<vmem>>, vector<1x32xf32>
    %c6 = arith.constant 6 : index
    %c0_39 = arith.constant 0 : index
    %68 = vector.load %arg6[%c6, %c0_39] : memref<18x96xf32, #tpu.memory_space<vmem>>, vector<1x64xf32>
    %c7 = arith.constant 7 : index
    %c0_40 = arith.constant 0 : index
    %69 = vector.load %arg6[%c7, %c0_40] : memref<18x96xf32, #tpu.memory_space<vmem>>, vector<1x32xf32>
    %c8 = arith.constant 8 : index
    %c0_41 = arith.constant 0 : index
    %70 = vector.load %arg6[%c8, %c0_41] : memref<18x96xf32, #tpu.memory_space<vmem>>, vector<1x32xf32>
    %c9 = arith.constant 9 : index
    %c0_42 = arith.constant 0 : index
    %71 = vector.load %arg6[%c9, %c0_42] : memref<18x96xf32, #tpu.memory_space<vmem>>, vector<1x32xf32>
    %c0_43 = arith.constant 0 : index
    %c0_44 = arith.constant 0 : index
    %c0_45 = arith.constant 0 : index
    %72 = vector.load %arg7[%c0_43, %c0_44, %c0_45] : memref<2x32x96xf32, #tpu.memory_space<vmem>>, vector<1x32x96xf32>
    %73 = vector.shape_cast %72 : vector<1x32x96xf32> to vector<32x96xf32>
    %cst_46 = arith.constant dense<0.000000e+00> : vector<16x96xf32>
    %74 = tpu.matmul %59, %73, %cst_46 {dimension_numbers = #tpu.dot_dimension_numbers<[1], [0], [0], [1], [0, 0, 1, 1], [], []>} : vector<16x32xf32>, vector<32x96xf32>, vector<16x96xf32> -> vector<16x96xf32>
    %75 = vector.broadcast %64 : vector<1x96xf32> to vector<16x96xf32>
    %76 = arith.addf %74, %75 : vector<16x96xf32>
    %c0_47 = arith.constant 0 : index
    %c0_48 = arith.constant 0 : index
    %c0_49 = arith.constant 0 : index
    %77 = vector.load %arg8[%c0_47, %c0_48, %c0_49] : memref<2x32x32xf32, #tpu.memory_space<vmem>>, vector<1x32x32xf32>
    %78 = vector.shape_cast %77 : vector<1x32x32xf32> to vector<32x32xf32>
    %cst_50 = arith.constant 0.000000e+00 : f32
    %79 = vector.broadcast %cst_50 : f32 to vector<16x32xf32>
    %80 = vector.extract_strided_slice %76 {offsets = [0, 0], sizes = [16, 16], strides = [1, 1]} : vector<16x96xf32> to vector<16x16xf32>
    %cst_51 = arith.constant 2.500000e-01 : f32
    %81 = vector.broadcast %cst_51 : f32 to vector<16x16xf32>
    %82 = arith.mulf %80, %81 : vector<16x16xf32>
    %83 = vector.shape_cast %82 : vector<16x16xf32> to vector<2x8x16xf32>
    %84 = vector.extract_strided_slice %76 {offsets = [0, 32], sizes = [16, 16], strides = [1, 1]} : vector<16x96xf32> to vector<16x16xf32>
    %85 = vector.shape_cast %84 : vector<16x16xf32> to vector<2x8x16xf32>
    %86 = vector.extract_strided_slice %76 {offsets = [0, 64], sizes = [16, 16], strides = [1, 1]} : vector<16x96xf32> to vector<16x16xf32>
    %87 = vector.shape_cast %86 : vector<16x16xf32> to vector<2x8x16xf32>
    "tpu.trace_start"() <{level = 10 : i32, message = "bqd,bkd->bqk"}> : () -> ()
    %cst_52 = arith.constant dense<0.000000e+00> : vector<2x8x8xf32>
    %88 = tpu.matmul %83, %85, %cst_52 {dimension_numbers = #tpu.dot_dimension_numbers<[2], [2], [1], [1], [0, 0, 0, 1, 1, 1], [0], [0]>} : vector<2x8x16xf32>, vector<2x8x16xf32>, vector<2x8x8xf32> -> vector<2x8x8xf32>
    "tpu.trace_stop"() : () -> ()
    %89 = vector.broadcast %33 : vector<2x1x8xf32> to vector<2x8x8xf32>
    %90 = arith.addf %88, %89 : vector<2x8x8xf32>
    %cst_53 = arith.constant dense<0xFF800000> : vector<2x8xf32>
    %91 = vector.multi_reduction <maximumf>, %90, %cst_53 [2] : vector<2x8x8xf32> to vector<2x8xf32>
    %92 = vector.shape_cast %91 : vector<2x8xf32> to vector<2x8x1xf32>
    %93 = vector.broadcast %92 : vector<2x8x1xf32> to vector<2x8x8xf32>
    %94 = arith.subf %90, %93 : vector<2x8x8xf32>
    %95 = math.exp %94 : vector<2x8x8xf32>
    %cst_54 = arith.constant dense<0.000000e+00> : vector<2x8xf32>
    %96 = vector.multi_reduction <add>, %95, %cst_54 [2] : vector<2x8x8xf32> to vector<2x8xf32>
    %97 = vector.shape_cast %96 : vector<2x8xf32> to vector<2x8x1xf32>
    %98 = tpu.reciprocal %97 {approx = true} : vector<2x8x1xf32> -> vector<2x8x1xf32>
    %99 = vector.broadcast %98 : vector<2x8x1xf32> to vector<2x8x8xf32>
    %100 = arith.mulf %95, %99 : vector<2x8x8xf32>
    "tpu.trace_start"() <{level = 10 : i32, message = "bqk,bkd->bqd"}> : () -> ()
    %cst_55 = arith.constant dense<0.000000e+00> : vector<2x8x16xf32>
    %101 = tpu.matmul %100, %87, %cst_55 {dimension_numbers = #tpu.dot_dimension_numbers<[2], [1], [1], [2], [0, 0, 0, 1, 1, 2], [0], [0]>} : vector<2x8x8xf32>, vector<2x8x16xf32>, vector<2x8x16xf32> -> vector<2x8x16xf32>
    "tpu.trace_stop"() : () -> ()
    %102 = vector.shape_cast %101 : vector<2x8x16xf32> to vector<16x16xf32>
    %103 = vector.extract_strided_slice %78 {offsets = [0, 0], sizes = [16, 32], strides = [1, 1]} : vector<32x32xf32> to vector<16x32xf32>
    %cst_56 = arith.constant dense<0.000000e+00> : vector<16x32xf32>
    %104 = tpu.matmul %102, %103, %cst_56 {dimension_numbers = #tpu.dot_dimension_numbers<[1], [0], [0], [1], [0, 0, 1, 1], [], []>} : vector<16x16xf32>, vector<16x32xf32>, vector<16x32xf32> -> vector<16x32xf32>
    %105 = arith.addf %79, %104 : vector<16x32xf32>
    %106 = vector.extract_strided_slice %76 {offsets = [0, 16], sizes = [16, 16], strides = [1, 1]} : vector<16x96xf32> to vector<16x16xf32>
    %cst_57 = arith.constant 2.500000e-01 : f32
    %107 = vector.broadcast %cst_57 : f32 to vector<16x16xf32>
    %108 = arith.mulf %106, %107 : vector<16x16xf32>
    %109 = vector.shape_cast %108 : vector<16x16xf32> to vector<2x8x16xf32>
    %110 = vector.extract_strided_slice %76 {offsets = [0, 48], sizes = [16, 16], strides = [1, 1]} : vector<16x96xf32> to vector<16x16xf32>
    %111 = vector.shape_cast %110 : vector<16x16xf32> to vector<2x8x16xf32>
    %112 = vector.extract_strided_slice %76 {offsets = [0, 80], sizes = [16, 16], strides = [1, 1]} : vector<16x96xf32> to vector<16x16xf32>
    %113 = vector.shape_cast %112 : vector<16x16xf32> to vector<2x8x16xf32>
    "tpu.trace_start"() <{level = 10 : i32, message = "bqd,bkd->bqk"}> : () -> ()
    %cst_58 = arith.constant dense<0.000000e+00> : vector<2x8x8xf32>
    %114 = tpu.matmul %109, %111, %cst_58 {dimension_numbers = #tpu.dot_dimension_numbers<[2], [2], [1], [1], [0, 0, 0, 1, 1, 1], [0], [0]>} : vector<2x8x16xf32>, vector<2x8x16xf32>, vector<2x8x8xf32> -> vector<2x8x8xf32>
    "tpu.trace_stop"() : () -> ()
    %115 = vector.broadcast %33 : vector<2x1x8xf32> to vector<2x8x8xf32>
    %116 = arith.addf %114, %115 : vector<2x8x8xf32>
    %cst_59 = arith.constant dense<0xFF800000> : vector<2x8xf32>
    %117 = vector.multi_reduction <maximumf>, %116, %cst_59 [2] : vector<2x8x8xf32> to vector<2x8xf32>
    %118 = vector.shape_cast %117 : vector<2x8xf32> to vector<2x8x1xf32>
    %119 = vector.broadcast %118 : vector<2x8x1xf32> to vector<2x8x8xf32>
    %120 = arith.subf %116, %119 : vector<2x8x8xf32>
    %121 = math.exp %120 : vector<2x8x8xf32>
    %cst_60 = arith.constant dense<0.000000e+00> : vector<2x8xf32>
    %122 = vector.multi_reduction <add>, %121, %cst_60 [2] : vector<2x8x8xf32> to vector<2x8xf32>
    %123 = vector.shape_cast %122 : vector<2x8xf32> to vector<2x8x1xf32>
    %124 = tpu.reciprocal %123 {approx = true} : vector<2x8x1xf32> -> vector<2x8x1xf32>
    %125 = vector.broadcast %124 : vector<2x8x1xf32> to vector<2x8x8xf32>
    %126 = arith.mulf %121, %125 : vector<2x8x8xf32>
    "tpu.trace_start"() <{level = 10 : i32, message = "bqk,bkd->bqd"}> : () -> ()
    %cst_61 = arith.constant dense<0.000000e+00> : vector<2x8x16xf32>
    %127 = tpu.matmul %126, %113, %cst_61 {dimension_numbers = #tpu.dot_dimension_numbers<[2], [1], [1], [2], [0, 0, 0, 1, 1, 2], [0], [0]>} : vector<2x8x8xf32>, vector<2x8x16xf32>, vector<2x8x16xf32> -> vector<2x8x16xf32>
    "tpu.trace_stop"() : () -> ()
    %128 = vector.shape_cast %127 : vector<2x8x16xf32> to vector<16x16xf32>
    %129 = vector.extract_strided_slice %78 {offsets = [16, 0], sizes = [16, 32], strides = [1, 1]} : vector<32x32xf32> to vector<16x32xf32>
    %cst_62 = arith.constant dense<0.000000e+00> : vector<16x32xf32>
    %130 = tpu.matmul %128, %129, %cst_62 {dimension_numbers = #tpu.dot_dimension_numbers<[1], [0], [0], [1], [0, 0, 1, 1], [], []>} : vector<16x16xf32>, vector<16x32xf32>, vector<16x32xf32> -> vector<16x32xf32>
    %131 = arith.addf %105, %130 : vector<16x32xf32>
    %132 = vector.broadcast %65 : vector<1x32xf32> to vector<16x32xf32>
    %133 = arith.addf %131, %132 : vector<16x32xf32>
    %134 = arith.addf %133, %59 : vector<16x32xf32>
    %cst_63 = arith.constant dense<0.000000e+00> : vector<16xf32>
    %135 = vector.multi_reduction <add>, %134, %cst_63 [1] : vector<16x32xf32> to vector<16xf32>
    %136 = vector.shape_cast %135 : vector<16xf32> to vector<16x1xf32>
    %cst_64 = arith.constant 3.200000e+01 : f32
    %137 = vector.broadcast %cst_64 : f32 to vector<16x1xf32>
    %138 = arith.divf %136, %137 : vector<16x1xf32>
    %139 = vector.broadcast %138 : vector<16x1xf32> to vector<16x32xf32>
    %140 = arith.subf %134, %139 : vector<16x32xf32>
    %141 = vector.broadcast %138 : vector<16x1xf32> to vector<16x32xf32>
    %142 = arith.subf %134, %141 : vector<16x32xf32>
    %143 = arith.mulf %140, %142 : vector<16x32xf32>
    %cst_65 = arith.constant dense<0.000000e+00> : vector<16xf32>
    %144 = vector.multi_reduction <add>, %143, %cst_65 [1] : vector<16x32xf32> to vector<16xf32>
    %145 = vector.shape_cast %144 : vector<16xf32> to vector<16x1xf32>
    %cst_66 = arith.constant 3.200000e+01 : f32
    %146 = vector.broadcast %cst_66 : f32 to vector<16x1xf32>
    %147 = arith.divf %145, %146 : vector<16x1xf32>
    %148 = vector.broadcast %138 : vector<16x1xf32> to vector<16x32xf32>
    %149 = arith.subf %134, %148 : vector<16x32xf32>
    %cst_67 = arith.constant 9.99999996E-13 : f32
    %150 = vector.broadcast %cst_67 : f32 to vector<16x1xf32>
    %151 = arith.addf %147, %150 : vector<16x1xf32>
    %152 = math.rsqrt %151 : vector<16x1xf32>
    %153 = vector.broadcast %152 : vector<16x1xf32> to vector<16x32xf32>
    %154 = arith.mulf %149, %153 : vector<16x32xf32>
    %155 = vector.broadcast %66 : vector<1x32xf32> to vector<16x32xf32>
    %156 = arith.mulf %154, %155 : vector<16x32xf32>
    %157 = vector.broadcast %67 : vector<1x32xf32> to vector<16x32xf32>
    %158 = arith.addf %156, %157 : vector<16x32xf32>
    %c0_68 = arith.constant 0 : index
    %c0_69 = arith.constant 0 : index
    %c0_70 = arith.constant 0 : index
    %159 = vector.load %arg9[%c0_68, %c0_69, %c0_70] : memref<2x32x64xf32, #tpu.memory_space<vmem>>, vector<1x32x64xf32>
    %160 = vector.shape_cast %159 : vector<1x32x64xf32> to vector<32x64xf32>
    %cst_71 = arith.constant dense<0.000000e+00> : vector<16x64xf32>
    %161 = tpu.matmul %158, %160, %cst_71 {dimension_numbers = #tpu.dot_dimension_numbers<[1], [0], [0], [1], [0, 0, 1, 1], [], []>} : vector<16x32xf32>, vector<32x64xf32>, vector<16x64xf32> -> vector<16x64xf32>
    %162 = vector.broadcast %68 : vector<1x64xf32> to vector<16x64xf32>
    %163 = arith.addf %161, %162 : vector<16x64xf32>
    %cst_72 = arith.constant 5.000000e-01 : f32
    %164 = vector.broadcast %cst_72 : f32 to vector<16x64xf32>
    %165 = arith.mulf %164, %163 : vector<16x64xf32>
    %cst_73 = arith.constant 4.471500e-02 : f32
    %166 = vector.broadcast %cst_73 : f32 to vector<16x64xf32>
    %167 = arith.mulf %166, %163 : vector<16x64xf32>
    %168 = arith.mulf %167, %163 : vector<16x64xf32>
    %169 = arith.mulf %168, %163 : vector<16x64xf32>
    %170 = arith.addf %163, %169 : vector<16x64xf32>
    %cst_74 = arith.constant 0.797884583 : f32
    %171 = vector.broadcast %cst_74 : f32 to vector<16x64xf32>
    %172 = arith.mulf %171, %170 : vector<16x64xf32>
    %173 = math.tanh %172 : vector<16x64xf32>
    %cst_75 = arith.constant 1.000000e+00 : f32
    %174 = vector.broadcast %cst_75 : f32 to vector<16x64xf32>
    %175 = arith.addf %174, %173 : vector<16x64xf32>
    %176 = arith.mulf %165, %175 : vector<16x64xf32>
    %c0_76 = arith.constant 0 : index
    %c0_77 = arith.constant 0 : index
    %c0_78 = arith.constant 0 : index
    %177 = vector.load %arg10[%c0_76, %c0_77, %c0_78] : memref<2x64x32xf32, #tpu.memory_space<vmem>>, vector<1x64x32xf32>
    %178 = vector.shape_cast %177 : vector<1x64x32xf32> to vector<64x32xf32>
    %cst_79 = arith.constant dense<0.000000e+00> : vector<16x32xf32>
    %179 = tpu.matmul %176, %178, %cst_79 {dimension_numbers = #tpu.dot_dimension_numbers<[1], [0], [0], [1], [0, 0, 1, 1], [], []>} : vector<16x64xf32>, vector<64x32xf32>, vector<16x32xf32> -> vector<16x32xf32>
    %180 = vector.broadcast %69 : vector<1x32xf32> to vector<16x32xf32>
    %181 = arith.addf %179, %180 : vector<16x32xf32>
    %182 = arith.addf %181, %158 : vector<16x32xf32>
    %cst_80 = arith.constant dense<0.000000e+00> : vector<16xf32>
    %183 = vector.multi_reduction <add>, %182, %cst_80 [1] : vector<16x32xf32> to vector<16xf32>
    %184 = vector.shape_cast %183 : vector<16xf32> to vector<16x1xf32>
    %cst_81 = arith.constant 3.200000e+01 : f32
    %185 = vector.broadcast %cst_81 : f32 to vector<16x1xf32>
    %186 = arith.divf %184, %185 : vector<16x1xf32>
    %187 = vector.broadcast %186 : vector<16x1xf32> to vector<16x32xf32>
    %188 = arith.subf %182, %187 : vector<16x32xf32>
    %189 = vector.broadcast %186 : vector<16x1xf32> to vector<16x32xf32>
    %190 = arith.subf %182, %189 : vector<16x32xf32>
    %191 = arith.mulf %188, %190 : vector<16x32xf32>
    %cst_82 = arith.constant dense<0.000000e+00> : vector<16xf32>
    %192 = vector.multi_reduction <add>, %191, %cst_82 [1] : vector<16x32xf32> to vector<16xf32>
    %193 = vector.shape_cast %192 : vector<16xf32> to vector<16x1xf32>
    %cst_83 = arith.constant 3.200000e+01 : f32
    %194 = vector.broadcast %cst_83 : f32 to vector<16x1xf32>
    %195 = arith.divf %193, %194 : vector<16x1xf32>
    %196 = vector.broadcast %186 : vector<16x1xf32> to vector<16x32xf32>
    %197 = arith.subf %182, %196 : vector<16x32xf32>
    %cst_84 = arith.constant 9.99999996E-13 : f32
    %198 = vector.broadcast %cst_84 : f32 to vector<16x1xf32>
    %199 = arith.addf %195, %198 : vector<16x1xf32>
    %200 = math.rsqrt %199 : vector<16x1xf32>
    %201 = vector.broadcast %200 : vector<16x1xf32> to vector<16x32xf32>
    %202 = arith.mulf %197, %201 : vector<16x32xf32>
    %203 = vector.broadcast %70 : vector<1x32xf32> to vector<16x32xf32>
    %204 = arith.mulf %202, %203 : vector<16x32xf32>
    %205 = vector.broadcast %71 : vector<1x32xf32> to vector<16x32xf32>
    %206 = arith.addf %204, %205 : vector<16x32xf32>
    %207 = vector.shape_cast %206 : vector<16x32xf32> to vector<2x8x32xf32>
    %c0_85 = arith.constant 0 : index
    %c1_86 = arith.constant 1 : index
    %c0_87 = arith.constant 0 : index
    %c0_88 = arith.constant 0 : index
    %c0_89 = arith.constant 0 : index
    %208 = vector.load %arg11[%c0_85, %c1_86, %c0_87, %c0_88, %c0_89] : memref<1x3x2x8x32xf32, #tpu.memory_space<vmem>>, vector<1x1x2x8x32xf32>
    %209 = vector.shape_cast %208 : vector<1x1x2x8x32xf32> to vector<2x8x32xf32>
    %210 = vector.shape_cast %207 : vector<2x8x32xf32> to vector<1x1x2x8x32xf32>
    tpu.vector_store %arg11[%c0_85, %c1_86, %c0_87, %c0_88, %c0_89], %210 {strides = array<i32>} : memref<1x3x2x8x32xf32, #tpu.memory_space<vmem>>, vector<1x1x2x8x32xf32>,
    %c10 = arith.constant 10 : index
    %c0_90 = arith.constant 0 : index
    %211 = vector.load %arg6[%c10, %c0_90] : memref<18x96xf32, #tpu.memory_space<vmem>>, vector<1x96xf32>
    %c11 = arith.constant 11 : index
    %c0_91 = arith.constant 0 : index
    %212 = vector.load %arg6[%c11, %c0_91] : memref<18x96xf32, #tpu.memory_space<vmem>>, vector<1x32xf32>
    %c12 = arith.constant 12 : index
    %c0_92 = arith.constant 0 : index
    %213 = vector.load %arg6[%c12, %c0_92] : memref<18x96xf32, #tpu.memory_space<vmem>>, vector<1x32xf32>
    %c13 = arith.constant 13 : index
    %c0_93 = arith.constant 0 : index
    %214 = vector.load %arg6[%c13, %c0_93] : memref<18x96xf32, #tpu.memory_space<vmem>>, vector<1x32xf32>
    %c14 = arith.constant 14 : index
    %c0_94 = arith.constant 0 : index
    %215 = vector.load %arg6[%c14, %c0_94] : memref<18x96xf32, #tpu.memory_space<vmem>>, vector<1x64xf32>
    %c15 = arith.constant 15 : index
    %c0_95 = arith.constant 0 : index
    %216 = vector.load %arg6[%c15, %c0_95] : memref<18x96xf32, #tpu.memory_space<vmem>>, vector<1x32xf32>
    %c16 = arith.constant 16 : index
    %c0_96 = arith.constant 0 : index
    %217 = vector.load %arg6[%c16, %c0_96] : memref<18x96xf32, #tpu.memory_space<vmem>>, vector<1x32xf32>
    %c17 = arith.constant 17 : index
    %c0_97 = arith.constant 0 : index
    %218 = vector.load %arg6[%c17, %c0_97] : memref<18x96xf32, #tpu.memory_space<vmem>>, vector<1x32xf32>
    %c1_98 = arith.constant 1 : index
    %c0_99 = arith.constant 0 : index
    %c0_100 = arith.constant 0 : index
    %219 = vector.load %arg7[%c1_98, %c0_99, %c0_100] : memref<2x32x96xf32, #tpu.memory_space<vmem>>, vector<1x32x96xf32>
    %220 = vector.shape_cast %219 : vector<1x32x96xf32> to vector<32x96xf32>
    %cst_101 = arith.constant dense<0.000000e+00> : vector<16x96xf32>
    %221 = tpu.matmul %206, %220, %cst_101 {dimension_numbers = #tpu.dot_dimension_numbers<[1], [0], [0], [1], [0, 0, 1, 1], [], []>} : vector<16x32xf32>, vector<32x96xf32>, vector<16x96xf32> -> vector<16x96xf32>
    %222 = vector.broadcast %211 : vector<1x96xf32> to vector<16x96xf32>
    %223 = arith.addf %221, %222 : vector<16x96xf32>
    %c1_102 = arith.constant 1 : index
    %c0_103 = arith.constant 0 : index
    %c0_104 = arith.constant 0 : index
    %224 = vector.load %arg8[%c1_102, %c0_103, %c0_104] : memref<2x32x32xf32, #tpu.memory_space<vmem>>, vector<1x32x32xf32>
    %225 = vector.shape_cast %224 : vector<1x32x32xf32> to vector<32x32xf32>
    %cst_105 = arith.constant 0.000000e+00 : f32
    %226 = vector.broadcast %cst_105 : f32 to vector<16x32xf32>
    %227 = vector.extract_strided_slice %223 {offsets = [0, 0], sizes = [16, 16], strides = [1, 1]} : vector<16x96xf32> to vector<16x16xf32>
    %cst_106 = arith.constant 2.500000e-01 : f32
    %228 = vector.broadcast %cst_106 : f32 to vector<16x16xf32>
    %229 = arith.mulf %227, %228 : vector<16x16xf32>
    %230 = vector.shape_cast %229 : vector<16x16xf32> to vector<2x8x16xf32>
    %231 = vector.extract_strided_slice %223 {offsets = [0, 32], sizes = [16, 16], strides = [1, 1]} : vector<16x96xf32> to vector<16x16xf32>
    %232 = vector.shape_cast %231 : vector<16x16xf32> to vector<2x8x16xf32>
    %233 = vector.extract_strided_slice %223 {offsets = [0, 64], sizes = [16, 16], strides = [1, 1]} : vector<16x96xf32> to vector<16x16xf32>
    %234 = vector.shape_cast %233 : vector<16x16xf32> to vector<2x8x16xf32>
    "tpu.trace_start"() <{level = 10 : i32, message = "bqd,bkd->bqk"}> : () -> ()
    %cst_107 = arith.constant dense<0.000000e+00> : vector<2x8x8xf32>
    %235 = tpu.matmul %230, %232, %cst_107 {dimension_numbers = #tpu.dot_dimension_numbers<[2], [2], [1], [1], [0, 0, 0, 1, 1, 1], [0], [0]>} : vector<2x8x16xf32>, vector<2x8x16xf32>, vector<2x8x8xf32> -> vector<2x8x8xf32>
    "tpu.trace_stop"() : () -> ()
    %236 = vector.broadcast %33 : vector<2x1x8xf32> to vector<2x8x8xf32>
    %237 = arith.addf %235, %236 : vector<2x8x8xf32>
    %cst_108 = arith.constant dense<0xFF800000> : vector<2x8xf32>
    %238 = vector.multi_reduction <maximumf>, %237, %cst_108 [2] : vector<2x8x8xf32> to vector<2x8xf32>
    %239 = vector.shape_cast %238 : vector<2x8xf32> to vector<2x8x1xf32>
    %240 = vector.broadcast %239 : vector<2x8x1xf32> to vector<2x8x8xf32>
    %241 = arith.subf %237, %240 : vector<2x8x8xf32>
    %242 = math.exp %241 : vector<2x8x8xf32>
    %cst_109 = arith.constant dense<0.000000e+00> : vector<2x8xf32>
    %243 = vector.multi_reduction <add>, %242, %cst_109 [2] : vector<2x8x8xf32> to vector<2x8xf32>
    %244 = vector.shape_cast %243 : vector<2x8xf32> to vector<2x8x1xf32>
    %245 = tpu.reciprocal %244 {approx = true} : vector<2x8x1xf32> -> vector<2x8x1xf32>
    %246 = vector.broadcast %245 : vector<2x8x1xf32> to vector<2x8x8xf32>
    %247 = arith.mulf %242, %246 : vector<2x8x8xf32>
    "tpu.trace_start"() <{level = 10 : i32, message = "bqk,bkd->bqd"}> : () -> ()
    %cst_110 = arith.constant dense<0.000000e+00> : vector<2x8x16xf32>
    %248 = tpu.matmul %247, %234, %cst_110 {dimension_numbers = #tpu.dot_dimension_numbers<[2], [1], [1], [2], [0, 0, 0, 1, 1, 2], [0], [0]>} : vector<2x8x8xf32>, vector<2x8x16xf32>, vector<2x8x16xf32> -> vector<2x8x16xf32>
    "tpu.trace_stop"() : () -> ()
    %249 = vector.shape_cast %248 : vector<2x8x16xf32> to vector<16x16xf32>
    %250 = vector.extract_strided_slice %225 {offsets = [0, 0], sizes = [16, 32], strides = [1, 1]} : vector<32x32xf32> to vector<16x32xf32>
    %cst_111 = arith.constant dense<0.000000e+00> : vector<16x32xf32>
    %251 = tpu.matmul %249, %250, %cst_111 {dimension_numbers = #tpu.dot_dimension_numbers<[1], [0], [0], [1], [0, 0, 1, 1], [], []>} : vector<16x16xf32>, vector<16x32xf32>, vector<16x32xf32> -> vector<16x32xf32>
    %252 = arith.addf %226, %251 : vector<16x32xf32>
    %253 = vector.extract_strided_slice %223 {offsets = [0, 16], sizes = [16, 16], strides = [1, 1]} : vector<16x96xf32> to vector<16x16xf32>
    %cst_112 = arith.constant 2.500000e-01 : f32
    %254 = vector.broadcast %cst_112 : f32 to vector<16x16xf32>
    %255 = arith.mulf %253, %254 : vector<16x16xf32>
    %256 = vector.shape_cast %255 : vector<16x16xf32> to vector<2x8x16xf32>
    %257 = vector.extract_strided_slice %223 {offsets = [0, 48], sizes = [16, 16], strides = [1, 1]} : vector<16x96xf32> to vector<16x16xf32>
    %258 = vector.shape_cast %257 : vector<16x16xf32> to vector<2x8x16xf32>
    %259 = vector.extract_strided_slice %223 {offsets = [0, 80], sizes = [16, 16], strides = [1, 1]} : vector<16x96xf32> to vector<16x16xf32>
    %260 = vector.shape_cast %259 : vector<16x16xf32> to vector<2x8x16xf32>
    "tpu.trace_start"() <{level = 10 : i32, message = "bqd,bkd->bqk"}> : () -> ()
    %cst_113 = arith.constant dense<0.000000e+00> : vector<2x8x8xf32>
    %261 = tpu.matmul %256, %258, %cst_113 {dimension_numbers = #tpu.dot_dimension_numbers<[2], [2], [1], [1], [0, 0, 0, 1, 1, 1], [0], [0]>} : vector<2x8x16xf32>, vector<2x8x16xf32>, vector<2x8x8xf32> -> vector<2x8x8xf32>
    "tpu.trace_stop"() : () -> ()
    %262 = vector.broadcast %33 : vector<2x1x8xf32> to vector<2x8x8xf32>
    %263 = arith.addf %261, %262 : vector<2x8x8xf32>
    %cst_114 = arith.constant dense<0xFF800000> : vector<2x8xf32>
    %264 = vector.multi_reduction <maximumf>, %263, %cst_114 [2] : vector<2x8x8xf32> to vector<2x8xf32>
    %265 = vector.shape_cast %264 : vector<2x8xf32> to vector<2x8x1xf32>
    %266 = vector.broadcast %265 : vector<2x8x1xf32> to vector<2x8x8xf32>
    %267 = arith.subf %263, %266 : vector<2x8x8xf32>
    %268 = math.exp %267 : vector<2x8x8xf32>
    %cst_115 = arith.constant dense<0.000000e+00> : vector<2x8xf32>
    %269 = vector.multi_reduction <add>, %268, %cst_115 [2] : vector<2x8x8xf32> to vector<2x8xf32>
    %270 = vector.shape_cast %269 : vector<2x8xf32> to vector<2x8x1xf32>
    %271 = tpu.reciprocal %270 {approx = true} : vector<2x8x1xf32> -> vector<2x8x1xf32>
    %272 = vector.broadcast %271 : vector<2x8x1xf32> to vector<2x8x8xf32>
    %273 = arith.mulf %268, %272 : vector<2x8x8xf32>
    "tpu.trace_start"() <{level = 10 : i32, message = "bqk,bkd->bqd"}> : () -> ()
    %cst_116 = arith.constant dense<0.000000e+00> : vector<2x8x16xf32>
    %274 = tpu.matmul %273, %260, %cst_116 {dimension_numbers = #tpu.dot_dimension_numbers<[2], [1], [1], [2], [0, 0, 0, 1, 1, 2], [0], [0]>} : vector<2x8x8xf32>, vector<2x8x16xf32>, vector<2x8x16xf32> -> vector<2x8x16xf32>
    "tpu.trace_stop"() : () -> ()
    %275 = vector.shape_cast %274 : vector<2x8x16xf32> to vector<16x16xf32>
    %276 = vector.extract_strided_slice %225 {offsets = [16, 0], sizes = [16, 32], strides = [1, 1]} : vector<32x32xf32> to vector<16x32xf32>
    %cst_117 = arith.constant dense<0.000000e+00> : vector<16x32xf32>
    %277 = tpu.matmul %275, %276, %cst_117 {dimension_numbers = #tpu.dot_dimension_numbers<[1], [0], [0], [1], [0, 0, 1, 1], [], []>} : vector<16x16xf32>, vector<16x32xf32>, vector<16x32xf32> -> vector<16x32xf32>
    %278 = arith.addf %252, %277 : vector<16x32xf32>
    %279 = vector.broadcast %212 : vector<1x32xf32> to vector<16x32xf32>
    %280 = arith.addf %278, %279 : vector<16x32xf32>
    %281 = arith.addf %280, %206 : vector<16x32xf32>
    %cst_118 = arith.constant dense<0.000000e+00> : vector<16xf32>
    %282 = vector.multi_reduction <add>, %281, %cst_118 [1] : vector<16x32xf32> to vector<16xf32>
    %283 = vector.shape_cast %282 : vector<16xf32> to vector<16x1xf32>
    %cst_119 = arith.constant 3.200000e+01 : f32
    %284 = vector.broadcast %cst_119 : f32 to vector<16x1xf32>
    %285 = arith.divf %283, %284 : vector<16x1xf32>
    %286 = vector.broadcast %285 : vector<16x1xf32> to vector<16x32xf32>
    %287 = arith.subf %281, %286 : vector<16x32xf32>
    %288 = vector.broadcast %285 : vector<16x1xf32> to vector<16x32xf32>
    %289 = arith.subf %281, %288 : vector<16x32xf32>
    %290 = arith.mulf %287, %289 : vector<16x32xf32>
    %cst_120 = arith.constant dense<0.000000e+00> : vector<16xf32>
    %291 = vector.multi_reduction <add>, %290, %cst_120 [1] : vector<16x32xf32> to vector<16xf32>
    %292 = vector.shape_cast %291 : vector<16xf32> to vector<16x1xf32>
    %cst_121 = arith.constant 3.200000e+01 : f32
    %293 = vector.broadcast %cst_121 : f32 to vector<16x1xf32>
    %294 = arith.divf %292, %293 : vector<16x1xf32>
    %295 = vector.broadcast %285 : vector<16x1xf32> to vector<16x32xf32>
    %296 = arith.subf %281, %295 : vector<16x32xf32>
    %cst_122 = arith.constant 9.99999996E-13 : f32
    %297 = vector.broadcast %cst_122 : f32 to vector<16x1xf32>
    %298 = arith.addf %294, %297 : vector<16x1xf32>
    %299 = math.rsqrt %298 : vector<16x1xf32>
    %300 = vector.broadcast %299 : vector<16x1xf32> to vector<16x32xf32>
    %301 = arith.mulf %296, %300 : vector<16x32xf32>
    %302 = vector.broadcast %213 : vector<1x32xf32> to vector<16x32xf32>
    %303 = arith.mulf %301, %302 : vector<16x32xf32>
    %304 = vector.broadcast %214 : vector<1x32xf32> to vector<16x32xf32>
    %305 = arith.addf %303, %304 : vector<16x32xf32>
    %c1_123 = arith.constant 1 : index
    %c0_124 = arith.constant 0 : index
    %c0_125 = arith.constant 0 : index
    %306 = vector.load %arg9[%c1_123, %c0_124, %c0_125] : memref<2x32x64xf32, #tpu.memory_space<vmem>>, vector<1x32x64xf32>
    %307 = vector.shape_cast %306 : vector<1x32x64xf32> to vector<32x64xf32>
    %cst_126 = arith.constant dense<0.000000e+00> : vector<16x64xf32>
    %308 = tpu.matmul %305, %307, %cst_126 {dimension_numbers = #tpu.dot_dimension_numbers<[1], [0], [0], [1], [0, 0, 1, 1], [], []>} : vector<16x32xf32>, vector<32x64xf32>, vector<16x64xf32> -> vector<16x64xf32>
    %309 = vector.broadcast %215 : vector<1x64xf32> to vector<16x64xf32>
    %310 = arith.addf %308, %309 : vector<16x64xf32>
    %cst_127 = arith.constant 5.000000e-01 : f32
    %311 = vector.broadcast %cst_127 : f32 to vector<16x64xf32>
    %312 = arith.mulf %311, %310 : vector<16x64xf32>
    %cst_128 = arith.constant 4.471500e-02 : f32
    %313 = vector.broadcast %cst_128 : f32 to vector<16x64xf32>
    %314 = arith.mulf %313, %310 : vector<16x64xf32>
    %315 = arith.mulf %314, %310 : vector<16x64xf32>
    %316 = arith.mulf %315, %310 : vector<16x64xf32>
    %317 = arith.addf %310, %316 : vector<16x64xf32>
    %cst_129 = arith.constant 0.797884583 : f32
    %318 = vector.broadcast %cst_129 : f32 to vector<16x64xf32>
    %319 = arith.mulf %318, %317 : vector<16x64xf32>
    %320 = math.tanh %319 : vector<16x64xf32>
    %cst_130 = arith.constant 1.000000e+00 : f32
    %321 = vector.broadcast %cst_130 : f32 to vector<16x64xf32>
    %322 = arith.addf %321, %320 : vector<16x64xf32>
    %323 = arith.mulf %312, %322 : vector<16x64xf32>
    %c1_131 = arith.constant 1 : index
    %c0_132 = arith.constant 0 : index
    %c0_133 = arith.constant 0 : index
    %324 = vector.load %arg10[%c1_131, %c0_132, %c0_133] : memref<2x64x32xf32, #tpu.memory_space<vmem>>, vector<1x64x32xf32>
    %325 = vector.shape_cast %324 : vector<1x64x32xf32> to vector<64x32xf32>
    %cst_134 = arith.constant dense<0.000000e+00> : vector<16x32xf32>
    %326 = tpu.matmul %323, %325, %cst_134 {dimension_numbers = #tpu.dot_dimension_numbers<[1], [0], [0], [1], [0, 0, 1, 1], [], []>} : vector<16x64xf32>, vector<64x32xf32>, vector<16x32xf32> -> vector<16x32xf32>
    %327 = vector.broadcast %216 : vector<1x32xf32> to vector<16x32xf32>
    %328 = arith.addf %326, %327 : vector<16x32xf32>
    %329 = arith.addf %328, %305 : vector<16x32xf32>
    %cst_135 = arith.constant dense<0.000000e+00> : vector<16xf32>
    %330 = vector.multi_reduction <add>, %329, %cst_135 [1] : vector<16x32xf32> to vector<16xf32>
    %331 = vector.shape_cast %330 : vector<16xf32> to vector<16x1xf32>
    %cst_136 = arith.constant 3.200000e+01 : f32
    %332 = vector.broadcast %cst_136 : f32 to vector<16x1xf32>
    %333 = arith.divf %331, %332 : vector<16x1xf32>
    %334 = vector.broadcast %333 : vector<16x1xf32> to vector<16x32xf32>
    %335 = arith.subf %329, %334 : vector<16x32xf32>
    %336 = vector.broadcast %333 : vector<16x1xf32> to vector<16x32xf32>
    %337 = arith.subf %329, %336 : vector<16x32xf32>
    %338 = arith.mulf %335, %337 : vector<16x32xf32>
    %cst_137 = arith.constant dense<0.000000e+00> : vector<16xf32>
    %339 = vector.multi_reduction <add>, %338, %cst_137 [1] : vector<16x32xf32> to vector<16xf32>
    %340 = vector.shape_cast %339 : vector<16xf32> to vector<16x1xf32>
    %cst_138 = arith.constant 3.200000e+01 : f32
    %341 = vector.broadcast %cst_138 : f32 to vector<16x1xf32>
    %342 = arith.divf %340, %341 : vector<16x1xf32>
    %343 = vector.broadcast %333 : vector<16x1xf32> to vector<16x32xf32>
    %344 = arith.subf %329, %343 : vector<16x32xf32>
    %cst_139 = arith.constant 9.99999996E-13 : f32
    %345 = vector.broadcast %cst_139 : f32 to vector<16x1xf32>
    %346 = arith.addf %342, %345 : vector<16x1xf32>
    %347 = math.rsqrt %346 : vector<16x1xf32>
    %348 = vector.broadcast %347 : vector<16x1xf32> to vector<16x32xf32>
    %349 = arith.mulf %344, %348 : vector<16x32xf32>
    %350 = vector.broadcast %217 : vector<1x32xf32> to vector<16x32xf32>
    %351 = arith.mulf %349, %350 : vector<16x32xf32>
    %352 = vector.broadcast %218 : vector<1x32xf32> to vector<16x32xf32>
    %353 = arith.addf %351, %352 : vector<16x32xf32>
    %354 = vector.shape_cast %353 : vector<16x32xf32> to vector<2x8x32xf32>
    %c0_140 = arith.constant 0 : index
    %c2_141 = arith.constant 2 : index
    %c0_142 = arith.constant 0 : index
    %c0_143 = arith.constant 0 : index
    %c0_144 = arith.constant 0 : index
    %355 = vector.load %arg11[%c0_140, %c2_141, %c0_142, %c0_143, %c0_144] : memref<1x3x2x8x32xf32, #tpu.memory_space<vmem>>, vector<1x1x2x8x32xf32>
    %356 = vector.shape_cast %355 : vector<1x1x2x8x32xf32> to vector<2x8x32xf32>
    %357 = vector.shape_cast %354 : vector<2x8x32xf32> to vector<1x1x2x8x32xf32>
    tpu.vector_store %arg11[%c0_140, %c2_141, %c0_142, %c0_143, %c0_144], %357 {strides = array<i32>} : memref<1x3x2x8x32xf32, #tpu.memory_space<vmem>>, vector<1x1x2x8x32xf32>,
    return
  }
  func.func @transform_0(%arg0: i32) -> (i32, i32, i32, i32, i32) {
    %c0_i32 = arith.constant 0 : i32
    %c0_i32_0 = arith.constant 0 : i32
    %c0_i32_1 = arith.constant 0 : i32
    %c0_i32_2 = arith.constant 0 : i32
    %c0_i32_3 = arith.constant 0 : i32
    return %arg0, %c0_i32, %c0_i32_0, %c0_i32_1, %c0_i32_2 : i32, i32, i32, i32, i32
  }
  func.func @transform_1(%arg0: i32) -> (i32, i32, i32, i32) {
    %c0_i32 = arith.constant 0 : i32
    %c0_i32_0 = arith.constant 0 : i32
    %c0_i32_1 = arith.constant 0 : i32
    %c0_i32_2 = arith.constant 0 : i32
    return %arg0, %c0_i32, %c0_i32_0, %c0_i32_1 : i32, i32, i32, i32
  }
  func.func @transform_2(%arg0: i32) -> (i32, i32) {
    %c0_i32 = arith.constant 0 : i32
    %c0_i32_0 = arith.constant 0 : i32
    %c0_i32_1 = arith.constant 0 : i32
    return %c0_i32, %c0_i32_0 : i32, i32
  }
  func.func @transform_3(%arg0: i32) -> (i32, i32) {
    %c0_i32 = arith.constant 0 : i32
    %c0_i32_0 = arith.constant 0 : i32
    %c0_i32_1 = arith.constant 0 : i32
    return %c0_i32, %c0_i32_0 : i32, i32
  }
  func.func @transform_4(%arg0: i32) -> (i32, i32) {
    %c0_i32 = arith.constant 0 : i32
    %c0_i32_0 = arith.constant 0 : i32
    %c0_i32_1 = arith.constant 0 : i32
    return %c0_i32, %c0_i32_0 : i32, i32
  }
  func.func @transform_5(%arg0: i32) -> (i32, i32) {
    %c0_i32 = arith.constant 0 : i32
    %c0_i32_0 = arith.constant 0 : i32
    %c0_i32_1 = arith.constant 0 : i32
    return %c0_i32, %c0_i32_0 : i32, i32
  }
  func.func @transform_6(%arg0: i32) -> (i32, i32, i32) {
    %c0_i32 = arith.constant 0 : i32
    %c0_i32_0 = arith.constant 0 : i32
    %c0_i32_1 = arith.constant 0 : i32
    %c0_i32_2 = arith.constant 0 : i32
    return %c0_i32, %c0_i32_0, %c0_i32_1 : i32, i32, i32
  }
  func.func @transform_7(%arg0: i32) -> (i32, i32, i32) {
    %c0_i32 = arith.constant 0 : i32
    %c0_i32_0 = arith.constant 0 : i32
    %c0_i32_1 = arith.constant 0 : i32
    %c0_i32_2 = arith.constant 0 : i32
    return %c0_i32, %c0_i32_0, %c0_i32_1 : i32, i32, i32
  }
  func.func @transform_8(%arg0: i32) -> (i32, i32, i32) {
    %c0_i32 = arith.constant 0 : i32
    %c0_i32_0 = arith.constant 0 : i32
    %c0_i32_1 = arith.constant 0 : i32
    %c0_i32_2 = arith.constant 0 : i32
    return %c0_i32, %c0_i32_0, %c0_i32_1 : i32, i32, i32
  }
  func.func @transform_9(%arg0: i32) -> (i32, i32, i32) {
    %c0_i32 = arith.constant 0 : i32
    %c0_i32_0 = arith.constant 0 : i32
    %c0_i32_1 = arith.constant 0 : i32
    %c0_i32_2 = arith.constant 0 : i32
    return %c0_i32, %c0_i32_0, %c0_i32_1 : i32, i32, i32
  }
  func.func @transform_10(%arg0: i32) -> (i32, i32, i32, i32, i32) {
    %c0_i32 = arith.constant 0 : i32
    %c0_i32_0 = arith.constant 0 : i32
    %c0_i32_1 = arith.constant 0 : i32
    %c0_i32_2 = arith.constant 0 : i32
    %c0_i32_3 = arith.constant 0 : i32
    return %arg0, %c0_i32, %c0_i32_0, %c0_i32_1, %c0_i32_2 : i32, i32, i32, i32, i32
  }
}

</mosaic_0001>

<bundles_post_ra>
// kernel: tpu_custom_call.1
= control target key start
LH: loop header
LB: loop body
LE: loop exit
PB: predicated region body
PF: predicated region fallthrough
CT: control target
= control target key end

     0   :  { %v3289_v2 = vmov 0   ;;  %s3829_s0 = inlined_call_operand.vmem [shape: s32[1,2,2,8,1], index: 0, kind: input, shape index: {}]   ;;  %s3830_s1 = inlined_call_operand.vmem [shape: s32[1,2,1,8], index: 1, kind: input, shape index: {}]   ;;  %s3831_s2 = inlined_call_operand.vmem [shape: f32[128,32], index: 2, kind: input, shape index: {}]   ;;  %s3832_s3 = inlined_call_operand.vmem [shape: f32[8,32], index: 3, kind: input, shape index: {}]   ;;  %s3833_s4 = inlined_call_operand.vmem [shape: f32[64,32], index: 4, kind: input, shape index: {}]   ;;  %s3834_s5 = inlined_call_operand.vmem [shape: f32[18,96], index: 5, kind: input, shape index: {}]   ;;  %s3835_s6 = inlined_call_operand.vmem [shape: f32[2,32,96], index: 6, kind: input, shape index: {}]   ;;  %s3836_s7 = inlined_call_operand.vmem [shape: f32[2,32,32], index: 7, kind: input, shape index: {}]   ;;  %s3837_s8 = inlined_call_operand.vmem [shape: f32[2,32,64], index: 8, kind: input, shape index: {}]   ;;  %s3838_s9 = inlined_call_operand.vmem [shape: f32[2,64,32], index: 9, kind: input, shape index: {}]   ;;  %s3839_s10 = inlined_call_operand.hbm [shape: f32[1,3,2,8,32], index: 10, kind: output, shape index: {}]  }
   0x1   :  { %v2759_v0 = vld [vmem:[%s3829_s0 + $0x18] sm:$0xff]  ;;  %v2758_v1 = vld [vmem:[%s3829_s0 + $0x10] sm:$0xff]  ;;  %3206 = vset.pattern.permute.xlu1 %v3289_v2  ;;  %3205 = vset.pattern.permute.xlu0 %v3289_v2  ;;  %v37_v5 = vld [vmem:[%s3829_s0 + $0x8] sm:$0xff] }
   0x2   :  { %v82_v3 = vld [vmem:[%s3831_s2 + $0x78] sm:$0xff]  ;;  %59 = vperm.xlu1 %3206, %v2759_v0   ;;  %56 = vperm.xlu0 %3205, %v2758_v1   ;;  %v81_v4 = vld [vmem:[%s3831_s2 + $0x70] sm:$0xff]  ;;  %v36_v6 = vld [vmem:[%s3829_s0] sm:$0xff] }
   0x3   :  { %2968 = vmatprep.subr.mxu1 %v82_v3  ;;  %v80_v7 = vld [vmem:[%s3831_s2 + $0x68] sm:$0xff]  ;;  %v83_v8 = vld [vmem:[%s3832_s3] sm:$0xff] }
   0x4   :  { %2969 = vmatpush3.msra.mxu1 %v82_v3  ;;  %v79_v9 = vld [vmem:[%s3831_s2 + $0x60] sm:$0xff]  ;;  %2963 = vmatprep.subr.mxu0 %v83_v8 }
   0x5   :  { %2970 = vmatprep.subr.mxu1 %v81_v4 }
   0x6   :  { %47 = vperm.xlu1 %3206, %v37_v5   ;;  %44 = vperm.xlu0 %3205, %v36_v6  }
   0x7   :  { %2971 = vmatpush3.msra.mxu1 %v81_v4 }
   0x8   :  { %15 = vsyncpa [#allocation3], 0  ;;  %2972 = vmatprep.subr.mxu1 %v80_v7  ;;  %2964 = vmatpush3.msra.mxu0 %v83_v8  ;;  %v78_v10 = vld [vmem:[%s3831_s2 + $0x58] sm:$0xff]  ;;  %v77_v11 = vld [vmem:[%s3831_s2 + $0x50] sm:$0xff]  ;;  %v3290_v22 = vmov 0.0   ;;  %v41_v23 = vlaneseq  ;;  %vm84_vm0 = vcmask 64512  }
   0x9   :  { %2973 = vmatpush3.msra.mxu1 %v80_v7  ;;  %v76_v12 = vld [vmem:[%s3831_s2 + $0x48] sm:$0xff]  ;;  %v75_v13 = vld [vmem:[%s3831_s2 + $0x40] sm:$0xff]  ;;  %v74_v14 = vld [vmem:[%s3831_s2 + $0x38] sm:$0xff]  ;;  %v3291_v31 = vmov 1.0   ;;  %vm254_vm5 = vcmask 261120   ;;  %vm3292_vm6 = vmmov 0  }
   0xa   :  { %2974 = vmatprep.subr.mxu1 %v79_v9  ;;  %v73_v15 = vld [vmem:[%s3831_s2 + $0x30] sm:$0xff]  ;;  %v72_v16 = vld [vmem:[%s3831_s2 + $0x28] sm:$0xff]  ;;  %v71_v17 = vld [vmem:[%s3831_s2 + $0x20] sm:$0xff]  ;;  %v42_v24 = vand.u32 127, %v41_v23  ;;  %s3293_s25 = smov 96   ;;  %vm414_vm7 = vcmask 130048  }
   0xb   :  { %2975 = vmatpush3.msra.mxu1 %v79_v9  ;;  %v70_v18 = vld [vmem:[%s3831_s2 + $0x18] sm:$0xff]  ;;  %v69_v19 = vld [vmem:[%s3831_s2 + $0x10] sm:$0xff]  ;;  %v68_v20 = vld [vmem:[%s3831_s2 + $0x8] sm:$0xff]  ;;  %s3295_s30 = smov 80   ;;  %s3296_s0 = smov 112   ;;  %vm1399_vm8 = vcmask 523264  }
   0xc   :  { %2976 = vmatprep.subr.mxu1 %v78_v10  ;;  %v67_v21 = vld [vmem:[%s3831_s2] sm:$0xff]  ;;  %v307_v53 = vld [vmem:[%s3835_s6 + $0x18] sm:$0xff]  ;;  %v306_v54 = vld [vmem:[%s3835_s6 + $0x10] sm:$0xff]  ;;  %s3297_s11 = smov 48   ;;  %s3298_s15 = smov [#allocation2]  }
   0xd   :  { %2977 = vmatpush3.msra.mxu1 %v78_v10  ;;  %v166_v34 = vld [vmem:[%s3833_s4] sm:$0xff]  ;;  %3003 = vmatprep.subr.mxu0 %v307_v53  ;;  %v305_v55 = vld [vmem:[%s3835_s6 + $0x8] sm:$0xff]  ;;  %s2747_s16 = sshll.u32 %s3298_s15, 4  ;;  %s2748_s16 = int_to_ptr.vmem [resolvable:$true] %s2747_s16 }
   0xe   :  { %2978 = vmatprep.subr.mxu1 %v77_v11  ;;  %v304_v56 = vld [vmem:[%s3835_s6] sm:$0xff]  ;;  %s3267_s17 = scalar_lea.vmem %s2748_s16, 768  ;;  %p3272_p1 = scmp.lt.s32.totalorder %s2748_s16, %s2748_s16 }
   0xf   :  { %2979 = vmatpush3.msra.mxu1 %v77_v11  ;;  %v2768_v0 = vld [vmem:[%s3834_s5] ss:$0 sm:$0xff]  ;;  %v2769_v2 = vld [vmem:[%s3834_s5 + $0x1] ss:$0 sm:$0xff]  ;;  %v2770_v9 = vld [vmem:[%s3834_s5 + $0x2] ss:$0 sm:$0xff]  ;;  %p3268_p0 = scmp.ne.s32.totalorder %s2748_s16, %s3267_s17  ;;  %p3273_p2 = scmp.lt.s32.totalorder %s3267_s17, %s3267_s17 }
  0x10   :  { %2980 = vmatprep.subr.mxu1 %v76_v12 }
  0x11   :  { %2981 = vmatpush3.msra.mxu1 %v76_v12  ;;  %p3274_p3 = por %p3273_p2, %p3272_p1 }
  0x12   :  { %2982 = vmatprep.subr.mxu1 %v75_v13 }
  0x13   :  { %2983 = vmatpush3.msra.mxu1 %v75_v13  ;;  %p3275_p4 = pnand %p3274_p3, %p3268_p0 }
  0x14   :  { %2984 = vmatprep.subr.mxu1 %v74_v14 }
  0x15   :  { %2985 = vmatpush3.msra.mxu1 %v74_v14 }
  0x16   :  { %2986 = vmatprep.subr.mxu1 %v73_v15 }
  0x17   :  { %2987 = vmatpush3.msra.mxu1 %v73_v15 }
  0x18   :  { %2988 = vmatprep.subr.mxu1 %v72_v16 }
  0x19   :  { %2989 = vmatpush3.msra.mxu1 %v72_v16 }
  0x1a   :  { %2990 = vmatprep.subr.mxu1 %v71_v17 }
  0x1b   :  { %2991 = vmatpush3.msra.mxu1 %v71_v17 }
  0x1c   :  { %2992 = vmatprep.subr.mxu1 %v70_v18 }
  0x1d   :  { %2993 = vmatpush3.msra.mxu1 %v70_v18  ;;  %v245_v18 = vld [vmem:[%s3830_s1 + $0x1] sm:$0x1] }
  0x1e   :  { %2994 = vmatprep.subr.mxu1 %v69_v19 }
  0x1f   :  { %2995 = vmatpush3.msra.mxu1 %v69_v19  ;;  %v244_v19 = vld [vmem:[%s3830_s1] sm:$0x1]  ;;  %s3294_s1 = smov 64  }
  0x20   :  { %2996 = vmatprep.subr.mxu1 %v68_v20 }
  0x21   :  { %2997 = vmatpush3.msra.mxu1 %v68_v20  ;;  %v247_v20 = vcvt.s32.f32 %v245_v18 }
  0x22   :  { %2998 = vmatprep.subr.mxu1 %v67_v21 }
  0x23   :  { %2999 = vmatpush3.msra.mxu1 %v67_v21  ;;  %v246_v21 = vcvt.s32.f32 %v244_v19 }
  0x24   :  { %3014 = vmatprep.subr.mxu1 %v3290_v22 }
  0x7d   :  { %v60_v25 = vpop.permute.xlu1 %59  ;;  %v57_v26 = vpop.permute.xlu0 %56 }
  0x7e   :  { %vm62_vm1 = vcmp.eq.s32.totalorder %v60_v25, %v42_v24  ;;  %vm61_vm2 = vcmp.eq.s32.totalorder %v57_v26, %v42_v24  ;;  %v402_v25 = vshrl.u32 %v41_v23, 7  ;;  %v248_v26 = vsub.f32 1.0, %v246_v21 }
  0x7f   :  { %v2763_v27 = vsel %vm62_vm1, 1.0, %v3290_v22  ;;  %v2762_v28 = vsel %vm61_vm2, 1.0, %v3290_v22 }
  0x80   :  { %2965 = vmatprep.mubr.msk.f32.mxu0 %vm84_vm0, %v2762_v28  ;;  %v403_v28 = vsub.s32 0, %v402_v25 }
  0x81   :  { %2966 = vmatmul.mubr.msk.f32.vlgmr.msra.gmra.mxu0 %vm84_vm0, %v2763_v27  ;;  %v48_v29 = vpop.permute.xlu1 %47  ;;  %v45_v30 = vpop.permute.xlu0 %44 }
  0x82   :  { %vm50_vm3 = vcmp.eq.s32.totalorder %v48_v29, %v42_v24  ;;  %vm49_vm4 = vcmp.eq.s32.totalorder %v45_v30, %v42_v24  ;;  %3004 = vmatpush3.msra.mxu0 %v307_v53  ;;  %v249_v24 = vsub.f32 1.0, %v247_v20  ;;  %v250_v29 = vmul.f32 -1e+09, %v248_v26 }
  0x83   :  { %3000 = vmatprep.mubr.msk.f32.mxu1 %vm49_vm4, %v3291_v31  ;;  %3005 = vmatprep.subr.mxu0 %v306_v54 }
  0x84   :  { %3001 = vmatmul.mubr.msk.f32.vlgmr.msra.gmra.mxu1 %vm50_vm3, %v3291_v31  ;;  %3006 = vmatpush3.msra.mxu0 %v306_v54  ;;  %v251_v27 = vmul.f32 -1e+09, %v249_v24  ;;  %v3499_v31 = vrot.slane %v250_v29, %v403_v28 }
  0x85   :  { %3007 = vmatprep.subr.mxu0 %v305_v55  ;;  %3016 = vmatprep.mubr.msk.f32.mxu1 %vm3292_vm6, %v3290_v22 }
  0x86   :  { %3008 = vmatpush3.msra.mxu0 %v305_v55  ;;  %v3497_v30 = vrot.slane %v251_v27, %v403_v28  ;;  %v394_v27 = vld [vmem:[%s3836_s7 + $0x8] sm:$0xff] }
  0x87   :  { %3009 = vmatprep.subr.mxu0 %v304_v56 }
  0x88   :  { %3010 = vmatpush3.msra.mxu0 %v304_v56 }
  0x89   :  { %3019 = vmatprep.subr.mxu0 %v3290_v22 }
 0x141   :  { %v2967_v32 = vpop.f32.mrf.mxu0 }
 0x143   :  { %v157_v36 = vpop.f32.mrf.mxu0 }
 0x144   :  { %v3002_v33 = vpop.f32.mrf.mxu1 }
 0x145   :  { %v239_v35 = vadd.f32 %v3002_v33, %v2967_v32 }
 0x146   :  { %v233_v37 = vpop.f32.mrf.mxu1 }
 0x147   :  { %v234_v38 = vadd.f32 %v233_v37, %v157_v36  ;;  %v243_v39 = vadd.f32 %v239_v35, %v166_v34 }
 0x149   :  { %v258_v40 = vsel %vm254_vm5, %v243_v39, 0.0  ;;  %v242_v41 = vadd.f32 %v234_v38, %v166_v34 }
 0x14a   :  { %259 = vadd.xlane.f32.xlu1 %v258_v40 }
 0x14b   :  { %v255_v42 = vsel %vm254_vm5, %v242_v41, 0.0 }
 0x14c   :  { %256 = vadd.xlane.f32.xlu0 %v255_v42 }
 0x1d3   :  { %v260_v43 = vpop.xlane.xlu1 %259 }
 0x1d4   :  { %v263_v44 = vmul.f32 0.03125, %v260_v43 }
 0x1d5   :  { %v257_v45 = vpop.xlane.xlu0 %256 }
 0x1d6   :  { %v262_v46 = vmul.f32 0.03125, %v257_v45  ;;  %v265_v47 = vsub.f32 %v243_v39, %v263_v44 }
 0x1d8   :  { %v264_v48 = vsub.f32 %v242_v41, %v262_v46  ;;  %v267_v51 = vmul.f32 %v265_v47, %v265_v47 }
 0x1da   :  { %v266_v49 = vmul.f32 %v264_v48, %v264_v48  ;;  %v271_v52 = vsel %vm254_vm5, %v267_v51, 0.0 }
 0x1dc   :  { %v268_v50 = vsel %vm254_vm5, %v266_v49, 0.0 }
 0x1dd   :  { %269 = vadd.xlane.f32.xlu0 %v268_v50 }
 0x1e1   :  { %272 = vadd.xlane.f32.xlu0 %v271_v52 }
 0x266   :  { %v270_v57 = vpop.xlane.xlu0 %269 }
 0x267   :  { %v274_v58 = vmul.f32 0.03125, %v270_v57 }
 0x269   :  { %v276_v59 = vadd.f32 1e-12, %v274_v58 }
 0x26a   :  { %v273_v60 = vpop.xlane.xlu0 %272 }
 0x26b   :  { %3207 = vrsqrt.f32 %v276_v59  ;;  %v275_v61 = vmul.f32 0.03125, %v273_v60 }
 0x26d   :  { %v277_v62 = vadd.f32 1e-12, %v275_v61 }
 0x26f   :  { %3209 = vrsqrt.f32 %v277_v62 }
 0x278   :  { %v3208_v63 = vpop.eup %3207 }
 0x279   :  { %v280_v1 = vmul.f32 %v3208_v63, %v264_v48 }
 0x27b   :  { %v286_v3 = vmul.f32 %v2768_v0, %v280_v1 }
 0x27c   :  { %v3210_v4 = vpop.eup %3209 }
 0x27d   :  { %v281_v5 = vmul.f32 %v3210_v4, %v265_v47  ;;  %v3451_v6 = vadd.f32 %v2769_v2, %v286_v3 }
 0x27f   :  { %v287_v7 = vmul.f32 %v2768_v0, %v281_v5  ;;  %294 = vst.msk [vmem:[#allocation2] sm:$0xff] %vm254_vm5, %v3451_v6  ;;  %3011 = vmatprep.mubr.msk.f32.mxu0 %vm254_vm5, %v3451_v6 }
 0x281   :  { %v3457_v8 = vadd.f32 %v2769_v2, %v287_v7 }
 0x283   :  { %295 = vst.msk [vmem:[#allocation2 + $0x8] sm:$0xff] %vm254_vm5, %v3457_v8  ;;  %3012 = vmatmul.mubr.msk.f32.vlgmr.msra.gmra.mxu0 %vm254_vm5, %v3457_v8 }
 0x284   :  { %3021 = vmatprep.mubr.msk.f32.mxu0 %vm3292_vm6, %v3290_v22 }
 0x343   :  { %v3013_v10 = vpop.f32.mrf.mxu0 }
 0x344   :  { %v3470_v11 = vadd.f32 %v3013_v10, %v2770_v9 }
 0x345   :  { %v384_v12 = vpop.f32.mrf.mxu0 }
 0x346   :  { %v3472_v13 = vadd.f32 %v2770_v9, %v384_v12  ;;  %491 = vrot.lane.b32.xlu0 %v3470_v11, %s3293_s25  ;;  %v398_v16 = vmul.f32 0.25, %v3470_v11 }
 0x348   :  { %412 = vrot.lane.b32.xlu1 %v3472_v13, %s3293_s25  ;;  %v397_v17 = vmul.f32 0.25, %v3472_v13 }
 0x3b8   :  { %v492_v14 = vpop.permute.xlu0 %491 }
 0x3b9   :  { %3020 = vmatpush3.xpose.msk.msra.mxu0 %vm414_vm7, %v492_v14 }
 0x3ba   :  { %v413_v15 = vpop.permute.xlu1 %412  ;;  %3024 = vmatprep.subr.mxu0 %v3290_v22 }
 0x3bb   :  { %3015 = vmatpush3.xpose.msk.msra.mxu1 %vm414_vm7, %v413_v15 }
 0x3bc   :  { %3022 = vmatmul.mubr.msk.f32.vlgmr.msra.gmra.mxu0 %vm414_vm7, %v398_v16  ;;  %3044 = vmatprep.subr.mxu1 %v3290_v22 }
 0x3bd   :  { %3026 = vmatprep.mubr.msk.f32.mxu0 %vm3292_vm6, %v3290_v22 }
 0x3be   :  { %3017 = vmatmul.mubr.msk.f32.vlgmr.msra.gmra.mxu1 %vm414_vm7, %v397_v17 }
 0x3bf   :  { %3046 = vmatprep.mubr.msk.f32.mxu1 %vm3292_vm6, %v3290_v22 }
 0x47c   :  { %v564_v32 = vpop.f32.mrf.mxu0 }
 0x47d   :  { %v565_v33 = vadd.f32 %v564_v32, %v3497_v30 }
 0x47e   :  { %v486_v34 = vpop.f32.mrf.mxu1  ;;  %v3023_v35 = vpop.f32.mrf.mxu0 }
 0x47f   :  { %v487_v36 = vadd.f32 %v486_v34, %v3499_v31  ;;  %v571_v37 = vsel %vm84_vm0, %v565_v33, -inf  ;;  %v396_v35 = vld [vmem:[%s3836_s7 + $0x18] sm:$0xff] }
 0x480   :  { %572 = vmax.xlane.f32.xlu0 %v571_v37  ;;  %v3018_v38 = vpop.f32.mrf.mxu1 }
 0x481   :  { %v568_v23 = vsel %vm84_vm0, %v487_v36, -inf }
 0x482   :  { %569 = vmax.xlane.f32.xlu1 %v568_v23 }
 0x493   :  { %590 = vrot.lane.b32.xlu1 %v3472_v13, %s3294_s1 }
 0x497   :  { %744 = vrot.lane.b32.xlu1 %v3472_v13, %s3295_s30 }
 0x509   :  { %v573_v39 = vpop.xlane.xlu0 %572 }
 0x50a   :  { %v575_v40 = vsub.f32 %v565_v33, %v573_v39 }
 0x50b   :  { %v570_v41 = vpop.xlane.xlu1 %569 }
 0x50c   :  { %v578_v42 = vmul.f32 1.442695, %v575_v40  ;;  %v574_v43 = vsub.f32 %v487_v36, %v570_v41  ;;  %v395_v36 = vld [vmem:[%s3836_s7 + $0x10] sm:$0xff]  ;;  %v2789_v41 = vld [vmem:[%s3834_s5 + $0x3] ss:$0 sm:$0xff] }
 0x50e   :  { %3211 = vpow2.f32 %v578_v42  ;;  %v576_v44 = vmul.f32 1.442695, %v574_v43 }
 0x50f   :  { %v591_v45 = vpop.permute.xlu1 %590 }
 0x510   :  { %3213 = vpow2.f32 %v576_v44  ;;  %3025 = vmatpush3.msra.mxu0 %v591_v45 }
 0x511   :  { %3029 = vmatprep.subr.mxu0 %v3290_v22 }
 0x513   :  { %v745_v50 = vpop.permute.xlu1 %744 }
 0x51b   :  { %v3212_v46 = vpop.eup %3211 }
 0x51c   :  { %v583_v47 = vsel %vm84_vm0, %v3212_v46, 0.0 }
 0x51d   :  { %v3214_v48 = vpop.eup %3213  ;;  %584 = vadd.xlane.f32.xlu0 %v583_v47 }
 0x51e   :  { %v580_v49 = vsel %vm84_vm0, %v3214_v48, 0.0 }
 0x51f   :  { %581 = vadd.xlane.f32.xlu1 %v580_v49 }
 0x530   :  { %742 = vrot.lane.b32.xlu1 %v397_v17, %s3296_s0 }
 0x533   :  { %666 = vrot.lane.b32.xlu0 %v3470_v11, %s3294_s1 }
 0x534   :  { %820 = vrot.lane.b32.xlu1 %v398_v16, %s3296_s0 }
 0x537   :  { %822 = vrot.lane.b32.xlu0 %v3470_v11, %s3295_s30 }
 0x5a6   :  { %v585_v51 = vpop.xlane.xlu0 %584 }
 0x5a8   :  { %v582_v52 = vpop.xlane.xlu1 %581 }
 0x5a9   :  { %3215 = vrcp.f32 %v582_v52 }
 0x5aa   :  { %3217 = vrcp.f32 %v585_v51  ;;  %v667_v56 = vpop.permute.xlu0 %666 }
 0x5ac   :  { %v743_v58 = vpop.permute.xlu1 %742 }
 0x5ae   :  { %v823_v59 = vpop.permute.xlu0 %822 }
 0x5b0   :  { %v821_v60 = vpop.permute.xlu1 %820 }
 0x5b6   :  { %v3216_v53 = vpop.eup %3215 }
 0x5b7   :  { %v588_v54 = vmul.f32 %v3216_v53, %v3214_v48  ;;  %v3218_v55 = vpop.eup %3217 }
 0x5b8   :  { %v589_v57 = vmul.f32 %v3218_v55, %v3212_v46 }
 0x5b9   :  { %3027 = vmatmul.mubr.msk.f32.vlgmr.msra.gmra.mxu0 %vm84_vm0, %v588_v54 }
 0x5ba   :  { %3030 = vmatpush3.msra.mxu0 %v667_v56  ;;  %3031 = vmatprep.mubr.msk.f32.mxu0 %vm3292_vm6, %v3290_v22 }
 0x5bb   :  { %3034 = vmatprep.subr.mxu0 %v3290_v22 }
 0x5bd   :  { %3032 = vmatmul.mubr.msk.f32.vlgmr.msra.gmra.mxu0 %vm84_vm0, %v589_v57 }
 0x5be   :  { %3035 = vmatpush3.xpose.msk.msra.mxu0 %vm414_vm7, %v745_v50  ;;  %3036 = vmatprep.mubr.msk.f32.mxu0 %vm3292_vm6, %v3290_v22 }
 0x5bf   :  { %3039 = vmatprep.subr.mxu0 %v3290_v22 }
 0x5c1   :  { %3037 = vmatmul.mubr.msk.f32.vlgmr.msra.gmra.mxu0 %vm414_vm7, %v743_v58 }
 0x5c2   :  { %3040 = vmatpush3.xpose.msk.msra.mxu0 %vm414_vm7, %v823_v59  ;;  %3041 = vmatprep.mubr.msk.f32.mxu0 %vm3292_vm6, %v3290_v22 }
 0x5c3   :  { %3049 = vmatprep.subr.mxu0 %v3290_v22 }
 0x5c5   :  { %3042 = vmatmul.mubr.msk.f32.vlgmr.msra.gmra.mxu0 %vm414_vm7, %v821_v60 }
 0x5c6   :  { %3051 = vmatprep.mubr.msk.f32.mxu0 %vm3292_vm6, %v3290_v22 }
 0x679   :  { %v662_v61 = vpop.f32.mrf.mxu0 }
 0x67b   :  { %v3028_v62 = vpop.f32.mrf.mxu0 }
 0x67c   :  { %v1282_v62 = vld [vmem:[%s3837_s8 + $0x10] sm:$0xff] }
 0x67d   :  { %v738_v63 = vpop.f32.mrf.mxu0 }
 0x67f   :  { %v3033_v0 = vpop.f32.mrf.mxu0 }
 0x680   :  { %v1280_v0 = vld [vmem:[%s3837_s8] sm:$0xff] }
 0x681   :  { %v816_v1 = vpop.f32.mrf.mxu0 }
 0x682   :  { %v817_v2 = vadd.f32 %v816_v1, %v3499_v31 }
 0x683   :  { %v3038_v3 = vpop.f32.mrf.mxu0 }
 0x684   :  { %v898_v4 = vsel %vm84_vm0, %v817_v2, -inf }
 0x685   :  { %899 = vmax.xlane.f32.xlu0 %v898_v4  ;;  %v894_v5 = vpop.f32.mrf.mxu0 }
 0x686   :  { %v895_v7 = vadd.f32 %v894_v5, %v3497_v30 }
 0x687   :  { %v3043_v9 = vpop.f32.mrf.mxu0 }
 0x688   :  { %v901_v10 = vsel %vm84_vm0, %v895_v7, -inf }
 0x689   :  { %902 = vmax.xlane.f32.xlu1 %v901_v10  ;;  %v2790_v10 = vld [vmem:[%s3834_s5 + $0x4] ss:$0 sm:$0xff] }
 0x69a   :  { %920 = vrot.lane.b32.xlu1 %v3472_v13, %s3297_s11 }
 0x70e   :  { %v900_v12 = vpop.xlane.xlu0 %899 }
 0x70f   :  { %v904_v14 = vsub.f32 %v817_v2, %v900_v12 }
 0x711   :  { %v906_v15 = vmul.f32 1.442695, %v904_v14 }
 0x712   :  { %v903_v16 = vpop.xlane.xlu1 %902 }
 0x713   :  { %3219 = vpow2.f32 %v906_v15  ;;  %v905_v17 = vsub.f32 %v895_v7, %v903_v16 }
 0x715   :  { %v908_v18 = vmul.f32 1.442695, %v905_v17  ;;  %v2791_v17 = vld [vmem:[%s3834_s5 + $0x5] ss:$0 sm:$0xff] }
 0x716   :  { %v921_v19 = vpop.permute.xlu1 %920 }
 0x717   :  { %3221 = vpow2.f32 %v908_v18  ;;  %3045 = vmatpush3.msra.mxu1 %v921_v19 }
 0x718   :  { %3054 = vmatprep.subr.mxu1 %v396_v35 }
 0x720   :  { %v3220_v20 = vpop.eup %3219 }
 0x721   :  { %v910_v21 = vsel %vm84_vm0, %v3220_v20, 0.0 }
 0x722   :  { %911 = vadd.xlane.f32.xlu0 %v910_v21  ;;  %v1394_v21 = vld [vmem:[%s3838_s9 + $0x38] sm:$0xff] }
 0x724   :  { %v3222_v24 = vpop.eup %3221 }
 0x725   :  { %v913_v25 = vsel %vm84_vm0, %v3222_v24, 0.0 }
 0x726   :  { %914 = vadd.xlane.f32.xlu0 %v913_v25  ;;  %v1392_v25 = vld [vmem:[%s3838_s9 + $0x28] sm:$0xff] }
 0x73c   :  { %996 = vrot.lane.b32.xlu0 %v3470_v11, %s3297_s11  ;;  %v393_v11 = vld [vmem:[%s3836_s7] sm:$0xff] }
 0x7ab   :  { %v912_v13 = vpop.xlane.xlu0 %911 }
 0x7ac   :  { %3223 = vrcp.f32 %v912_v13  ;;  %v1391_v13 = vld [vmem:[%s3838_s9 + $0x20] sm:$0xff] }
 0x7af   :  { %v915_v26 = vpop.xlane.xlu0 %914 }
 0x7b0   :  { %3225 = vrcp.f32 %v915_v26  ;;  %v1390_v26 = vld [vmem:[%s3838_s9 + $0x18] sm:$0xff] }
 0x7b3   :  { %v997_v28 = vpop.permute.xlu0 %996 }
 0x7b4   :  { %3050 = vmatpush3.msra.mxu0 %v997_v28  ;;  %v1388_v28 = vld [vmem:[%s3838_s9 + $0x8] sm:$0xff] }
 0x7b5   :  { %3061 = vmatprep.subr.mxu0 %v394_v27 }
 0x7b9   :  { %v3224_v29 = vpop.eup %3223 }
 0x7ba   :  { %v918_v32 = vmul.f32 %v3224_v29, %v3220_v20  ;;  %v1387_v29 = vld [vmem:[%s3838_s9] sm:$0xff] }
 0x7bc   :  { %3047 = vmatmul.mubr.msk.f32.vlgmr.msra.gmra.mxu1 %vm84_vm0, %v918_v32  ;;  %v2792_v32 = vld [vmem:[%s3834_s5 + $0x6] ss:$0 sm:$0xff] }
 0x7bd   :  { %v3226_v33 = vpop.eup %3225  ;;  %3055 = vmatpush3.msra.mxu1 %v396_v35 }
 0x7be   :  { %v919_v34 = vmul.f32 %v3226_v33, %v3222_v24  ;;  %3056 = vmatprep.subr.mxu1 %v395_v36  ;;  %v1393_v24 = vld [vmem:[%s3838_s9 + $0x30] sm:$0xff] }
 0x7bf   :  { %3057 = vmatpush3.msra.mxu1 %v395_v36 }
 0x7c0   :  { %3052 = vmatmul.mubr.msk.f32.vlgmr.msra.gmra.mxu0 %vm84_vm0, %v919_v34 }
 0x7c1   :  { %3062 = vmatpush3.msra.mxu0 %v394_v27  ;;  %3065 = vmatprep.mubr.msk.f32.mxu0 %vm414_vm7, %v662_v61  ;;  %v1389_v27 = vld [vmem:[%s3838_s9 + $0x10] sm:$0xff] }
 0x7c2   :  { %3063 = vmatprep.subr.mxu0 %v393_v11 }
 0x7c3   :  { %3064 = vmatpush3.msra.mxu0 %v393_v11 }
 0x7c4   :  { %3066 = vmatmul.mubr.msk.f32.vlgmr.msra.gmra.mxu0 %vm414_vm7, %v738_v63  ;;  %v1281_v63 = vld [vmem:[%s3837_s8 + $0x8] sm:$0xff]  ;;  %3079 = vmatprep.subr.mxu0 %v1394_v21 }
 0x7c5   :  { %3080 = vmatpush3.msra.mxu0 %v1394_v21  ;;  %v2798_v21 = vld [vmem:[%s3834_s5 + $0x8] ss:$0 sm:$0xff] }
 0x7c6   :  { %3081 = vmatprep.subr.mxu0 %v1393_v24 }
 0x7c7   :  { %3082 = vmatpush3.msra.mxu0 %v1393_v24 }
 0x7c8   :  { %3083 = vmatprep.subr.mxu0 %v1392_v25 }
 0x7c9   :  { %3084 = vmatpush3.msra.mxu0 %v1392_v25 }
 0x7ca   :  { %3085 = vmatprep.subr.mxu0 %v1391_v13 }
 0x7cb   :  { %3086 = vmatpush3.msra.mxu0 %v1391_v13  ;;  %v2799_v13 = vld [vmem:[%s3834_s5 + $0x9] ss:$0 sm:$0xff] }
 0x7cc   :  { %3087 = vmatprep.subr.mxu0 %v1390_v26 }
 0x7cd   :  { %3088 = vmatpush3.msra.mxu0 %v1390_v26 }
 0x7ce   :  { %3089 = vmatprep.subr.mxu0 %v1389_v27 }
 0x7cf   :  { %3090 = vmatpush3.msra.mxu0 %v1389_v27 }
 0x7d0   :  { %3091 = vmatprep.subr.mxu0 %v1388_v28 }
 0x7d1   :  { %3092 = vmatpush3.msra.mxu0 %v1388_v28 }
 0x7d2   :  { %3093 = vmatprep.subr.mxu0 %v1387_v29 }
 0x7d3   :  { %3094 = vmatpush3.msra.mxu0 %v1387_v29 }
 0x7d4   :  { %3114 = vmatprep.subr.mxu0 %v3290_v22 }
 0x87c   :  { %v992_v37 = vpop.f32.mrf.mxu1 }
 0x87d   :  { %3058 = vmatprep.mubr.msk.f32.mxu1 %vm414_vm7, %v992_v37 }
 0x87e   :  { %v3048_v38 = vpop.f32.mrf.mxu1 }
 0x880   :  { %v1068_v23 = vpop.f32.mrf.mxu0 }
 0x881   :  { %3059 = vmatmul.mubr.msk.f32.vlgmr.msra.gmra.mxu1 %vm414_vm7, %v1068_v23 }
 0x882   :  { %v3053_v39 = vpop.f32.mrf.mxu0 }
 0x884   :  { %v3067_v40 = vpop.f32.mrf.mxu0 }
 0x886   :  { %v1225_v44 = vpop.f32.mrf.mxu0 }
 0x941   :  { %v3060_v42 = vpop.f32.mrf.mxu1 }
 0x942   :  { %v1231_v43 = vadd.f32 %v3067_v40, %v3060_v42 }
 0x943   :  { %v1144_v45 = vpop.f32.mrf.mxu1 }
 0x944   :  { %v1239_v46 = vadd.f32 %v2789_v41, %v1231_v43  ;;  %v1226_v47 = vadd.f32 %v1225_v44, %v1144_v45 }
 0x946   :  { %v1238_v48 = vadd.f32 %v2789_v41, %v1226_v47  ;;  %v1241_v49 = vadd.f32 %v1239_v46, %v3457_v8 }
 0x948   :  { %v1245_v50 = vsel %vm254_vm5, %v1241_v49, 0.0  ;;  %v1240_v51 = vadd.f32 %v1238_v48, %v3451_v6  ;;  %v1283_v6 = vld [vmem:[%s3837_s8 + $0x18] sm:$0xff] }
 0x949   :  { %1246 = vadd.xlane.f32.xlu0 %v1245_v50  ;;  %3068 = vmatprep.subr.mxu1 %v1283_v6 }
 0x94a   :  { %v1242_v52 = vsel %vm254_vm5, %v1240_v51, 0.0  ;;  %3069 = vmatpush3.msra.mxu1 %v1283_v6 }
 0x94b   :  { %1243 = vadd.xlane.f32.xlu1 %v1242_v52  ;;  %3070 = vmatprep.subr.mxu1 %v1282_v62 }
 0x94c   :  { %3071 = vmatpush3.msra.mxu1 %v1282_v62 }
 0x94d   :  { %3072 = vmatprep.subr.mxu1 %v1281_v63 }
 0x94e   :  { %3073 = vmatpush3.msra.mxu1 %v1281_v63 }
 0x94f   :  { %3074 = vmatprep.subr.mxu1 %v1280_v0 }
 0x950   :  { %3075 = vmatpush3.msra.mxu1 %v1280_v0 }
 0x9d2   :  { %v1247_v53 = vpop.xlane.xlu0 %1246 }
 0x9d3   :  { %v1249_v54 = vmul.f32 0.03125, %v1247_v53  ;;  %v2795_v53 = vld [vmem:[%s3834_s5 + $0x7] ss:$0 sm:$0xff] }
 0x9d4   :  { %v1244_v55 = vpop.xlane.xlu1 %1243 }
 0x9d5   :  { %v1251_v56 = vsub.f32 %v1241_v49, %v1249_v54  ;;  %v1248_v57 = vmul.f32 0.03125, %v1244_v55 }
 0x9d7   :  { %v1250_v58 = vsub.f32 %v1240_v51, %v1248_v57  ;;  %v1253_v59 = vmul.f32 %v1251_v56, %v1251_v56 }
 0x9d9   :  { %v1257_v60 = vsel %vm254_vm5, %v1253_v59, 0.0  ;;  %v1252_v61 = vmul.f32 %v1250_v58, %v1250_v58 }
 0x9da   :  { %1258 = vadd.xlane.f32.xlu0 %v1257_v60 }
 0x9db   :  { %v1254_v8 = vsel %vm254_vm5, %v1252_v61, 0.0 }
 0x9dc   :  { %1255 = vadd.xlane.f32.xlu1 %v1254_v8 }
 0xa63   :  { %v1259_v1 = vpop.xlane.xlu0 %1258 }
 0xa64   :  { %v1261_v2 = vmul.f32 0.03125, %v1259_v1 }
 0xa65   :  { %v1256_v3 = vpop.xlane.xlu1 %1255 }
 0xa66   :  { %v1263_v4 = vadd.f32 1e-12, %v1261_v2  ;;  %v1260_v5 = vmul.f32 0.03125, %v1256_v3 }
 0xa68   :  { %3227 = vrsqrt.f32 %v1263_v4  ;;  %v1262_v7 = vadd.f32 1e-12, %v1260_v5 }
 0xa6a   :  { %3229 = vrsqrt.f32 %v1262_v7  ;;  %v2803_v7 = vld [vmem:[%s3835_s6 + $0x38] sm:$0xff] }
 0xa6b   :  { %3098 = vmatprep.subr.mxu1 %v2803_v7 }
 0xa75   :  { %v3228_v9 = vpop.eup %3227 }
 0xa76   :  { %v1267_v12 = vmul.f32 %v3228_v9, %v1251_v56  ;;  %v2802_v9 = vld [vmem:[%s3835_s6 + $0x30] sm:$0xff] }
 0xa77   :  { %v3230_v14 = vpop.eup %3229 }
 0xa78   :  { %v1266_v15 = vmul.f32 %v3230_v14, %v1250_v58  ;;  %v1273_v16 = vmul.f32 %v2790_v10, %v1267_v12  ;;  %v2800_v12 = vld [vmem:[%s3835_s6 + $0x20] sm:$0xff] }
 0xa7a   :  { %v1272_v18 = vmul.f32 %v2790_v10, %v1266_v15  ;;  %v1279_v20 = vadd.f32 %v2791_v17, %v1273_v16  ;;  %v2801_v10 = vld [vmem:[%s3835_s6 + $0x28] sm:$0xff] }
 0xa7c   :  { %v3590_v19 = vadd.f32 %v2791_v17, %v1272_v18 }
 0xa7e   :  { %3076 = vmatprep.mubr.msk.f32.mxu1 %vm254_vm5, %v3590_v19 }
 0xa7f   :  { %3077 = vmatmul.mubr.msk.f32.vlgmr.msra.gmra.mxu1 %vm254_vm5, %v1279_v20 }
 0xa80   :  { %3099 = vmatpush3.msra.mxu1 %v2803_v7 }
 0xa81   :  { %3100 = vmatprep.subr.mxu1 %v2802_v9 }
 0xa82   :  { %3101 = vmatpush3.msra.mxu1 %v2802_v9 }
 0xa83   :  { %3102 = vmatprep.subr.mxu1 %v2801_v10 }
 0xa84   :  { %3103 = vmatpush3.msra.mxu1 %v2801_v10 }
 0xa85   :  { %3104 = vmatprep.subr.mxu1 %v2800_v12 }
 0xa86   :  { %3105 = vmatpush3.msra.mxu1 %v2800_v12 }
 0xa87   :  { %3109 = vmatprep.subr.mxu1 %v3290_v22 }
 0xb3f   :  { %v3078_v33 = vpop.f32.mrf.mxu1 }
 0xb40   :  { %v1366_v34 = vadd.f32 %v3078_v33, %v2792_v32  ;;  %v2804_v33 = vld [vmem:[%s3834_s5 + $0xa] ss:$0 sm:$0xff] }
 0xb41   :  { %v1360_v11 = vpop.f32.mrf.mxu1 }
 0xb42   :  { %v1372_v35 = vmul.f32 0.044715, %v1366_v34  ;;  %v1361_v36 = vadd.f32 %v2792_v32, %v1360_v11  ;;  %v1370_v50 = vmul.f32 0.5, %v1366_v34 }
 0xb44   :  { %v1374_v37 = vmul.f32 %v1372_v35, %v1366_v34  ;;  %v1371_v38 = vmul.f32 0.044715, %v1361_v36  ;;  %v1369_v48 = vmul.f32 0.5, %v1361_v36 }
 0xb46   :  { %v1376_v23 = vmul.f32 %v1374_v37, %v1366_v34  ;;  %v1373_v39 = vmul.f32 %v1371_v38, %v1361_v36 }
 0xb48   :  { %v1378_v40 = vadd.f32 %v1376_v23, %v1366_v34  ;;  %v1375_v41 = vmul.f32 %v1373_v39, %v1361_v36 }
 0xb4a   :  { %v1380_v42 = vmul.f32 0.7978846, %v1378_v40  ;;  %v1377_v43 = vadd.f32 %v1375_v41, %v1361_v36 }
 0xb4c   :  { %3231 = vtanh.f32 %v1380_v42  ;;  %v1379_v44 = vmul.f32 0.7978846, %v1377_v43 }
 0xb4e   :  { %3233 = vtanh.f32 %v1379_v44 }
 0xb59   :  { %v3232_v45 = vpop.eup %3231 }
 0xb5a   :  { %v1384_v47 = vadd.f32 1.0, %v3232_v45 }
 0xb5b   :  { %v3234_v46 = vpop.eup %3233 }
 0xb5c   :  { %v1383_v49 = vadd.f32 1.0, %v3234_v46  ;;  %v1386_v52 = vmul.f32 %v1384_v47, %v1370_v50 }
 0xb5e   :  { %v1385_v51 = vmul.f32 %v1383_v49, %v1369_v48 }
 0xb60   :  { %3095 = vmatprep.mubr.msk.f32.mxu0 %vm1399_vm8, %v1385_v51 }
 0xb61   :  { %3096 = vmatmul.mubr.msk.f32.vlgmr.msra.gmra.mxu0 %vm1399_vm8, %v1386_v52 }
 0xb62   :  { %3116 = vmatprep.mubr.msk.f32.mxu0 %vm3292_vm6, %v3290_v22 }
 0xc21   :  { %v3097_v54 = vpop.f32.mrf.mxu0 }
 0xc22   :  { %v1478_v55 = vadd.f32 %v3097_v54, %v2795_v53 }
 0xc23   :  { %v1472_v56 = vpop.f32.mrf.mxu0 }
 0xc24   :  { %v1473_v57 = vadd.f32 %v2795_v53, %v1472_v56  ;;  %v1482_v58 = vadd.f32 %v1478_v55, %v1279_v20 }
 0xc26   :  { %v1486_v59 = vsel %vm254_vm5, %v1482_v58, 0.0  ;;  %v1481_v60 = vadd.f32 %v1473_v57, %v3590_v19 }
 0xc27   :  { %1487 = vadd.xlane.f32.xlu0 %v1486_v59 }
 0xc28   :  { %v1483_v61 = vsel %vm254_vm5, %v1481_v60, 0.0 }
 0xc29   :  { %1484 = vadd.xlane.f32.xlu1 %v1483_v61 }
 0xcb0   :  { %v1488_v8 = vpop.xlane.xlu0 %1487 }
 0xcb1   :  { %v1490_v6 = vmul.f32 0.03125, %v1488_v8 }
 0xcb2   :  { %v1485_v62 = vpop.xlane.xlu1 %1484 }
 0xcb3   :  { %v1492_v63 = vsub.f32 %v1482_v58, %v1490_v6  ;;  %v1489_v0 = vmul.f32 0.03125, %v1485_v62 }
 0xcb5   :  { %v1491_v1 = vsub.f32 %v1481_v60, %v1489_v0  ;;  %v1494_v2 = vmul.f32 %v1492_v63, %v1492_v63 }
 0xcb7   :  { %v1498_v3 = vsel %vm254_vm5, %v1494_v2, 0.0  ;;  %v1493_v4 = vmul.f32 %v1491_v1, %v1491_v1 }
 0xcb8   :  { %1499 = vadd.xlane.f32.xlu0 %v1498_v3 }
 0xcb9   :  { %v1495_v5 = vsel %vm254_vm5, %v1493_v4, 0.0 }
 0xcba   :  { %1496 = vadd.xlane.f32.xlu1 %v1495_v5 }
 0xd41   :  { %v1500_v14 = vpop.xlane.xlu0 %1499 }
 0xd42   :  { %v1502_v15 = vmul.f32 0.03125, %v1500_v14 }
 0xd43   :  { %v1497_v16 = vpop.xlane.xlu1 %1496 }
 0xd44   :  { %v1504_v17 = vadd.f32 1e-12, %v1502_v15  ;;  %v1501_v18 = vmul.f32 0.03125, %v1497_v16 }
 0xd46   :  { %3235 = vrsqrt.f32 %v1504_v17  ;;  %v1503_v19 = vadd.f32 1e-12, %v1501_v18 }
 0xd48   :  { %3237 = vrsqrt.f32 %v1503_v19 }
 0xd53   :  { %v3236_v20 = vpop.eup %3235 }
 0xd54   :  { %v1508_v24 = vmul.f32 %v3236_v20, %v1492_v63 }
 0xd55   :  { %v3238_v25 = vpop.eup %3237 }
 0xd56   :  { %v1507_v26 = vmul.f32 %v3238_v25, %v1491_v1  ;;  %v1514_v27 = vmul.f32 %v2798_v21, %v1508_v24 }
 0xd58   :  { %v1513_v28 = vmul.f32 %v2798_v21, %v1507_v26  ;;  %v3654_v29 = vadd.f32 %v2799_v13, %v1514_v27 }
 0xd5a   :  { %v3656_v32 = vadd.f32 %v2799_v13, %v1513_v28  ;;  %1523 = vst.msk [vmem:[#allocation2 + $0x18] sm:$0xff] %vm254_vm5, %v3654_v29 }
 0xd5c   :  { %1522 = vst.msk [vmem:[#allocation2 + $0x10] sm:$0xff] %vm254_vm5, %v3656_v32  ;;  %3106 = vmatprep.mubr.msk.f32.mxu1 %vm254_vm5, %v3656_v32 }
 0xd5d   :  { %3107 = vmatmul.mubr.msk.f32.vlgmr.msra.gmra.mxu1 %vm254_vm5, %v3654_v29 }
 0xd5e   :  { %3111 = vmatprep.mubr.msk.f32.mxu1 %vm3292_vm6, %v3290_v22 }
 0xe1d   :  { %v3108_v34 = vpop.f32.mrf.mxu1 }
 0xe1e   :  { %v3671_v11 = vadd.f32 %v3108_v34, %v2804_v33 }
 0xe1f   :  { %v1613_v35 = vpop.f32.mrf.mxu1 }
 0xe20   :  { %v3673_v36 = vadd.f32 %v2804_v33, %v1613_v35  ;;  %1708 = vrot.lane.b32.xlu0 %v3671_v11, %s3293_s25  ;;  %v1628_v23 = vmul.f32 0.25, %v3671_v11  ;;  %v2808_v35 = vld [vmem:[%s3836_s7 + $0x28] sm:$0xff] }
 0xe22   :  { %1630 = vrot.lane.b32.xlu1 %v3673_v36, %s3293_s25  ;;  %v1627_v39 = vmul.f32 0.25, %v3673_v36 }
 0xe92   :  { %v1709_v37 = vpop.permute.xlu0 %1708 }
 0xe93   :  { %3115 = vmatpush3.xpose.msk.msra.mxu0 %vm414_vm7, %v1709_v37 }
 0xe94   :  { %v1631_v38 = vpop.permute.xlu1 %1630  ;;  %3124 = vmatprep.subr.mxu0 %v3290_v22 }
 0xe95   :  { %3110 = vmatpush3.xpose.msk.msra.mxu1 %vm414_vm7, %v1631_v38 }
 0xe96   :  { %3117 = vmatmul.mubr.msk.f32.vlgmr.msra.gmra.mxu0 %vm414_vm7, %v1628_v23  ;;  %3119 = vmatprep.subr.mxu1 %v3290_v22 }
 0xe97   :  { %3126 = vmatprep.mubr.msk.f32.mxu0 %vm3292_vm6, %v3290_v22 }
 0xe98   :  { %3112 = vmatmul.mubr.msk.f32.vlgmr.msra.gmra.mxu1 %vm414_vm7, %v1627_v39 }
 0xe99   :  { %3121 = vmatprep.mubr.msk.f32.mxu1 %vm3292_vm6, %v3290_v22 }
 0xf56   :  { %v1781_v40 = vpop.f32.mrf.mxu0 }
 0xf57   :  { %v1782_v41 = vadd.f32 %v1781_v40, %v3497_v30  ;;  %v2810_v40 = vld [vmem:[%s3836_s7 + $0x38] sm:$0xff] }
 0xf58   :  { %v1703_v42 = vpop.f32.mrf.mxu1  ;;  %v3118_v43 = vpop.f32.mrf.mxu0 }
 0xf59   :  { %v1704_v44 = vadd.f32 %v1703_v42, %v3499_v31  ;;  %v1788_v45 = vsel %vm84_vm0, %v1782_v41, -inf }
 0xf5a   :  { %1789 = vmax.xlane.f32.xlu0 %v1788_v45  ;;  %v3113_v46 = vpop.f32.mrf.mxu1 }
 0xf5b   :  { %v1785_v47 = vsel %vm84_vm0, %v1704_v44, -inf }
 0xf5c   :  { %1786 = vmax.xlane.f32.xlu1 %v1785_v47  ;;  %v2827_v47 = vld [vmem:[%s3834_s5 + $0xb] ss:$0 sm:$0xff] }
 0xf6d   :  { %1807 = vrot.lane.b32.xlu1 %v3673_v36, %s3294_s1 }
 0xf70   :  { %1883 = vrot.lane.b32.xlu0 %v3671_v11, %s3294_s1 }
 0xf71   :  { %1961 = vrot.lane.b32.xlu1 %v3673_v36, %s3295_s30 }
 0xf75   :  { %2039 = vrot.lane.b32.xlu1 %v3671_v11, %s3295_s30 }
 0xfe3   :  { %v1790_v48 = vpop.xlane.xlu0 %1789 }
 0xfe4   :  { %v1792_v49 = vsub.f32 %v1782_v41, %v1790_v48  ;;  %v2809_v41 = vld [vmem:[%s3836_s7 + $0x30] sm:$0xff] }
 0xfe5   :  { %v1787_v50 = vpop.xlane.xlu1 %1786 }
 0xfe6   :  { %v1795_v51 = vmul.f32 1.442695, %v1792_v49  ;;  %v1791_v52 = vsub.f32 %v1704_v44, %v1787_v50 }
 0xfe7   :  { %v1884_v53 = vpop.permute.xlu0 %1883 }
 0xfe8   :  { %3239 = vpow2.f32 %v1795_v51  ;;  %v1793_v54 = vmul.f32 1.442695, %v1791_v52  ;;  %3125 = vmatpush3.msra.mxu0 %v1884_v53 }
 0xfe9   :  { %v1808_v55 = vpop.permute.xlu1 %1807  ;;  %3134 = vmatprep.subr.mxu0 %v3290_v22 }
 0xfea   :  { %3241 = vpow2.f32 %v1793_v54  ;;  %3120 = vmatpush3.msra.mxu1 %v1808_v55 }
 0xfeb   :  { %3129 = vmatprep.subr.mxu1 %v3290_v22 }
 0xfed   :  { %v1962_v60 = vpop.permute.xlu1 %1961 }
 0xff1   :  { %v2040_v61 = vpop.permute.xlu1 %2039 }
 0xff5   :  { %v3240_v56 = vpop.eup %3239 }
 0xff6   :  { %v1800_v57 = vsel %vm84_vm0, %v3240_v56, 0.0 }
 0xff7   :  { %v3242_v58 = vpop.eup %3241  ;;  %1801 = vadd.xlane.f32.xlu0 %v1800_v57 }
 0xff8   :  { %v1797_v59 = vsel %vm84_vm0, %v3242_v58, 0.0 }
 0xff9   :  { %1798 = vadd.xlane.f32.xlu1 %v1797_v59 }
0x100a   :  { %2037 = vrot.lane.b32.xlu1 %v1628_v23, %s3296_s0  ;;  %v2807_v23 = vld [vmem:[%s3836_s7 + $0x20] sm:$0xff] }
0x100d   :  { %1959 = vrot.lane.b32.xlu0 %v1627_v39, %s3296_s0 }
0x1080   :  { %v1802_v8 = vpop.xlane.xlu0 %1801 }
0x1081   :  { %3243 = vrcp.f32 %v1802_v8 }
0x1082   :  { %v1799_v6 = vpop.xlane.xlu1 %1798 }
0x1083   :  { %3245 = vrcp.f32 %v1799_v6 }
0x1084   :  { %v1960_v3 = vpop.permute.xlu0 %1959 }
0x1086   :  { %v2038_v2 = vpop.permute.xlu1 %2037 }
0x108e   :  { %v3244_v62 = vpop.eup %3243 }
0x108f   :  { %v1806_v63 = vmul.f32 %v3244_v62, %v3240_v56 }
0x1090   :  { %v3246_v0 = vpop.eup %3245 }
0x1091   :  { %3127 = vmatmul.mubr.msk.f32.vlgmr.msra.gmra.mxu0 %vm84_vm0, %v1806_v63  ;;  %v1805_v1 = vmul.f32 %v3246_v0, %v3242_v58 }
0x1092   :  { %3135 = vmatpush3.xpose.msk.msra.mxu0 %vm414_vm7, %v2040_v61  ;;  %3136 = vmatprep.mubr.msk.f32.mxu0 %vm3292_vm6, %v3290_v22 }
0x1093   :  { %3122 = vmatmul.mubr.msk.f32.vlgmr.msra.gmra.mxu1 %vm84_vm0, %v1805_v1  ;;  %3144 = vmatprep.subr.mxu0 %v3290_v22 }
0x1094   :  { %3130 = vmatpush3.xpose.msk.msra.mxu1 %vm414_vm7, %v1962_v60  ;;  %3131 = vmatprep.mubr.msk.f32.mxu1 %vm3292_vm6, %v3290_v22 }
0x1095   :  { %3137 = vmatmul.mubr.msk.f32.vlgmr.msra.gmra.mxu0 %vm414_vm7, %v2038_v2  ;;  %3139 = vmatprep.subr.mxu1 %v3290_v22  ;;  %v2832_v2 = vld [vmem:[%s3837_s8 + $0x30] sm:$0xff] }
0x1096   :  { %3146 = vmatprep.mubr.msk.f32.mxu0 %vm3292_vm6, %v3290_v22 }
0x1097   :  { %3132 = vmatmul.mubr.msk.f32.vlgmr.msra.gmra.mxu1 %vm414_vm7, %v1960_v3  ;;  %v2831_v3 = vld [vmem:[%s3837_s8 + $0x28] sm:$0xff] }
0x1098   :  { %3141 = vmatprep.mubr.msk.f32.mxu1 %vm3292_vm6, %v3290_v22 }
0x1151   :  { %v1955_v4 = vpop.f32.mrf.mxu0 }
0x1153   :  { %v1879_v5 = vpop.f32.mrf.mxu1  ;;  %v3128_v7 = vpop.f32.mrf.mxu0 }
0x1155   :  { %v3123_v9 = vpop.f32.mrf.mxu1  ;;  %v2111_v10 = vpop.f32.mrf.mxu0 }
0x1156   :  { %v2112_v12 = vadd.f32 %v2111_v10, %v3497_v30 }
0x1157   :  { %v2033_v14 = vpop.f32.mrf.mxu1  ;;  %v3138_v15 = vpop.f32.mrf.mxu0 }
0x1158   :  { %v2034_v16 = vadd.f32 %v2033_v14, %v3499_v31  ;;  %v2118_v17 = vsel %vm84_vm0, %v2112_v12, -inf }
0x1159   :  { %2119 = vmax.xlane.f32.xlu1 %v2118_v17  ;;  %v3133_v18 = vpop.f32.mrf.mxu1 }
0x115a   :  { %v2115_v19 = vsel %vm84_vm0, %v2034_v16, -inf }
0x115b   :  { %2116 = vmax.xlane.f32.xlu0 %v2115_v19 }
0x116a   :  { %2137 = vrot.lane.b32.xlu1 %v3673_v36, %s3297_s11 }
0x11e2   :  { %v2120_v22 = vpop.xlane.xlu1 %2119 }
0x11e3   :  { %v2122_v20 = vsub.f32 %v2112_v12, %v2120_v22 }
0x11e4   :  { %v2117_v21 = vpop.xlane.xlu0 %2116 }
0x11e5   :  { %v2125_v24 = vmul.f32 1.442695, %v2122_v20  ;;  %v2121_v25 = vsub.f32 %v2034_v16, %v2117_v21  ;;  %v2828_v16 = vld [vmem:[%s3834_s5 + $0xc] ss:$0 sm:$0xff]  ;;  %v2829_v20 = vld [vmem:[%s3834_s5 + $0xd] ss:$0 sm:$0xff] }
0x11e6   :  { %v2138_v30 = vpop.permute.xlu1 %2137 }
0x11e7   :  { %3247 = vpow2.f32 %v2125_v24  ;;  %v2123_v13 = vmul.f32 1.442695, %v2121_v25  ;;  %3140 = vmatpush3.msra.mxu1 %v2138_v30  ;;  %v2844_v30 = vld [vmem:[%s3838_s9 + $0x78] sm:$0xff] }
0x11e8   :  { %3149 = vmatprep.subr.mxu1 %v2810_v40 }
0x11e9   :  { %3249 = vpow2.f32 %v2123_v13  ;;  %v2843_v13 = vld [vmem:[%s3838_s9 + $0x70] sm:$0xff] }
0x11f4   :  { %v3248_v31 = vpop.eup %3247 }
0x11f5   :  { %v2130_v26 = vsel %vm84_vm0, %v3248_v31, 0.0 }
0x11f6   :  { %v3250_v27 = vpop.eup %3249  ;;  %2131 = vadd.xlane.f32.xlu0 %v2130_v26  ;;  %v2841_v26 = vld [vmem:[%s3838_s9 + $0x60] sm:$0xff] }
0x11f7   :  { %v2127_v28 = vsel %vm84_vm0, %v3250_v27, 0.0 }
0x11fa   :  { %2128 = vadd.xlane.f32.xlu0 %v2127_v28  ;;  %v2839_v28 = vld [vmem:[%s3838_s9 + $0x50] sm:$0xff] }
0x1210   :  { %2213 = vrot.lane.b32.xlu0 %v3671_v11, %s3297_s11 }
0x127f   :  { %v2132_v33 = vpop.xlane.xlu0 %2131 }
0x1280   :  { %3251 = vrcp.f32 %v2132_v33  ;;  %v2838_v33 = vld [vmem:[%s3838_s9 + $0x48] sm:$0xff] }
0x1283   :  { %v2129_v34 = vpop.xlane.xlu0 %2128 }
0x1284   :  { %3253 = vrcp.f32 %v2129_v34  ;;  %v2837_v34 = vld [vmem:[%s3838_s9 + $0x40] sm:$0xff] }
0x1287   :  { %v2214_v36 = vpop.permute.xlu0 %2213 }
0x1288   :  { %3145 = vmatpush3.msra.mxu0 %v2214_v36 }
0x1289   :  { %3156 = vmatprep.subr.mxu0 %v2808_v35 }
0x128d   :  { %v3252_v37 = vpop.eup %3251 }
0x128e   :  { %v2136_v38 = vmul.f32 %v3252_v37, %v3248_v31  ;;  %v2842_v31 = vld [vmem:[%s3838_s9 + $0x68] sm:$0xff] }
0x1290   :  { %3147 = vmatmul.mubr.msk.f32.vlgmr.msra.gmra.mxu0 %vm84_vm0, %v2136_v38 }
0x1291   :  { %v3254_v11 = vpop.eup %3253  ;;  %3157 = vmatpush3.msra.mxu0 %v2808_v35  ;;  %3160 = vmatprep.mubr.msk.f32.mxu0 %vm414_vm7, %v1879_v5  ;;  %v2834_v35 = vld [vmem:[%s3834_s5 + $0xe] ss:$0 sm:$0xff] }
0x1292   :  { %3158 = vmatprep.subr.mxu0 %v2807_v23  ;;  %v2135_v39 = vmul.f32 %v3254_v11, %v3250_v27  ;;  %v2840_v27 = vld [vmem:[%s3838_s9 + $0x58] sm:$0xff] }
0x1293   :  { %3159 = vmatpush3.msra.mxu0 %v2807_v23 }
0x1294   :  { %3142 = vmatmul.mubr.msk.f32.vlgmr.msra.gmra.mxu1 %vm84_vm0, %v2135_v39  ;;  %3161 = vmatmul.mubr.msk.f32.vlgmr.msra.gmra.mxu0 %vm414_vm7, %v1955_v4  ;;  %v2830_v4 = vld [vmem:[%s3837_s8 + $0x20] sm:$0xff] }
0x1295   :  { %3150 = vmatpush3.msra.mxu1 %v2810_v40  ;;  %3174 = vmatprep.subr.mxu0 %v2844_v30 }
0x1296   :  { %3151 = vmatprep.subr.mxu1 %v2809_v41  ;;  %3175 = vmatpush3.msra.mxu0 %v2844_v30 }
0x1297   :  { %3152 = vmatpush3.msra.mxu1 %v2809_v41  ;;  %3176 = vmatprep.subr.mxu0 %v2843_v13 }
0x1298   :  { %3177 = vmatpush3.msra.mxu0 %v2843_v13 }
0x1299   :  { %3178 = vmatprep.subr.mxu0 %v2842_v31 }
0x129a   :  { %3179 = vmatpush3.msra.mxu0 %v2842_v31 }
0x129b   :  { %3180 = vmatprep.subr.mxu0 %v2841_v26 }
0x129c   :  { %3181 = vmatpush3.msra.mxu0 %v2841_v26 }
0x129d   :  { %3182 = vmatprep.subr.mxu0 %v2840_v27 }
0x129e   :  { %3183 = vmatpush3.msra.mxu0 %v2840_v27 }
0x129f   :  { %3184 = vmatprep.subr.mxu0 %v2839_v28 }
0x12a0   :  { %3185 = vmatpush3.msra.mxu0 %v2839_v28 }
0x12a1   :  { %3186 = vmatprep.subr.mxu0 %v2838_v33 }
0x12a2   :  { %3187 = vmatpush3.msra.mxu0 %v2838_v33 }
0x12a3   :  { %3188 = vmatprep.subr.mxu0 %v2837_v34 }
0x12a4   :  { %3189 = vmatpush3.msra.mxu0 %v2837_v34 }
0x1350   :  { %v2285_v42 = vpop.f32.mrf.mxu0 }
0x1352   :  { %v3148_v43 = vpop.f32.mrf.mxu0 }
0x1354   :  { %v2209_v44 = vpop.f32.mrf.mxu1  ;;  %v3162_v46 = vpop.f32.mrf.mxu0 }
0x1355   :  { %3153 = vmatprep.mubr.msk.f32.mxu1 %vm414_vm7, %v2209_v44 }
0x1356   :  { %v3143_v45 = vpop.f32.mrf.mxu1  ;;  %3154 = vmatmul.mubr.msk.f32.vlgmr.msra.gmra.mxu1 %vm414_vm7, %v2285_v42  ;;  %v2442_v50 = vpop.f32.mrf.mxu0 }
0x1416   :  { %v3155_v48 = vpop.f32.mrf.mxu1 }
0x1417   :  { %v2448_v49 = vadd.f32 %v3162_v46, %v3155_v48 }
0x1418   :  { %v2361_v51 = vpop.f32.mrf.mxu1 }
0x1419   :  { %v2456_v52 = vadd.f32 %v2827_v47, %v2448_v49  ;;  %v2443_v53 = vadd.f32 %v2442_v50, %v2361_v51 }
0x141b   :  { %v2455_v54 = vadd.f32 %v2827_v47, %v2443_v53  ;;  %v2458_v55 = vadd.f32 %v2456_v52, %v3654_v29 }
0x141d   :  { %v2462_v56 = vsel %vm254_vm5, %v2458_v55, 0.0  ;;  %v2457_v57 = vadd.f32 %v2455_v54, %v3656_v32  ;;  %v2833_v32 = vld [vmem:[%s3837_s8 + $0x38] sm:$0xff] }
0x141e   :  { %2463 = vadd.xlane.f32.xlu0 %v2462_v56  ;;  %3163 = vmatprep.subr.mxu1 %v2833_v32  ;;  %v2845_v56 = vld [vmem:[%s3834_s5 + $0xf] ss:$0 sm:$0xff] }
0x141f   :  { %v2459_v58 = vsel %vm254_vm5, %v2457_v57, 0.0  ;;  %3164 = vmatpush3.msra.mxu1 %v2833_v32 }
0x1420   :  { %2460 = vadd.xlane.f32.xlu1 %v2459_v58  ;;  %3165 = vmatprep.subr.mxu1 %v2832_v2 }
0x1421   :  { %3166 = vmatpush3.msra.mxu1 %v2832_v2 }
0x1422   :  { %3167 = vmatprep.subr.mxu1 %v2831_v3 }
0x1423   :  { %3168 = vmatpush3.msra.mxu1 %v2831_v3 }
0x1424   :  { %3169 = vmatprep.subr.mxu1 %v2830_v4 }
0x1425   :  { %3170 = vmatpush3.msra.mxu1 %v2830_v4 }
0x14a7   :  { %v2464_v59 = vpop.xlane.xlu0 %2463 }
0x14a8   :  { %v2466_v60 = vmul.f32 0.03125, %v2464_v59 }
0x14a9   :  { %v2461_v61 = vpop.xlane.xlu1 %2460 }
0x14aa   :  { %v2468_v8 = vsub.f32 %v2458_v55, %v2466_v60  ;;  %v2465_v6 = vmul.f32 0.03125, %v2461_v61 }
0x14ac   :  { %v2467_v62 = vsub.f32 %v2457_v57, %v2465_v6  ;;  %v2470_v63 = vmul.f32 %v2468_v8, %v2468_v8 }
0x14ae   :  { %v2474_v0 = vsel %vm254_vm5, %v2470_v63, 0.0  ;;  %v2469_v1 = vmul.f32 %v2467_v62, %v2467_v62 }
0x14af   :  { %2475 = vadd.xlane.f32.xlu0 %v2474_v0 }
0x14b0   :  { %v2471_v29 = vsel %vm254_vm5, %v2469_v1, 0.0 }
0x14b1   :  { %2472 = vadd.xlane.f32.xlu1 %v2471_v29 }
0x1538   :  { %v2476_v5 = vpop.xlane.xlu0 %2475 }
0x1539   :  { %v2478_v7 = vmul.f32 0.03125, %v2476_v5 }
0x153a   :  { %v2473_v9 = vpop.xlane.xlu1 %2472 }
0x153b   :  { %v2480_v10 = vadd.f32 1e-12, %v2478_v7  ;;  %v2477_v12 = vmul.f32 0.03125, %v2473_v9 }
0x153d   :  { %3255 = vrsqrt.f32 %v2480_v10  ;;  %v2479_v14 = vadd.f32 1e-12, %v2477_v12 }
0x153f   :  { %3257 = vrsqrt.f32 %v2479_v14 }
0x154a   :  { %v3256_v15 = vpop.eup %3255 }
0x154b   :  { %v2484_v17 = vmul.f32 %v3256_v15, %v2468_v8 }
0x154c   :  { %v3258_v18 = vpop.eup %3257 }
0x154d   :  { %v2483_v19 = vmul.f32 %v3258_v18, %v2467_v62  ;;  %v2490_v22 = vmul.f32 %v2828_v16, %v2484_v17  ;;  %v2848_v18 = vld [vmem:[%s3834_s5 + $0x10] ss:$0 sm:$0xff] }
0x154f   :  { %v2489_v21 = vmul.f32 %v2828_v16, %v2483_v19  ;;  %v2496_v25 = vadd.f32 %v2829_v20, %v2490_v22 }
0x1551   :  { %v2495_v24 = vadd.f32 %v2829_v20, %v2489_v21  ;;  %v2849_v20 = vld [vmem:[%s3834_s5 + $0x11] ss:$0 sm:$0xff] }
0x1553   :  { %3171 = vmatprep.mubr.msk.f32.mxu1 %vm254_vm5, %v2495_v24 }
0x1554   :  { %3172 = vmatmul.mubr.msk.f32.vlgmr.msra.gmra.mxu1 %vm254_vm5, %v2496_v25 }
0x1614   :  { %v3173_v36 = vpop.f32.mrf.mxu1 }
0x1615   :  { %v2584_v37 = vadd.f32 %v3173_v36, %v2834_v35 }
0x1616   :  { %v2578_v38 = vpop.f32.mrf.mxu1 }
0x1617   :  { %v2590_v23 = vmul.f32 0.044715, %v2584_v37  ;;  %v2579_v11 = vadd.f32 %v2834_v35, %v2578_v38  ;;  %v2588_v53 = vmul.f32 0.5, %v2584_v37 }
0x1619   :  { %v2592_v39 = vmul.f32 %v2590_v23, %v2584_v37  ;;  %v2589_v40 = vmul.f32 0.044715, %v2579_v11  ;;  %v2587_v51 = vmul.f32 0.5, %v2579_v11 }
0x161b   :  { %v2594_v41 = vmul.f32 %v2592_v39, %v2584_v37  ;;  %v2591_v42 = vmul.f32 %v2589_v40, %v2579_v11 }
0x161d   :  { %v2596_v43 = vadd.f32 %v2594_v41, %v2584_v37  ;;  %v2593_v44 = vmul.f32 %v2591_v42, %v2579_v11 }
0x161f   :  { %v2598_v45 = vmul.f32 0.7978846, %v2596_v43  ;;  %v2595_v46 = vadd.f32 %v2593_v44, %v2579_v11 }
0x1621   :  { %3259 = vtanh.f32 %v2598_v45  ;;  %v2597_v47 = vmul.f32 0.7978846, %v2595_v46 }
0x1623   :  { %3261 = vtanh.f32 %v2597_v47 }
0x162e   :  { %v3260_v48 = vpop.eup %3259 }
0x162f   :  { %v2602_v50 = vadd.f32 1.0, %v3260_v48 }
0x1630   :  { %v3262_v49 = vpop.eup %3261 }
0x1631   :  { %v2601_v52 = vadd.f32 1.0, %v3262_v49  ;;  %v2604_v55 = vmul.f32 %v2602_v50, %v2588_v53 }
0x1633   :  { %v2603_v54 = vmul.f32 %v2601_v52, %v2587_v51 }
0x1635   :  { %3190 = vmatprep.mubr.msk.f32.mxu0 %vm1399_vm8, %v2603_v54 }
0x1636   :  { %3191 = vmatmul.mubr.msk.f32.vlgmr.msra.gmra.mxu0 %vm1399_vm8, %v2604_v55 }
0x16f6   :  { %v3192_v57 = vpop.f32.mrf.mxu0 }
0x16f7   :  { %v2696_v58 = vadd.f32 %v3192_v57, %v2845_v56 }
0x16f8   :  { %v2690_v59 = vpop.f32.mrf.mxu0 }
0x16f9   :  { %v2691_v60 = vadd.f32 %v2845_v56, %v2690_v59  ;;  %v2700_v61 = vadd.f32 %v2696_v58, %v2496_v25 }
0x16fb   :  { %v2704_v8 = vsel %vm254_vm5, %v2700_v61, 0.0  ;;  %v2699_v6 = vadd.f32 %v2691_v60, %v2495_v24 }
0x16fc   :  { %2705 = vadd.xlane.f32.xlu0 %v2704_v8 }
0x16fd   :  { %v2701_v62 = vsel %vm254_vm5, %v2699_v6, 0.0 }
0x16fe   :  { %2702 = vadd.xlane.f32.xlu1 %v2701_v62 }
0x1785   :  { %v2706_v63 = vpop.xlane.xlu0 %2705 }
0x1786   :  { %v2708_v0 = vmul.f32 0.03125, %v2706_v63 }
0x1787   :  { %v2703_v1 = vpop.xlane.xlu1 %2702 }
0x1788   :  { %v2710_v29 = vsub.f32 %v2700_v61, %v2708_v0  ;;  %v2707_v32 = vmul.f32 0.03125, %v2703_v1 }
0x178a   :  { %v2709_v2 = vsub.f32 %v2699_v6, %v2707_v32  ;;  %v2712_v3 = vmul.f32 %v2710_v29, %v2710_v29 }
0x178c   :  { %v2716_v4 = vsel %vm254_vm5, %v2712_v3, 0.0  ;;  %v2711_v5 = vmul.f32 %v2709_v2, %v2709_v2 }
0x178d   :  { %2717 = vadd.xlane.f32.xlu0 %v2716_v4 }
0x178e   :  { %v2713_v7 = vsel %vm254_vm5, %v2711_v5, 0.0 }
0x178f   :  { %2714 = vadd.xlane.f32.xlu1 %v2713_v7 }
0x1816   :  { %v2718_v9 = vpop.xlane.xlu0 %2717 }
0x1817   :  { %v2720_v10 = vmul.f32 0.03125, %v2718_v9 }
0x1818   :  { %v2715_v12 = vpop.xlane.xlu1 %2714 }
0x1819   :  { %v2722_v14 = vadd.f32 1e-12, %v2720_v10  ;;  %v2719_v15 = vmul.f32 0.03125, %v2715_v12 }
0x181b   :  { %3263 = vrsqrt.f32 %v2722_v14  ;;  %v2721_v16 = vadd.f32 1e-12, %v2719_v15 }
0x181d   :  { %3265 = vrsqrt.f32 %v2721_v16 }
0x1828   :  { %v3264_v17 = vpop.eup %3263 }
0x1829   :  { %v2726_v19 = vmul.f32 %v3264_v17, %v2710_v29 }
0x182a   :  { %v3266_v22 = vpop.eup %3265 }
0x182b   :  { %v2732_v21 = vmul.f32 %v2848_v18, %v2726_v19  ;;  %v2725_v24 = vmul.f32 %v3266_v22, %v2709_v2 }
0x182d   :  { %v2738_v25 = vadd.f32 %v2849_v20, %v2732_v21  ;;  %v2731_v30 = vmul.f32 %v2848_v18, %v2725_v24 }
0x182f   :  { %2741 = vst.msk [vmem:[#allocation2 + $0x28] sm:$0xff] %vm254_vm5, %v2738_v25  ;;  %v2737_v13 = vadd.f32 %v2849_v20, %v2731_v30 }
0x1831   :  { %2740 = vst.msk [vmem:[#allocation2 + $0x20] sm:$0xff] %vm254_vm5, %v2737_v13 }
0x1832   :  { %3278 = shalt.err (!%p3275_p4)
}
0x1833   :  { %s3299_s5 = smov 128   ;;  %s3300_s8 = smov 8  }
0x1834   :  { %2753 = dma.vmem_to_hbm [thread:$0]  %s2748_s16, 768, %s3839_s10, [#allocation3], %s3299_s5, %s3299_s5, %s3300_s8  }
0x1835   :  { %3287 = dma.done.wait [#allocation3], 768  }
0x1836   :  { %3288 = vsyncadd [#allocation3], 4294966528 }
0x1837   :  { %2757 = vsyncpa [#allocation3], 1 }

</bundles_post_ra>
